<compile_context>
chip_gen: v6e
topology: v6e:2x2x1
jax: 0.10.0
libtpu: 0.0.40
codegen_flags: <defaults>
</compile_context>

<pallas_src>
import functools
import math

import jax
import jax.numpy as jnp
from jax.experimental import pallas as pl
from jax.experimental.pallas import tpu as pltpu


def _round_up(x, m):
    return -(-x // m) * m


def _lstm_recurrent_kernel(gates_ref, wh_ref, out_ref, cn_ref, h_scr, c_scr,
                           *, hidden, chunk, seq_len, unroll):
    """Recurrent part of one LSTM layer.

    grid = (batch_tiles [parallel], time_chunks [arbitrary/sequential]).
    gates_ref: (chunk, bt, 4Hp) bf16 precomputed x@W_i + bias slab.
    wh_ref:    (Hp, 4Hp) bf16 recurrent weights, resident (single buffer).
    h/c state lives in f32 VMEM scratch across time chunks.
    """
    Hp = hidden
    c_idx = pl.program_id(1)                 # time-chunk index (sequential)

    @pl.when(c_idx == 0)
    def _():
        h_scr[...] = jnp.zeros_like(h_scr)
        c_scr[...] = jnp.zeros_like(c_scr)

    wh = wh_ref[...]                          # (Hp, 4Hp) bf16, resident

    # sigmoid(x) == 0.5*(tanh(x/2)+1): pre-scale i/f/o lanes by 0.5 so a single
    # wide tanh over the whole (bt, 4Hp) slab covers all four gates — one EUP
    # push per step instead of four narrow ones.  Hoisted out of the loop.
    lane = jax.lax.broadcasted_iota(jnp.int32, (1, 4 * Hp), 1)
    gate_scale = jnp.where((lane >= 2 * Hp) & (lane < 3 * Hp),
                           1.0, 0.5).astype(jnp.float32)

    def step(tt, carry):
        h, c_state = carry                                   # f32 (bt, Hp)
        pre = gates_ref[tt].astype(jnp.float32)               # bf16 slab -> f32
        # TODO(synk): verify in the bundle dump that the W_h weight push is
        #             hoisted out of this unrolled loop; otherwise drive the
        #             MXU explicitly (matmul_push_rhs / matmul_acc_lhs / pop).
        rec = jnp.dot(h.astype(wh.dtype), wh,
                      preferred_element_type=jnp.float32)
        a = jnp.tanh((pre + rec) * gate_scale)                # one EUP pass
        i = a[:, 0 * Hp:1 * Hp]
        f = a[:, 1 * Hp:2 * Hp]
        g = a[:, 2 * Hp:3 * Hp]
        o = a[:, 3 * Hp:4 * Hp]
        c_new = 0.5 * (i + 1.0) * g + 0.5 * (f + 1.0) * c_state
        h_new = 0.5 * (o + 1.0) * jnp.tanh(c_new)
        out_ref[tt] = h_new.astype(out_ref.dtype)
        if seq_len % chunk != 0:                              # static: padded T
            valid = (c_idx * chunk + tt) < seq_len
            c_new = jnp.where(valid, c_new, c_state)
            h_new = jnp.where(valid, h_new, h)
        return h_new, c_new

    h_fin, c_fin = jax.lax.fori_loop(0, chunk, step,
                                     (h_scr[...], c_scr[...]), unroll=unroll)
    h_scr[...] = h_fin
    c_scr[...] = c_fin

    @pl.when(c_idx == pl.num_programs(1) - 1)
    def _():
        cn_ref[...] = c_fin


def lstm_layer(x, wi, bi, wh, bh, *, batch, out_dtype=jnp.float32,
               slice_out=True, matmul_dtype=jnp.bfloat16,
               gate_dtype=jnp.bfloat16, max_chunk=16):
    """One LSTM layer.

    x:  [T, Bx, Ix] time-major.  Bx/Ix may already be padded (previous layer's
        padded output is consumed directly; padded hidden lanes are exactly 0
        and padded batch rows are independent, so no slice/re-pad pass).
    wi: [I, 4H] (gate order i, f, g, o), bi: [1, 4H]
    wh: [H, 4H], bh: [1, 4H]
    Returns (out, hn [B,H] f32, cn [B,H] f32); out is [T,B,H] if slice_out
    else the padded [T,Bp,Hp] slab in out_dtype for the next layer.
    """
    T, Bx, Ix = x.shape
    I = wi.shape[0]
    H = wh.shape[0]
    B = batch
    mm_dt = matmul_dtype

    Hp = _round_up(H, 128)                      # lane alignment per gate block

    # ---- Batch padding / tiling.  Batch tiles form a "parallel" grid axis so
    # large-B layers can use both TensorCores on v7x (nb == 1 for small B).
    Bp = _round_up(max(B, 1), 8)
    if Bp >= 32:
        b_tile = _round_up(-(-Bp // 2), 16)     # 16-aligned (bf16 sublane pack)
        Bp = _round_up(Bp, b_tile)
    else:
        b_tile = Bp
    nb = Bp // b_tile

    # ---- Time chunking with minimal padding (no Tc=1 cliff for awkward T).
    nt = -(-T // max_chunk)
    Tc = -(-T // nt)
    Tp = nt * Tc

    # ---- Align the incoming activation slab to (Bp, Ix).
    if Bx < Bp:
        x = jnp.pad(x, ((0, 0), (0, Bp - Bx), (0, 0)))
    elif Bx > Bp:
        x = x[:, :Bp, :]
    if Ix > I:                                   # previous layer's padded lanes
        wi = jnp.pad(wi, ((0, Ix - I), (0, 0)))  # zero rows -> exact no-op

    # ---- Pre-pad weights/biases into the gate-blocked padded layout so the
    # hoisted GEMM writes the (T, Bp, 4Hp) slab directly (no post-GEMM pass).
    def _gate_pad(w):
        lead = w.shape[:-1]
        w4 = w.reshape(lead + (4, H))
        w4 = jnp.pad(w4, [(0, 0)] * len(lead) + [(0, 0), (0, Hp - H)])
        return w4.reshape(lead + (4 * Hp,))

    wi_p = _gate_pad(wi).astype(mm_dt)                                  # (Ix, 4Hp)
    wh_p = _gate_pad(jnp.pad(wh, ((0, Hp - H), (0, 0)))).astype(mm_dt)  # (Hp, 4Hp)
    bi_p = _gate_pad(bi[0])                                             # (4Hp,) f32
    bh_p = _gate_pad(bh[0])                                             # (4Hp,) f32

    # ---- Hoisted input projection: one big bf16 GEMM over all T timesteps.
    # b_h is added only for t > 0 (this module skips the recurrent Linears —
    # including their bias — when hx is None at t == 0); the time-masked bias
    # add fuses with the f32->bf16 cast, no extra slab pass.
    proj = jnp.einsum('tbi,ih->tbh', x.astype(mm_dt), wi_p,
                      preferred_element_type=jnp.float32)
    t_mask = (jnp.arange(T) > 0).astype(jnp.float32)[:, None, None]
    bias = bi_p[None, None, :] + t_mask * bh_p[None, None, :]
    gates_p = (proj + bias).astype(gate_dtype)                          # bf16 slab
    if Tp > T:
        gates_p = jnp.pad(gates_p, ((0, Tp - T), (0, 0), (0, 0)))

    # ---- VMEM budget (double-buffered slabs + single-buffered resident W_h).
    gbytes = jnp.dtype(gate_dtype).itemsize
    wbytes = jnp.dtype(mm_dt).itemsize
    obytes = jnp.dtype(out_dtype).itemsize
    vmem_needed = (2 * Tc * b_tile * 4 * Hp * gbytes      # gate slab (in)
                   + 1 * Hp * 4 * Hp * wbytes             # resident W_h
                   + 2 * Tc * b_tile * Hp * obytes        # output slab
                   + 2 * b_tile * Hp * 4                  # c_n output
                   + 2 * b_tile * Hp * 4)                 # h/c scratch
    vmem_limit = min(max(int(vmem_needed * 1.5), 16 * 1024 * 1024),
                     64 * 1024 * 1024)

    kernel = functools.partial(_lstm_recurrent_kernel, hidden=Hp, chunk=Tc,
                               seq_len=T, unroll=min(Tc, 8))
    out_p, cn_p = pl.pallas_call(
        kernel,
        out_shape=(
            jax.ShapeDtypeStruct((Tp, Bp, Hp), out_dtype),
            jax.ShapeDtypeStruct((Bp, Hp), jnp.float32),
        ),
        grid_spec=pltpu.PrefetchScalarGridSpec(
            num_scalar_prefetch=0,
            grid=(nb, nt),
            in_specs=[
                pl.BlockSpec((Tc, b_tile, 4 * Hp), lambda b, c: (c, b, 0)),
                pl.BlockSpec((Hp, 4 * Hp), lambda b, c: (0, 0),
                             pipeline_mode=pl.Buffered(1)),   # resident, 1 copy
            ],
            out_specs=[
                pl.BlockSpec((Tc, b_tile, Hp), lambda b, c: (c, b, 0)),
                pl.BlockSpec((b_tile, Hp), lambda b, c: (b, 0)),
            ],
            scratch_shapes=[
                pltpu.VMEM((b_tile, Hp), jnp.float32),   # h state
                pltpu.VMEM((b_tile, Hp), jnp.float32),   # c state
            ],
        ),
        compiler_params=pltpu.CompilerParams(
            dimension_semantics=("parallel", "arbitrary"),
            vmem_limit_bytes=vmem_limit),
    )(gates_p, wh_p)

    hn = out_p[T - 1, :B, :H].astype(jnp.float32)
    cn = cn_p[:B, :H]
    if slice_out:
        out = out_p[:T, :B, :H]
    else:
        out = out_p[:T]          # keep padded layout for the next layer
    return out, hn, cn


def init_lstm_params(key, input_size, hidden_size, num_layers):
    """Mirrors the PyTorch init: uniform(-k, k), k = sqrt(1 / hidden_size).

    The 8 Linear layers of each cell are packed as
      wi: [in_dim, 4H] (gate order i, f, g, o), bi: [1, 4H],
      wh: [H, 4H],                              bh: [1, 4H].
    """
    k = math.sqrt(1.0 / hidden_size)
    params = []
    for layer in range(num_layers):
        in_dim = input_size if layer == 0 else hidden_size
        key, *subkeys = jax.random.split(key, 5)
        wi = jax.random.uniform(subkeys[0], (in_dim, 4 * hidden_size),
                                jnp.float32, -k, k)
        bi = jax.random.uniform(subkeys[1], (1, 4 * hidden_size),
                                jnp.float32, -k, k)
        wh = jax.random.uniform(subkeys[2], (hidden_size, 4 * hidden_size),
                                jnp.float32, -k, k)
        bh = jax.random.uniform(subkeys[3], (1, 4 * hidden_size),
                                jnp.float32, -k, k)
        params.append((wi, bi, wh, bh))
    return params


def lstm_forward(inputs, params):
    """inputs: [T, B, input_size] -> (outputs [T,B,H], (hns [L,B,H], cns [L,B,H]))."""
    T, B, _ = inputs.shape
    x = inputs
    hns, cns = [], []
    n = len(params)
    for li, (wi, bi, wh, bh) in enumerate(params):
        last = li == n - 1
        # Intermediate layers hand their padded output slab to the next layer
        # in bf16 (halves inter-layer HBM traffic); the final layer is f32.
        x, hn, cn = lstm_layer(x, wi, bi, wh, bh, batch=B,
                               out_dtype=jnp.float32 if last else jnp.bfloat16,
                               slice_out=last)
        hns.append(hn)
        cns.append(cn)
    return x, (jnp.stack(hns), jnp.stack(cns))


def lstm_forward_ref(inputs, params, matmul_dtype=None):
    """Pure-JAX reference with this module's PyTorch semantics.

    matmul_dtype=None     -> full f32 (exact PyTorch math)
    matmul_dtype=bfloat16 -> mirrors the kernel path's precision choices
                             (bf16 matmuls, bf16 gate slab, bf16 inter-layer
                              activations), for a tight apples-to-apples check.
    """
    mirror = matmul_dtype is not None
    if mirror:
        mm = lambda a, b: jnp.dot(a.astype(matmul_dtype), b.astype(matmul_dtype),
                                  preferred_element_type=jnp.float32)
        rnd = lambda a: a.astype(matmul_dtype).astype(jnp.float32)
    else:
        mm = jnp.dot
        rnd = lambda a: a

    x = inputs
    hns, cns = [], []
    n_layers = len(params)
    for li, (wi, bi, wh, bh) in enumerate(params):
        T = x.shape[0]
        H = wh.shape[0]
        outs = []
        h = c = None
        for t in range(T):
            pre = mm(x[t], wi) + bi[0]
            if h is not None:
                pre = pre + bh[0]          # b_h only when hx is not None (t>0)
            pre = rnd(pre)                 # kernel stores the gate slab in bf16
            gates = pre if h is None else pre + mm(h, wh)
            i = jax.nn.sigmoid(gates[:, 0 * H:1 * H])
            f = jax.nn.sigmoid(gates[:, 1 * H:2 * H])
            g = jnp.tanh(gates[:, 2 * H:3 * H])
            o = jax.nn.sigmoid(gates[:, 3 * H:4 * H])
            c = i * g if c is None else i * g + f * c
            h = o * jnp.tanh(c)
            outs.append(h)
        out = jnp.stack(outs)
        if mirror and li < n_layers - 1:
            out = rnd(out)                 # intermediate layer outputs in bf16
        hns.append(out[-1])
        cns.append(c)
        x = out
    return x, (jnp.stack(hns), jnp.stack(cns))


if __name__ == "__main__":
    T, B = 8, 2
    INPUT_SIZE, HIDDEN_SIZE, NUM_LAYERS = 16, 32, 2

    key = jax.random.PRNGKey(0)
    key, pkey, xkey = jax.random.split(key, 3)
    params = init_lstm_params(pkey, INPUT_SIZE, HIDDEN_SIZE, NUM_LAYERS)
    inputs = jax.random.normal(xkey, (T, B, INPUT_SIZE), jnp.float32)

    out, (hns, cns) = jax.jit(lstm_forward)(inputs, params)
    out = jax.block_until_ready(out)
    hns = jax.block_until_ready(hns)
    cns = jax.block_until_ready(cns)

    assert out.shape == (T, B, HIDDEN_SIZE)
    assert hns.shape == (NUM_LAYERS, B, HIDDEN_SIZE)
    assert cns.shape == (NUM_LAYERS, B, HIDDEN_SIZE)

    # Strict check against a reference mirroring the kernel's precision.
    out_rb, (hns_rb, cns_rb) = lstm_forward_ref(inputs, params,
                                                matmul_dtype=jnp.bfloat16)
    assert jnp.allclose(out, out_rb, atol=2e-3, rtol=2e-3)
    assert jnp.allclose(hns, hns_rb, atol=2e-3, rtol=2e-3)
    assert jnp.allclose(cns, cns_rb, atol=2e-3, rtol=2e-3)

    # Loose check against the exact f32 PyTorch-equivalent reference
    # (kernel uses bf16 matmuls / bf16 gate slab with f32 accumulation).
    out_rf, (hns_rf, cns_rf) = lstm_forward_ref(inputs, params)
    assert jnp.allclose(out, out_rf, atol=5e-2, rtol=5e-2)
    assert jnp.allclose(hns, hns_rf, atol=5e-2, rtol=5e-2)
    assert jnp.allclose(cns, cns_rf, atol=5e-2, rtol=5e-2)

    print("KERNEL_OK")
</pallas_src>

<mosaic_0001>
module attributes {stable_mosaic.version = 11 : i64} {
  func.func @_lstm_recurrent_kernel(%arg0: i32, %arg1: i32, %arg2: memref<8x8x512xbf16, #tpu.memory_space<vmem>>, %arg3: memref<128x512xbf16, #tpu.memory_space<vmem>>, %arg4: memref<8x8x128xbf16, #tpu.memory_space<vmem>>, %arg5: memref<8x128xf32, #tpu.memory_space<vmem>>, %arg6: memref<8x128xf32, #tpu.memory_space<vmem>>, %arg7: memref<8x128xf32, #tpu.memory_space<vmem>>) attributes {dimension_semantics = [#tpu.dimension_semantics<parallel>, #tpu.dimension_semantics<arbitrary>], iteration_bounds = array<i64: 1, 1>, scalar_prefetch = 0 : i64, scratch_operands = 2 : i64, tpu.core_type = #tpu.core_type<tc>, window_params = [{transform_indices = @transform_0, window_bounds = array<i64: 8, 8, 512>}, {pipeline_mode = #tpu.pipeline_mode<synchronous>, transform_indices = @transform_1, window_bounds = array<i64: 128, 512>}, {transform_indices = @transform_2, window_bounds = array<i64: 8, 8, 128>}, {transform_indices = @transform_3, window_bounds = array<i64: 8, 128>}]} {
    %c0_i32 = arith.constant 0 : i32
    %0 = arith.cmpi eq, %arg1, %c0_i32 : i32
    %1 = arith.extui %0 : i1 to i32
    %c0_i32_0 = arith.constant 0 : i32
    %2 = arith.cmpi ne, %1, %c0_i32_0 : i32
    scf.if %2 {
      %cst_102 = arith.constant 0.000000e+00 : f32
      %308 = vector.broadcast %cst_102 : f32 to vector<8x128xf32>
      %c0_103 = arith.constant 0 : index
      %c0_104 = arith.constant 0 : index
      %309 = vector.load %arg6[%c0_103, %c0_104] : memref<8x128xf32, #tpu.memory_space<vmem>>, vector<8x128xf32>
      tpu.vector_store %arg6[%c0_103, %c0_104], %308 {strides = array<i32>} : memref<8x128xf32, #tpu.memory_space<vmem>>, vector<8x128xf32>,
      %cst_105 = arith.constant 0.000000e+00 : f32
      %310 = vector.broadcast %cst_105 : f32 to vector<8x128xf32>
      %c0_106 = arith.constant 0 : index
      %c0_107 = arith.constant 0 : index
      %311 = vector.load %arg7[%c0_106, %c0_107] : memref<8x128xf32, #tpu.memory_space<vmem>>, vector<8x128xf32>
      tpu.vector_store %arg7[%c0_106, %c0_107], %310 {strides = array<i32>} : memref<8x128xf32, #tpu.memory_space<vmem>>, vector<8x128xf32>,
    } else {
    }
    %c0 = arith.constant 0 : index
    %c0_1 = arith.constant 0 : index
    %3 = vector.load %arg3[%c0, %c0_1] : memref<128x512xbf16, #tpu.memory_space<vmem>>, vector<128x512xbf16>
    %4 = tpu.iota {dimensions = array<i32: 1>} : vector<1x512xi32>
    %c256_i32 = arith.constant 256 : i32
    %5 = vector.broadcast %c256_i32 : i32 to vector<1x512xi32>
    %6 = arith.cmpi sge, %4, %5 : vector<1x512xi32>
    %c384_i32 = arith.constant 384 : i32
    %7 = vector.broadcast %c384_i32 : i32 to vector<1x512xi32>
    %8 = arith.cmpi slt, %4, %7 : vector<1x512xi32>
    %9 = arith.andi %6, %8 : vector<1x512xi1>
    %cst = arith.constant 1.000000e+00 : f32
    %cst_2 = arith.constant 5.000000e-01 : f32
    %10 = vector.broadcast %cst : f32 to vector<1x512xf32>
    %11 = vector.broadcast %cst_2 : f32 to vector<1x512xf32>
    %12 = arith.select %9, %10, %11 : vector<1x512xi1>, vector<1x512xf32>
    %c0_3 = arith.constant 0 : index
    %c0_4 = arith.constant 0 : index
    %13 = vector.load %arg6[%c0_3, %c0_4] : memref<8x128xf32, #tpu.memory_space<vmem>>, vector<8x128xf32>
    %c0_5 = arith.constant 0 : index
    %c0_6 = arith.constant 0 : index
    %14 = vector.load %arg7[%c0_5, %c0_6] : memref<8x128xf32, #tpu.memory_space<vmem>>, vector<8x128xf32>
    %c0_i32_7 = arith.constant 0 : i32
    %15 = arith.index_cast %c0_i32_7 : i32 to index
    %c0_8 = arith.constant 0 : index
    %c0_9 = arith.constant 0 : index
    %16 = vector.load %arg2[%15, %c0_8, %c0_9] : memref<8x8x512xbf16, #tpu.memory_space<vmem>>, vector<1x8x512xbf16>
    %17 = vector.shape_cast %16 : vector<1x8x512xbf16> to vector<8x512xbf16>
    %18 = arith.extf %17 : vector<8x512xbf16> to vector<8x512xf32>
    %19 = arith.truncf %13 : vector<8x128xf32> to vector<8x128xbf16>
    %cst_10 = arith.constant dense<0.000000e+00> : vector<8x512xf32>
    %20 = tpu.matmul %19, %3, %cst_10 {dimension_numbers = #tpu.dot_dimension_numbers<[1], [0], [0], [1], [0, 0, 1, 1], [], []>} : vector<8x128xbf16>, vector<128x512xbf16>, vector<8x512xf32> -> vector<8x512xf32>
    %21 = arith.addf %18, %20 : vector<8x512xf32>
    %22 = vector.broadcast %12 : vector<1x512xf32> to vector<8x512xf32>
    %23 = arith.mulf %21, %22 : vector<8x512xf32>
    %24 = math.tanh %23 : vector<8x512xf32>
    %25 = vector.extract_strided_slice %24 {offsets = [0, 0], sizes = [8, 128], strides = [1, 1]} : vector<8x512xf32> to vector<8x128xf32>
    %26 = vector.extract_strided_slice %24 {offsets = [0, 128], sizes = [8, 128], strides = [1, 1]} : vector<8x512xf32> to vector<8x128xf32>
    %27 = vector.extract_strided_slice %24 {offsets = [0, 256], sizes = [8, 128], strides = [1, 1]} : vector<8x512xf32> to vector<8x128xf32>
    %28 = vector.extract_strided_slice %24 {offsets = [0, 384], sizes = [8, 128], strides = [1, 1]} : vector<8x512xf32> to vector<8x128xf32>
    %cst_11 = arith.constant 1.000000e+00 : f32
    %29 = vector.broadcast %cst_11 : f32 to vector<8x128xf32>
    %30 = arith.addf %25, %29 : vector<8x128xf32>
    %cst_12 = arith.constant 5.000000e-01 : f32
    %31 = vector.broadcast %cst_12 : f32 to vector<8x128xf32>
    %32 = arith.mulf %31, %30 : vector<8x128xf32>
    %33 = arith.mulf %32, %27 : vector<8x128xf32>
    %cst_13 = arith.constant 1.000000e+00 : f32
    %34 = vector.broadcast %cst_13 : f32 to vector<8x128xf32>
    %35 = arith.addf %26, %34 : vector<8x128xf32>
    %cst_14 = arith.constant 5.000000e-01 : f32
    %36 = vector.broadcast %cst_14 : f32 to vector<8x128xf32>
    %37 = arith.mulf %36, %35 : vector<8x128xf32>
    %38 = arith.mulf %37, %14 : vector<8x128xf32>
    %39 = arith.addf %33, %38 : vector<8x128xf32>
    %cst_15 = arith.constant 1.000000e+00 : f32
    %40 = vector.broadcast %cst_15 : f32 to vector<8x128xf32>
    %41 = arith.addf %28, %40 : vector<8x128xf32>
    %cst_16 = arith.constant 5.000000e-01 : f32
    %42 = vector.broadcast %cst_16 : f32 to vector<8x128xf32>
    %43 = arith.mulf %42, %41 : vector<8x128xf32>
    %44 = math.tanh %39 : vector<8x128xf32>
    %45 = arith.mulf %43, %44 : vector<8x128xf32>
    %46 = arith.truncf %45 : vector<8x128xf32> to vector<8x128xbf16>
    %47 = arith.index_cast %c0_i32_7 : i32 to index
    %c0_17 = arith.constant 0 : index
    %c0_18 = arith.constant 0 : index
    %48 = vector.load %arg4[%47, %c0_17, %c0_18] : memref<8x8x128xbf16, #tpu.memory_space<vmem>>, vector<1x8x128xbf16>
    %49 = vector.shape_cast %48 : vector<1x8x128xbf16> to vector<8x128xbf16>
    %50 = vector.shape_cast %46 : vector<8x128xbf16> to vector<1x8x128xbf16>
    tpu.vector_store %arg4[%47, %c0_17, %c0_18], %50 {strides = array<i32>} : memref<8x8x128xbf16, #tpu.memory_space<vmem>>, vector<1x8x128xbf16>,
    %c1_i32 = arith.constant 1 : i32
    %51 = arith.index_cast %c1_i32 : i32 to index
    %c0_19 = arith.constant 0 : index
    %c0_20 = arith.constant 0 : index
    %52 = vector.load %arg2[%51, %c0_19, %c0_20] : memref<8x8x512xbf16, #tpu.memory_space<vmem>>, vector<1x8x512xbf16>
    %53 = vector.shape_cast %52 : vector<1x8x512xbf16> to vector<8x512xbf16>
    %54 = arith.extf %53 : vector<8x512xbf16> to vector<8x512xf32>
    %55 = arith.truncf %45 : vector<8x128xf32> to vector<8x128xbf16>
    %cst_21 = arith.constant dense<0.000000e+00> : vector<8x512xf32>
    %56 = tpu.matmul %55, %3, %cst_21 {dimension_numbers = #tpu.dot_dimension_numbers<[1], [0], [0], [1], [0, 0, 1, 1], [], []>} : vector<8x128xbf16>, vector<128x512xbf16>, vector<8x512xf32> -> vector<8x512xf32>
    %57 = arith.addf %54, %56 : vector<8x512xf32>
    %58 = vector.broadcast %12 : vector<1x512xf32> to vector<8x512xf32>
    %59 = arith.mulf %57, %58 : vector<8x512xf32>
    %60 = math.tanh %59 : vector<8x512xf32>
    %61 = vector.extract_strided_slice %60 {offsets = [0, 0], sizes = [8, 128], strides = [1, 1]} : vector<8x512xf32> to vector<8x128xf32>
    %62 = vector.extract_strided_slice %60 {offsets = [0, 128], sizes = [8, 128], strides = [1, 1]} : vector<8x512xf32> to vector<8x128xf32>
    %63 = vector.extract_strided_slice %60 {offsets = [0, 256], sizes = [8, 128], strides = [1, 1]} : vector<8x512xf32> to vector<8x128xf32>
    %64 = vector.extract_strided_slice %60 {offsets = [0, 384], sizes = [8, 128], strides = [1, 1]} : vector<8x512xf32> to vector<8x128xf32>
    %cst_22 = arith.constant 1.000000e+00 : f32
    %65 = vector.broadcast %cst_22 : f32 to vector<8x128xf32>
    %66 = arith.addf %61, %65 : vector<8x128xf32>
    %cst_23 = arith.constant 5.000000e-01 : f32
    %67 = vector.broadcast %cst_23 : f32 to vector<8x128xf32>
    %68 = arith.mulf %67, %66 : vector<8x128xf32>
    %69 = arith.mulf %68, %63 : vector<8x128xf32>
    %cst_24 = arith.constant 1.000000e+00 : f32
    %70 = vector.broadcast %cst_24 : f32 to vector<8x128xf32>
    %71 = arith.addf %62, %70 : vector<8x128xf32>
    %cst_25 = arith.constant 5.000000e-01 : f32
    %72 = vector.broadcast %cst_25 : f32 to vector<8x128xf32>
    %73 = arith.mulf %72, %71 : vector<8x128xf32>
    %74 = arith.mulf %73, %39 : vector<8x128xf32>
    %75 = arith.addf %69, %74 : vector<8x128xf32>
    %cst_26 = arith.constant 1.000000e+00 : f32
    %76 = vector.broadcast %cst_26 : f32 to vector<8x128xf32>
    %77 = arith.addf %64, %76 : vector<8x128xf32>
    %cst_27 = arith.constant 5.000000e-01 : f32
    %78 = vector.broadcast %cst_27 : f32 to vector<8x128xf32>
    %79 = arith.mulf %78, %77 : vector<8x128xf32>
    %80 = math.tanh %75 : vector<8x128xf32>
    %81 = arith.mulf %79, %80 : vector<8x128xf32>
    %82 = arith.truncf %81 : vector<8x128xf32> to vector<8x128xbf16>
    %83 = arith.index_cast %c1_i32 : i32 to index
    %c0_28 = arith.constant 0 : index
    %c0_29 = arith.constant 0 : index
    %84 = vector.load %arg4[%83, %c0_28, %c0_29] : memref<8x8x128xbf16, #tpu.memory_space<vmem>>, vector<1x8x128xbf16>
    %85 = vector.shape_cast %84 : vector<1x8x128xbf16> to vector<8x128xbf16>
    %86 = vector.shape_cast %82 : vector<8x128xbf16> to vector<1x8x128xbf16>
    tpu.vector_store %arg4[%83, %c0_28, %c0_29], %86 {strides = array<i32>} : memref<8x8x128xbf16, #tpu.memory_space<vmem>>, vector<1x8x128xbf16>,
    %c2_i32 = arith.constant 2 : i32
    %87 = arith.index_cast %c2_i32 : i32 to index
    %c0_30 = arith.constant 0 : index
    %c0_31 = arith.constant 0 : index
    %88 = vector.load %arg2[%87, %c0_30, %c0_31] : memref<8x8x512xbf16, #tpu.memory_space<vmem>>, vector<1x8x512xbf16>
    %89 = vector.shape_cast %88 : vector<1x8x512xbf16> to vector<8x512xbf16>
    %90 = arith.extf %89 : vector<8x512xbf16> to vector<8x512xf32>
    %91 = arith.truncf %81 : vector<8x128xf32> to vector<8x128xbf16>
    %cst_32 = arith.constant dense<0.000000e+00> : vector<8x512xf32>
    %92 = tpu.matmul %91, %3, %cst_32 {dimension_numbers = #tpu.dot_dimension_numbers<[1], [0], [0], [1], [0, 0, 1, 1], [], []>} : vector<8x128xbf16>, vector<128x512xbf16>, vector<8x512xf32> -> vector<8x512xf32>
    %93 = arith.addf %90, %92 : vector<8x512xf32>
    %94 = vector.broadcast %12 : vector<1x512xf32> to vector<8x512xf32>
    %95 = arith.mulf %93, %94 : vector<8x512xf32>
    %96 = math.tanh %95 : vector<8x512xf32>
    %97 = vector.extract_strided_slice %96 {offsets = [0, 0], sizes = [8, 128], strides = [1, 1]} : vector<8x512xf32> to vector<8x128xf32>
    %98 = vector.extract_strided_slice %96 {offsets = [0, 128], sizes = [8, 128], strides = [1, 1]} : vector<8x512xf32> to vector<8x128xf32>
    %99 = vector.extract_strided_slice %96 {offsets = [0, 256], sizes = [8, 128], strides = [1, 1]} : vector<8x512xf32> to vector<8x128xf32>
    %100 = vector.extract_strided_slice %96 {offsets = [0, 384], sizes = [8, 128], strides = [1, 1]} : vector<8x512xf32> to vector<8x128xf32>
    %cst_33 = arith.constant 1.000000e+00 : f32
    %101 = vector.broadcast %cst_33 : f32 to vector<8x128xf32>
    %102 = arith.addf %97, %101 : vector<8x128xf32>
    %cst_34 = arith.constant 5.000000e-01 : f32
    %103 = vector.broadcast %cst_34 : f32 to vector<8x128xf32>
    %104 = arith.mulf %103, %102 : vector<8x128xf32>
    %105 = arith.mulf %104, %99 : vector<8x128xf32>
    %cst_35 = arith.constant 1.000000e+00 : f32
    %106 = vector.broadcast %cst_35 : f32 to vector<8x128xf32>
    %107 = arith.addf %98, %106 : vector<8x128xf32>
    %cst_36 = arith.constant 5.000000e-01 : f32
    %108 = vector.broadcast %cst_36 : f32 to vector<8x128xf32>
    %109 = arith.mulf %108, %107 : vector<8x128xf32>
    %110 = arith.mulf %109, %75 : vector<8x128xf32>
    %111 = arith.addf %105, %110 : vector<8x128xf32>
    %cst_37 = arith.constant 1.000000e+00 : f32
    %112 = vector.broadcast %cst_37 : f32 to vector<8x128xf32>
    %113 = arith.addf %100, %112 : vector<8x128xf32>
    %cst_38 = arith.constant 5.000000e-01 : f32
    %114 = vector.broadcast %cst_38 : f32 to vector<8x128xf32>
    %115 = arith.mulf %114, %113 : vector<8x128xf32>
    %116 = math.tanh %111 : vector<8x128xf32>
    %117 = arith.mulf %115, %116 : vector<8x128xf32>
    %118 = arith.truncf %117 : vector<8x128xf32> to vector<8x128xbf16>
    %119 = arith.index_cast %c2_i32 : i32 to index
    %c0_39 = arith.constant 0 : index
    %c0_40 = arith.constant 0 : index
    %120 = vector.load %arg4[%119, %c0_39, %c0_40] : memref<8x8x128xbf16, #tpu.memory_space<vmem>>, vector<1x8x128xbf16>
    %121 = vector.shape_cast %120 : vector<1x8x128xbf16> to vector<8x128xbf16>
    %122 = vector.shape_cast %118 : vector<8x128xbf16> to vector<1x8x128xbf16>
    tpu.vector_store %arg4[%119, %c0_39, %c0_40], %122 {strides = array<i32>} : memref<8x8x128xbf16, #tpu.memory_space<vmem>>, vector<1x8x128xbf16>,
    %c3_i32 = arith.constant 3 : i32
    %123 = arith.index_cast %c3_i32 : i32 to index
    %c0_41 = arith.constant 0 : index
    %c0_42 = arith.constant 0 : index
    %124 = vector.load %arg2[%123, %c0_41, %c0_42] : memref<8x8x512xbf16, #tpu.memory_space<vmem>>, vector<1x8x512xbf16>
    %125 = vector.shape_cast %124 : vector<1x8x512xbf16> to vector<8x512xbf16>
    %126 = arith.extf %125 : vector<8x512xbf16> to vector<8x512xf32>
    %127 = arith.truncf %117 : vector<8x128xf32> to vector<8x128xbf16>
    %cst_43 = arith.constant dense<0.000000e+00> : vector<8x512xf32>
    %128 = tpu.matmul %127, %3, %cst_43 {dimension_numbers = #tpu.dot_dimension_numbers<[1], [0], [0], [1], [0, 0, 1, 1], [], []>} : vector<8x128xbf16>, vector<128x512xbf16>, vector<8x512xf32> -> vector<8x512xf32>
    %129 = arith.addf %126, %128 : vector<8x512xf32>
    %130 = vector.broadcast %12 : vector<1x512xf32> to vector<8x512xf32>
    %131 = arith.mulf %129, %130 : vector<8x512xf32>
    %132 = math.tanh %131 : vector<8x512xf32>
    %133 = vector.extract_strided_slice %132 {offsets = [0, 0], sizes = [8, 128], strides = [1, 1]} : vector<8x512xf32> to vector<8x128xf32>
    %134 = vector.extract_strided_slice %132 {offsets = [0, 128], sizes = [8, 128], strides = [1, 1]} : vector<8x512xf32> to vector<8x128xf32>
    %135 = vector.extract_strided_slice %132 {offsets = [0, 256], sizes = [8, 128], strides = [1, 1]} : vector<8x512xf32> to vector<8x128xf32>
    %136 = vector.extract_strided_slice %132 {offsets = [0, 384], sizes = [8, 128], strides = [1, 1]} : vector<8x512xf32> to vector<8x128xf32>
    %cst_44 = arith.constant 1.000000e+00 : f32
    %137 = vector.broadcast %cst_44 : f32 to vector<8x128xf32>
    %138 = arith.addf %133, %137 : vector<8x128xf32>
    %cst_45 = arith.constant 5.000000e-01 : f32
    %139 = vector.broadcast %cst_45 : f32 to vector<8x128xf32>
    %140 = arith.mulf %139, %138 : vector<8x128xf32>
    %141 = arith.mulf %140, %135 : vector<8x128xf32>
    %cst_46 = arith.constant 1.000000e+00 : f32
    %142 = vector.broadcast %cst_46 : f32 to vector<8x128xf32>
    %143 = arith.addf %134, %142 : vector<8x128xf32>
    %cst_47 = arith.constant 5.000000e-01 : f32
    %144 = vector.broadcast %cst_47 : f32 to vector<8x128xf32>
    %145 = arith.mulf %144, %143 : vector<8x128xf32>
    %146 = arith.mulf %145, %111 : vector<8x128xf32>
    %147 = arith.addf %141, %146 : vector<8x128xf32>
    %cst_48 = arith.constant 1.000000e+00 : f32
    %148 = vector.broadcast %cst_48 : f32 to vector<8x128xf32>
    %149 = arith.addf %136, %148 : vector<8x128xf32>
    %cst_49 = arith.constant 5.000000e-01 : f32
    %150 = vector.broadcast %cst_49 : f32 to vector<8x128xf32>
    %151 = arith.mulf %150, %149 : vector<8x128xf32>
    %152 = math.tanh %147 : vector<8x128xf32>
    %153 = arith.mulf %151, %152 : vector<8x128xf32>
    %154 = arith.truncf %153 : vector<8x128xf32> to vector<8x128xbf16>
    %155 = arith.index_cast %c3_i32 : i32 to index
    %c0_50 = arith.constant 0 : index
    %c0_51 = arith.constant 0 : index
    %156 = vector.load %arg4[%155, %c0_50, %c0_51] : memref<8x8x128xbf16, #tpu.memory_space<vmem>>, vector<1x8x128xbf16>
    %157 = vector.shape_cast %156 : vector<1x8x128xbf16> to vector<8x128xbf16>
    %158 = vector.shape_cast %154 : vector<8x128xbf16> to vector<1x8x128xbf16>
    tpu.vector_store %arg4[%155, %c0_50, %c0_51], %158 {strides = array<i32>} : memref<8x8x128xbf16, #tpu.memory_space<vmem>>, vector<1x8x128xbf16>,
    %c4_i32 = arith.constant 4 : i32
    %159 = arith.index_cast %c4_i32 : i32 to index
    %c0_52 = arith.constant 0 : index
    %c0_53 = arith.constant 0 : index
    %160 = vector.load %arg2[%159, %c0_52, %c0_53] : memref<8x8x512xbf16, #tpu.memory_space<vmem>>, vector<1x8x512xbf16>
    %161 = vector.shape_cast %160 : vector<1x8x512xbf16> to vector<8x512xbf16>
    %162 = arith.extf %161 : vector<8x512xbf16> to vector<8x512xf32>
    %163 = arith.truncf %153 : vector<8x128xf32> to vector<8x128xbf16>
    %cst_54 = arith.constant dense<0.000000e+00> : vector<8x512xf32>
    %164 = tpu.matmul %163, %3, %cst_54 {dimension_numbers = #tpu.dot_dimension_numbers<[1], [0], [0], [1], [0, 0, 1, 1], [], []>} : vector<8x128xbf16>, vector<128x512xbf16>, vector<8x512xf32> -> vector<8x512xf32>
    %165 = arith.addf %162, %164 : vector<8x512xf32>
    %166 = vector.broadcast %12 : vector<1x512xf32> to vector<8x512xf32>
    %167 = arith.mulf %165, %166 : vector<8x512xf32>
    %168 = math.tanh %167 : vector<8x512xf32>
    %169 = vector.extract_strided_slice %168 {offsets = [0, 0], sizes = [8, 128], strides = [1, 1]} : vector<8x512xf32> to vector<8x128xf32>
    %170 = vector.extract_strided_slice %168 {offsets = [0, 128], sizes = [8, 128], strides = [1, 1]} : vector<8x512xf32> to vector<8x128xf32>
    %171 = vector.extract_strided_slice %168 {offsets = [0, 256], sizes = [8, 128], strides = [1, 1]} : vector<8x512xf32> to vector<8x128xf32>
    %172 = vector.extract_strided_slice %168 {offsets = [0, 384], sizes = [8, 128], strides = [1, 1]} : vector<8x512xf32> to vector<8x128xf32>
    %cst_55 = arith.constant 1.000000e+00 : f32
    %173 = vector.broadcast %cst_55 : f32 to vector<8x128xf32>
    %174 = arith.addf %169, %173 : vector<8x128xf32>
    %cst_56 = arith.constant 5.000000e-01 : f32
    %175 = vector.broadcast %cst_56 : f32 to vector<8x128xf32>
    %176 = arith.mulf %175, %174 : vector<8x128xf32>
    %177 = arith.mulf %176, %171 : vector<8x128xf32>
    %cst_57 = arith.constant 1.000000e+00 : f32
    %178 = vector.broadcast %cst_57 : f32 to vector<8x128xf32>
    %179 = arith.addf %170, %178 : vector<8x128xf32>
    %cst_58 = arith.constant 5.000000e-01 : f32
    %180 = vector.broadcast %cst_58 : f32 to vector<8x128xf32>
    %181 = arith.mulf %180, %179 : vector<8x128xf32>
    %182 = arith.mulf %181, %147 : vector<8x128xf32>
    %183 = arith.addf %177, %182 : vector<8x128xf32>
    %cst_59 = arith.constant 1.000000e+00 : f32
    %184 = vector.broadcast %cst_59 : f32 to vector<8x128xf32>
    %185 = arith.addf %172, %184 : vector<8x128xf32>
    %cst_60 = arith.constant 5.000000e-01 : f32
    %186 = vector.broadcast %cst_60 : f32 to vector<8x128xf32>
    %187 = arith.mulf %186, %185 : vector<8x128xf32>
    %188 = math.tanh %183 : vector<8x128xf32>
    %189 = arith.mulf %187, %188 : vector<8x128xf32>
    %190 = arith.truncf %189 : vector<8x128xf32> to vector<8x128xbf16>
    %191 = arith.index_cast %c4_i32 : i32 to index
    %c0_61 = arith.constant 0 : index
    %c0_62 = arith.constant 0 : index
    %192 = vector.load %arg4[%191, %c0_61, %c0_62] : memref<8x8x128xbf16, #tpu.memory_space<vmem>>, vector<1x8x128xbf16>
    %193 = vector.shape_cast %192 : vector<1x8x128xbf16> to vector<8x128xbf16>
    %194 = vector.shape_cast %190 : vector<8x128xbf16> to vector<1x8x128xbf16>
    tpu.vector_store %arg4[%191, %c0_61, %c0_62], %194 {strides = array<i32>} : memref<8x8x128xbf16, #tpu.memory_space<vmem>>, vector<1x8x128xbf16>,
    %c5_i32 = arith.constant 5 : i32
    %195 = arith.index_cast %c5_i32 : i32 to index
    %c0_63 = arith.constant 0 : index
    %c0_64 = arith.constant 0 : index
    %196 = vector.load %arg2[%195, %c0_63, %c0_64] : memref<8x8x512xbf16, #tpu.memory_space<vmem>>, vector<1x8x512xbf16>
    %197 = vector.shape_cast %196 : vector<1x8x512xbf16> to vector<8x512xbf16>
    %198 = arith.extf %197 : vector<8x512xbf16> to vector<8x512xf32>
    %199 = arith.truncf %189 : vector<8x128xf32> to vector<8x128xbf16>
    %cst_65 = arith.constant dense<0.000000e+00> : vector<8x512xf32>
    %200 = tpu.matmul %199, %3, %cst_65 {dimension_numbers = #tpu.dot_dimension_numbers<[1], [0], [0], [1], [0, 0, 1, 1], [], []>} : vector<8x128xbf16>, vector<128x512xbf16>, vector<8x512xf32> -> vector<8x512xf32>
    %201 = arith.addf %198, %200 : vector<8x512xf32>
    %202 = vector.broadcast %12 : vector<1x512xf32> to vector<8x512xf32>
    %203 = arith.mulf %201, %202 : vector<8x512xf32>
    %204 = math.tanh %203 : vector<8x512xf32>
    %205 = vector.extract_strided_slice %204 {offsets = [0, 0], sizes = [8, 128], strides = [1, 1]} : vector<8x512xf32> to vector<8x128xf32>
    %206 = vector.extract_strided_slice %204 {offsets = [0, 128], sizes = [8, 128], strides = [1, 1]} : vector<8x512xf32> to vector<8x128xf32>
    %207 = vector.extract_strided_slice %204 {offsets = [0, 256], sizes = [8, 128], strides = [1, 1]} : vector<8x512xf32> to vector<8x128xf32>
    %208 = vector.extract_strided_slice %204 {offsets = [0, 384], sizes = [8, 128], strides = [1, 1]} : vector<8x512xf32> to vector<8x128xf32>
    %cst_66 = arith.constant 1.000000e+00 : f32
    %209 = vector.broadcast %cst_66 : f32 to vector<8x128xf32>
    %210 = arith.addf %205, %209 : vector<8x128xf32>
    %cst_67 = arith.constant 5.000000e-01 : f32
    %211 = vector.broadcast %cst_67 : f32 to vector<8x128xf32>
    %212 = arith.mulf %211, %210 : vector<8x128xf32>
    %213 = arith.mulf %212, %207 : vector<8x128xf32>
    %cst_68 = arith.constant 1.000000e+00 : f32
    %214 = vector.broadcast %cst_68 : f32 to vector<8x128xf32>
    %215 = arith.addf %206, %214 : vector<8x128xf32>
    %cst_69 = arith.constant 5.000000e-01 : f32
    %216 = vector.broadcast %cst_69 : f32 to vector<8x128xf32>
    %217 = arith.mulf %216, %215 : vector<8x128xf32>
    %218 = arith.mulf %217, %183 : vector<8x128xf32>
    %219 = arith.addf %213, %218 : vector<8x128xf32>
    %cst_70 = arith.constant 1.000000e+00 : f32
    %220 = vector.broadcast %cst_70 : f32 to vector<8x128xf32>
    %221 = arith.addf %208, %220 : vector<8x128xf32>
    %cst_71 = arith.constant 5.000000e-01 : f32
    %222 = vector.broadcast %cst_71 : f32 to vector<8x128xf32>
    %223 = arith.mulf %222, %221 : vector<8x128xf32>
    %224 = math.tanh %219 : vector<8x128xf32>
    %225 = arith.mulf %223, %224 : vector<8x128xf32>
    %226 = arith.truncf %225 : vector<8x128xf32> to vector<8x128xbf16>
    %227 = arith.index_cast %c5_i32 : i32 to index
    %c0_72 = arith.constant 0 : index
    %c0_73 = arith.constant 0 : index
    %228 = vector.load %arg4[%227, %c0_72, %c0_73] : memref<8x8x128xbf16, #tpu.memory_space<vmem>>, vector<1x8x128xbf16>
    %229 = vector.shape_cast %228 : vector<1x8x128xbf16> to vector<8x128xbf16>
    %230 = vector.shape_cast %226 : vector<8x128xbf16> to vector<1x8x128xbf16>
    tpu.vector_store %arg4[%227, %c0_72, %c0_73], %230 {strides = array<i32>} : memref<8x8x128xbf16, #tpu.memory_space<vmem>>, vector<1x8x128xbf16>,
    %c6_i32 = arith.constant 6 : i32
    %231 = arith.index_cast %c6_i32 : i32 to index
    %c0_74 = arith.constant 0 : index
    %c0_75 = arith.constant 0 : index
    %232 = vector.load %arg2[%231, %c0_74, %c0_75] : memref<8x8x512xbf16, #tpu.memory_space<vmem>>, vector<1x8x512xbf16>
    %233 = vector.shape_cast %232 : vector<1x8x512xbf16> to vector<8x512xbf16>
    %234 = arith.extf %233 : vector<8x512xbf16> to vector<8x512xf32>
    %235 = arith.truncf %225 : vector<8x128xf32> to vector<8x128xbf16>
    %cst_76 = arith.constant dense<0.000000e+00> : vector<8x512xf32>
    %236 = tpu.matmul %235, %3, %cst_76 {dimension_numbers = #tpu.dot_dimension_numbers<[1], [0], [0], [1], [0, 0, 1, 1], [], []>} : vector<8x128xbf16>, vector<128x512xbf16>, vector<8x512xf32> -> vector<8x512xf32>
    %237 = arith.addf %234, %236 : vector<8x512xf32>
    %238 = vector.broadcast %12 : vector<1x512xf32> to vector<8x512xf32>
    %239 = arith.mulf %237, %238 : vector<8x512xf32>
    %240 = math.tanh %239 : vector<8x512xf32>
    %241 = vector.extract_strided_slice %240 {offsets = [0, 0], sizes = [8, 128], strides = [1, 1]} : vector<8x512xf32> to vector<8x128xf32>
    %242 = vector.extract_strided_slice %240 {offsets = [0, 128], sizes = [8, 128], strides = [1, 1]} : vector<8x512xf32> to vector<8x128xf32>
    %243 = vector.extract_strided_slice %240 {offsets = [0, 256], sizes = [8, 128], strides = [1, 1]} : vector<8x512xf32> to vector<8x128xf32>
    %244 = vector.extract_strided_slice %240 {offsets = [0, 384], sizes = [8, 128], strides = [1, 1]} : vector<8x512xf32> to vector<8x128xf32>
    %cst_77 = arith.constant 1.000000e+00 : f32
    %245 = vector.broadcast %cst_77 : f32 to vector<8x128xf32>
    %246 = arith.addf %241, %245 : vector<8x128xf32>
    %cst_78 = arith.constant 5.000000e-01 : f32
    %247 = vector.broadcast %cst_78 : f32 to vector<8x128xf32>
    %248 = arith.mulf %247, %246 : vector<8x128xf32>
    %249 = arith.mulf %248, %243 : vector<8x128xf32>
    %cst_79 = arith.constant 1.000000e+00 : f32
    %250 = vector.broadcast %cst_79 : f32 to vector<8x128xf32>
    %251 = arith.addf %242, %250 : vector<8x128xf32>
    %cst_80 = arith.constant 5.000000e-01 : f32
    %252 = vector.broadcast %cst_80 : f32 to vector<8x128xf32>
    %253 = arith.mulf %252, %251 : vector<8x128xf32>
    %254 = arith.mulf %253, %219 : vector<8x128xf32>
    %255 = arith.addf %249, %254 : vector<8x128xf32>
    %cst_81 = arith.constant 1.000000e+00 : f32
    %256 = vector.broadcast %cst_81 : f32 to vector<8x128xf32>
    %257 = arith.addf %244, %256 : vector<8x128xf32>
    %cst_82 = arith.constant 5.000000e-01 : f32
    %258 = vector.broadcast %cst_82 : f32 to vector<8x128xf32>
    %259 = arith.mulf %258, %257 : vector<8x128xf32>
    %260 = math.tanh %255 : vector<8x128xf32>
    %261 = arith.mulf %259, %260 : vector<8x128xf32>
    %262 = arith.truncf %261 : vector<8x128xf32> to vector<8x128xbf16>
    %263 = arith.index_cast %c6_i32 : i32 to index
    %c0_83 = arith.constant 0 : index
    %c0_84 = arith.constant 0 : index
    %264 = vector.load %arg4[%263, %c0_83, %c0_84] : memref<8x8x128xbf16, #tpu.memory_space<vmem>>, vector<1x8x128xbf16>
    %265 = vector.shape_cast %264 : vector<1x8x128xbf16> to vector<8x128xbf16>
    %266 = vector.shape_cast %262 : vector<8x128xbf16> to vector<1x8x128xbf16>
    tpu.vector_store %arg4[%263, %c0_83, %c0_84], %266 {strides = array<i32>} : memref<8x8x128xbf16, #tpu.memory_space<vmem>>, vector<1x8x128xbf16>,
    %c7_i32 = arith.constant 7 : i32
    %267 = arith.index_cast %c7_i32 : i32 to index
    %c0_85 = arith.constant 0 : index
    %c0_86 = arith.constant 0 : index
    %268 = vector.load %arg2[%267, %c0_85, %c0_86] : memref<8x8x512xbf16, #tpu.memory_space<vmem>>, vector<1x8x512xbf16>
    %269 = vector.shape_cast %268 : vector<1x8x512xbf16> to vector<8x512xbf16>
    %270 = arith.extf %269 : vector<8x512xbf16> to vector<8x512xf32>
    %271 = arith.truncf %261 : vector<8x128xf32> to vector<8x128xbf16>
    %cst_87 = arith.constant dense<0.000000e+00> : vector<8x512xf32>
    %272 = tpu.matmul %271, %3, %cst_87 {dimension_numbers = #tpu.dot_dimension_numbers<[1], [0], [0], [1], [0, 0, 1, 1], [], []>} : vector<8x128xbf16>, vector<128x512xbf16>, vector<8x512xf32> -> vector<8x512xf32>
    %273 = arith.addf %270, %272 : vector<8x512xf32>
    %274 = vector.broadcast %12 : vector<1x512xf32> to vector<8x512xf32>
    %275 = arith.mulf %273, %274 : vector<8x512xf32>
    %276 = math.tanh %275 : vector<8x512xf32>
    %277 = vector.extract_strided_slice %276 {offsets = [0, 0], sizes = [8, 128], strides = [1, 1]} : vector<8x512xf32> to vector<8x128xf32>
    %278 = vector.extract_strided_slice %276 {offsets = [0, 128], sizes = [8, 128], strides = [1, 1]} : vector<8x512xf32> to vector<8x128xf32>
    %279 = vector.extract_strided_slice %276 {offsets = [0, 256], sizes = [8, 128], strides = [1, 1]} : vector<8x512xf32> to vector<8x128xf32>
    %280 = vector.extract_strided_slice %276 {offsets = [0, 384], sizes = [8, 128], strides = [1, 1]} : vector<8x512xf32> to vector<8x128xf32>
    %cst_88 = arith.constant 1.000000e+00 : f32
    %281 = vector.broadcast %cst_88 : f32 to vector<8x128xf32>
    %282 = arith.addf %277, %281 : vector<8x128xf32>
    %cst_89 = arith.constant 5.000000e-01 : f32
    %283 = vector.broadcast %cst_89 : f32 to vector<8x128xf32>
    %284 = arith.mulf %283, %282 : vector<8x128xf32>
    %285 = arith.mulf %284, %279 : vector<8x128xf32>
    %cst_90 = arith.constant 1.000000e+00 : f32
    %286 = vector.broadcast %cst_90 : f32 to vector<8x128xf32>
    %287 = arith.addf %278, %286 : vector<8x128xf32>
    %cst_91 = arith.constant 5.000000e-01 : f32
    %288 = vector.broadcast %cst_91 : f32 to vector<8x128xf32>
    %289 = arith.mulf %288, %287 : vector<8x128xf32>
    %290 = arith.mulf %289, %255 : vector<8x128xf32>
    %291 = arith.addf %285, %290 : vector<8x128xf32>
    %cst_92 = arith.constant 1.000000e+00 : f32
    %292 = vector.broadcast %cst_92 : f32 to vector<8x128xf32>
    %293 = arith.addf %280, %292 : vector<8x128xf32>
    %cst_93 = arith.constant 5.000000e-01 : f32
    %294 = vector.broadcast %cst_93 : f32 to vector<8x128xf32>
    %295 = arith.mulf %294, %293 : vector<8x128xf32>
    %296 = math.tanh %291 : vector<8x128xf32>
    %297 = arith.mulf %295, %296 : vector<8x128xf32>
    %298 = arith.truncf %297 : vector<8x128xf32> to vector<8x128xbf16>
    %299 = arith.index_cast %c7_i32 : i32 to index
    %c0_94 = arith.constant 0 : index
    %c0_95 = arith.constant 0 : index
    %300 = vector.load %arg4[%299, %c0_94, %c0_95] : memref<8x8x128xbf16, #tpu.memory_space<vmem>>, vector<1x8x128xbf16>
    %301 = vector.shape_cast %300 : vector<1x8x128xbf16> to vector<8x128xbf16>
    %302 = vector.shape_cast %298 : vector<8x128xbf16> to vector<1x8x128xbf16>
    tpu.vector_store %arg4[%299, %c0_94, %c0_95], %302 {strides = array<i32>} : memref<8x8x128xbf16, #tpu.memory_space<vmem>>, vector<1x8x128xbf16>,
    %c8_i32 = arith.constant 8 : i32
    %c0_96 = arith.constant 0 : index
    %c0_97 = arith.constant 0 : index
    %303 = vector.load %arg6[%c0_96, %c0_97] : memref<8x128xf32, #tpu.memory_space<vmem>>, vector<8x128xf32>
    tpu.vector_store %arg6[%c0_96, %c0_97], %297 {strides = array<i32>} : memref<8x128xf32, #tpu.memory_space<vmem>>, vector<8x128xf32>,
    %c0_98 = arith.constant 0 : index
    %c0_99 = arith.constant 0 : index
    %304 = vector.load %arg7[%c0_98, %c0_99] : memref<8x128xf32, #tpu.memory_space<vmem>>, vector<8x128xf32>
    tpu.vector_store %arg7[%c0_98, %c0_99], %291 {strides = array<i32>} : memref<8x128xf32, #tpu.memory_space<vmem>>, vector<8x128xf32>,
    %c0_i32_100 = arith.constant 0 : i32
    %305 = arith.cmpi eq, %arg1, %c0_i32_100 : i32
    %306 = arith.extui %305 : i1 to i32
    %c0_i32_101 = arith.constant 0 : i32
    %307 = arith.cmpi ne, %306, %c0_i32_101 : i32
    scf.if %307 {
      %c0_102 = arith.constant 0 : index
      %c0_103 = arith.constant 0 : index
      %308 = vector.load %arg5[%c0_102, %c0_103] : memref<8x128xf32, #tpu.memory_space<vmem>>, vector<8x128xf32>
      tpu.vector_store %arg5[%c0_102, %c0_103], %291 {strides = array<i32>} : memref<8x128xf32, #tpu.memory_space<vmem>>, vector<8x128xf32>,
    } else {
    }
    return
  }
  func.func @transform_0(%arg0: i32, %arg1: i32) -> (i32, i32, i32) {
    %c0_i32 = arith.constant 0 : i32
    %c0_i32_0 = arith.constant 0 : i32
    return %arg1, %arg0, %c0_i32 : i32, i32, i32
  }
  func.func @transform_1(%arg0: i32, %arg1: i32) -> (i32, i32) {
    %c0_i32 = arith.constant 0 : i32
    %c0_i32_0 = arith.constant 0 : i32
    %c0_i32_1 = arith.constant 0 : i32
    return %c0_i32, %c0_i32_0 : i32, i32
  }
  func.func @transform_2(%arg0: i32, %arg1: i32) -> (i32, i32, i32) {
    %c0_i32 = arith.constant 0 : i32
    %c0_i32_0 = arith.constant 0 : i32
    return %arg1, %arg0, %c0_i32 : i32, i32, i32
  }
  func.func @transform_3(%arg0: i32, %arg1: i32) -> (i32, i32) {
    %c0_i32 = arith.constant 0 : i32
    %c0_i32_0 = arith.constant 0 : i32
    return %arg0, %c0_i32 : i32, i32
  }
}

module attributes {stable_mosaic.version = 11 : i64} {
  func.func @_lstm_recurrent_kernel(%arg0: i32, %arg1: i32, %arg2: memref<8x8x512xbf16, #tpu.memory_space<vmem>>, %arg3: memref<128x512xbf16, #tpu.memory_space<vmem>>, %arg4: memref<8x8x128xf32, #tpu.memory_space<vmem>>, %arg5: memref<8x128xf32, #tpu.memory_space<vmem>>, %arg6: memref<8x128xf32, #tpu.memory_space<vmem>>, %arg7: memref<8x128xf32, #tpu.memory_space<vmem>>) attributes {dimension_semantics = [#tpu.dimension_semantics<parallel>, #tpu.dimension_semantics<arbitrary>], iteration_bounds = array<i64: 1, 1>, scalar_prefetch = 0 : i64, scratch_operands = 2 : i64, tpu.core_type = #tpu.core_type<tc>, window_params = [{transform_indices = @transform_0, window_bounds = array<i64: 8, 8, 512>}, {pipeline_mode = #tpu.pipeline_mode<synchronous>, transform_indices = @transform_1, window_bounds = array<i64: 128, 512>}, {transform_indices = @transform_2, window_bounds = array<i64: 8, 8, 128>}, {transform_indices = @transform_3, window_bounds = array<i64: 8, 128>}]} {
    %c0_i32 = arith.constant 0 : i32
    %0 = arith.cmpi eq, %arg1, %c0_i32 : i32
    %1 = arith.extui %0 : i1 to i32
    %c0_i32_0 = arith.constant 0 : i32
    %2 = arith.cmpi ne, %1, %c0_i32_0 : i32
    scf.if %2 {
      %cst_102 = arith.constant 0.000000e+00 : f32
      %300 = vector.broadcast %cst_102 : f32 to vector<8x128xf32>
      %c0_103 = arith.constant 0 : index
      %c0_104 = arith.constant 0 : index
      %301 = vector.load %arg6[%c0_103, %c0_104] : memref<8x128xf32, #tpu.memory_space<vmem>>, vector<8x128xf32>
      tpu.vector_store %arg6[%c0_103, %c0_104], %300 {strides = array<i32>} : memref<8x128xf32, #tpu.memory_space<vmem>>, vector<8x128xf32>,
      %cst_105 = arith.constant 0.000000e+00 : f32
      %302 = vector.broadcast %cst_105 : f32 to vector<8x128xf32>
      %c0_106 = arith.constant 0 : index
      %c0_107 = arith.constant 0 : index
      %303 = vector.load %arg7[%c0_106, %c0_107] : memref<8x128xf32, #tpu.memory_space<vmem>>, vector<8x128xf32>
      tpu.vector_store %arg7[%c0_106, %c0_107], %302 {strides = array<i32>} : memref<8x128xf32, #tpu.memory_space<vmem>>, vector<8x128xf32>,
    } else {
    }
    %c0 = arith.constant 0 : index
    %c0_1 = arith.constant 0 : index
    %3 = vector.load %arg3[%c0, %c0_1] : memref<128x512xbf16, #tpu.memory_space<vmem>>, vector<128x512xbf16>
    %4 = tpu.iota {dimensions = array<i32: 1>} : vector<1x512xi32>
    %c256_i32 = arith.constant 256 : i32
    %5 = vector.broadcast %c256_i32 : i32 to vector<1x512xi32>
    %6 = arith.cmpi sge, %4, %5 : vector<1x512xi32>
    %c384_i32 = arith.constant 384 : i32
    %7 = vector.broadcast %c384_i32 : i32 to vector<1x512xi32>
    %8 = arith.cmpi slt, %4, %7 : vector<1x512xi32>
    %9 = arith.andi %6, %8 : vector<1x512xi1>
    %cst = arith.constant 1.000000e+00 : f32
    %cst_2 = arith.constant 5.000000e-01 : f32
    %10 = vector.broadcast %cst : f32 to vector<1x512xf32>
    %11 = vector.broadcast %cst_2 : f32 to vector<1x512xf32>
    %12 = arith.select %9, %10, %11 : vector<1x512xi1>, vector<1x512xf32>
    %c0_3 = arith.constant 0 : index
    %c0_4 = arith.constant 0 : index
    %13 = vector.load %arg6[%c0_3, %c0_4] : memref<8x128xf32, #tpu.memory_space<vmem>>, vector<8x128xf32>
    %c0_5 = arith.constant 0 : index
    %c0_6 = arith.constant 0 : index
    %14 = vector.load %arg7[%c0_5, %c0_6] : memref<8x128xf32, #tpu.memory_space<vmem>>, vector<8x128xf32>
    %c0_i32_7 = arith.constant 0 : i32
    %15 = arith.index_cast %c0_i32_7 : i32 to index
    %c0_8 = arith.constant 0 : index
    %c0_9 = arith.constant 0 : index
    %16 = vector.load %arg2[%15, %c0_8, %c0_9] : memref<8x8x512xbf16, #tpu.memory_space<vmem>>, vector<1x8x512xbf16>
    %17 = vector.shape_cast %16 : vector<1x8x512xbf16> to vector<8x512xbf16>
    %18 = arith.extf %17 : vector<8x512xbf16> to vector<8x512xf32>
    %19 = arith.truncf %13 : vector<8x128xf32> to vector<8x128xbf16>
    %cst_10 = arith.constant dense<0.000000e+00> : vector<8x512xf32>
    %20 = tpu.matmul %19, %3, %cst_10 {dimension_numbers = #tpu.dot_dimension_numbers<[1], [0], [0], [1], [0, 0, 1, 1], [], []>} : vector<8x128xbf16>, vector<128x512xbf16>, vector<8x512xf32> -> vector<8x512xf32>
    %21 = arith.addf %18, %20 : vector<8x512xf32>
    %22 = vector.broadcast %12 : vector<1x512xf32> to vector<8x512xf32>
    %23 = arith.mulf %21, %22 : vector<8x512xf32>
    %24 = math.tanh %23 : vector<8x512xf32>
    %25 = vector.extract_strided_slice %24 {offsets = [0, 0], sizes = [8, 128], strides = [1, 1]} : vector<8x512xf32> to vector<8x128xf32>
    %26 = vector.extract_strided_slice %24 {offsets = [0, 128], sizes = [8, 128], strides = [1, 1]} : vector<8x512xf32> to vector<8x128xf32>
    %27 = vector.extract_strided_slice %24 {offsets = [0, 256], sizes = [8, 128], strides = [1, 1]} : vector<8x512xf32> to vector<8x128xf32>
    %28 = vector.extract_strided_slice %24 {offsets = [0, 384], sizes = [8, 128], strides = [1, 1]} : vector<8x512xf32> to vector<8x128xf32>
    %cst_11 = arith.constant 1.000000e+00 : f32
    %29 = vector.broadcast %cst_11 : f32 to vector<8x128xf32>
    %30 = arith.addf %25, %29 : vector<8x128xf32>
    %cst_12 = arith.constant 5.000000e-01 : f32
    %31 = vector.broadcast %cst_12 : f32 to vector<8x128xf32>
    %32 = arith.mulf %31, %30 : vector<8x128xf32>
    %33 = arith.mulf %32, %27 : vector<8x128xf32>
    %cst_13 = arith.constant 1.000000e+00 : f32
    %34 = vector.broadcast %cst_13 : f32 to vector<8x128xf32>
    %35 = arith.addf %26, %34 : vector<8x128xf32>
    %cst_14 = arith.constant 5.000000e-01 : f32
    %36 = vector.broadcast %cst_14 : f32 to vector<8x128xf32>
    %37 = arith.mulf %36, %35 : vector<8x128xf32>
    %38 = arith.mulf %37, %14 : vector<8x128xf32>
    %39 = arith.addf %33, %38 : vector<8x128xf32>
    %cst_15 = arith.constant 1.000000e+00 : f32
    %40 = vector.broadcast %cst_15 : f32 to vector<8x128xf32>
    %41 = arith.addf %28, %40 : vector<8x128xf32>
    %cst_16 = arith.constant 5.000000e-01 : f32
    %42 = vector.broadcast %cst_16 : f32 to vector<8x128xf32>
    %43 = arith.mulf %42, %41 : vector<8x128xf32>
    %44 = math.tanh %39 : vector<8x128xf32>
    %45 = arith.mulf %43, %44 : vector<8x128xf32>
    %46 = arith.index_cast %c0_i32_7 : i32 to index
    %c0_17 = arith.constant 0 : index
    %c0_18 = arith.constant 0 : index
    %47 = vector.load %arg4[%46, %c0_17, %c0_18] : memref<8x8x128xf32, #tpu.memory_space<vmem>>, vector<1x8x128xf32>
    %48 = vector.shape_cast %47 : vector<1x8x128xf32> to vector<8x128xf32>
    %49 = vector.shape_cast %45 : vector<8x128xf32> to vector<1x8x128xf32>
    tpu.vector_store %arg4[%46, %c0_17, %c0_18], %49 {strides = array<i32>} : memref<8x8x128xf32, #tpu.memory_space<vmem>>, vector<1x8x128xf32>,
    %c1_i32 = arith.constant 1 : i32
    %50 = arith.index_cast %c1_i32 : i32 to index
    %c0_19 = arith.constant 0 : index
    %c0_20 = arith.constant 0 : index
    %51 = vector.load %arg2[%50, %c0_19, %c0_20] : memref<8x8x512xbf16, #tpu.memory_space<vmem>>, vector<1x8x512xbf16>
    %52 = vector.shape_cast %51 : vector<1x8x512xbf16> to vector<8x512xbf16>
    %53 = arith.extf %52 : vector<8x512xbf16> to vector<8x512xf32>
    %54 = arith.truncf %45 : vector<8x128xf32> to vector<8x128xbf16>
    %cst_21 = arith.constant dense<0.000000e+00> : vector<8x512xf32>
    %55 = tpu.matmul %54, %3, %cst_21 {dimension_numbers = #tpu.dot_dimension_numbers<[1], [0], [0], [1], [0, 0, 1, 1], [], []>} : vector<8x128xbf16>, vector<128x512xbf16>, vector<8x512xf32> -> vector<8x512xf32>
    %56 = arith.addf %53, %55 : vector<8x512xf32>
    %57 = vector.broadcast %12 : vector<1x512xf32> to vector<8x512xf32>
    %58 = arith.mulf %56, %57 : vector<8x512xf32>
    %59 = math.tanh %58 : vector<8x512xf32>
    %60 = vector.extract_strided_slice %59 {offsets = [0, 0], sizes = [8, 128], strides = [1, 1]} : vector<8x512xf32> to vector<8x128xf32>
    %61 = vector.extract_strided_slice %59 {offsets = [0, 128], sizes = [8, 128], strides = [1, 1]} : vector<8x512xf32> to vector<8x128xf32>
    %62 = vector.extract_strided_slice %59 {offsets = [0, 256], sizes = [8, 128], strides = [1, 1]} : vector<8x512xf32> to vector<8x128xf32>
    %63 = vector.extract_strided_slice %59 {offsets = [0, 384], sizes = [8, 128], strides = [1, 1]} : vector<8x512xf32> to vector<8x128xf32>
    %cst_22 = arith.constant 1.000000e+00 : f32
    %64 = vector.broadcast %cst_22 : f32 to vector<8x128xf32>
    %65 = arith.addf %60, %64 : vector<8x128xf32>
    %cst_23 = arith.constant 5.000000e-01 : f32
    %66 = vector.broadcast %cst_23 : f32 to vector<8x128xf32>
    %67 = arith.mulf %66, %65 : vector<8x128xf32>
    %68 = arith.mulf %67, %62 : vector<8x128xf32>
    %cst_24 = arith.constant 1.000000e+00 : f32
    %69 = vector.broadcast %cst_24 : f32 to vector<8x128xf32>
    %70 = arith.addf %61, %69 : vector<8x128xf32>
    %cst_25 = arith.constant 5.000000e-01 : f32
    %71 = vector.broadcast %cst_25 : f32 to vector<8x128xf32>
    %72 = arith.mulf %71, %70 : vector<8x128xf32>
    %73 = arith.mulf %72, %39 : vector<8x128xf32>
    %74 = arith.addf %68, %73 : vector<8x128xf32>
    %cst_26 = arith.constant 1.000000e+00 : f32
    %75 = vector.broadcast %cst_26 : f32 to vector<8x128xf32>
    %76 = arith.addf %63, %75 : vector<8x128xf32>
    %cst_27 = arith.constant 5.000000e-01 : f32
    %77 = vector.broadcast %cst_27 : f32 to vector<8x128xf32>
    %78 = arith.mulf %77, %76 : vector<8x128xf32>
    %79 = math.tanh %74 : vector<8x128xf32>
    %80 = arith.mulf %78, %79 : vector<8x128xf32>
    %81 = arith.index_cast %c1_i32 : i32 to index
    %c0_28 = arith.constant 0 : index
    %c0_29 = arith.constant 0 : index
    %82 = vector.load %arg4[%81, %c0_28, %c0_29] : memref<8x8x128xf32, #tpu.memory_space<vmem>>, vector<1x8x128xf32>
    %83 = vector.shape_cast %82 : vector<1x8x128xf32> to vector<8x128xf32>
    %84 = vector.shape_cast %80 : vector<8x128xf32> to vector<1x8x128xf32>
    tpu.vector_store %arg4[%81, %c0_28, %c0_29], %84 {strides = array<i32>} : memref<8x8x128xf32, #tpu.memory_space<vmem>>, vector<1x8x128xf32>,
    %c2_i32 = arith.constant 2 : i32
    %85 = arith.index_cast %c2_i32 : i32 to index
    %c0_30 = arith.constant 0 : index
    %c0_31 = arith.constant 0 : index
    %86 = vector.load %arg2[%85, %c0_30, %c0_31] : memref<8x8x512xbf16, #tpu.memory_space<vmem>>, vector<1x8x512xbf16>
    %87 = vector.shape_cast %86 : vector<1x8x512xbf16> to vector<8x512xbf16>
    %88 = arith.extf %87 : vector<8x512xbf16> to vector<8x512xf32>
    %89 = arith.truncf %80 : vector<8x128xf32> to vector<8x128xbf16>
    %cst_32 = arith.constant dense<0.000000e+00> : vector<8x512xf32>
    %90 = tpu.matmul %89, %3, %cst_32 {dimension_numbers = #tpu.dot_dimension_numbers<[1], [0], [0], [1], [0, 0, 1, 1], [], []>} : vector<8x128xbf16>, vector<128x512xbf16>, vector<8x512xf32> -> vector<8x512xf32>
    %91 = arith.addf %88, %90 : vector<8x512xf32>
    %92 = vector.broadcast %12 : vector<1x512xf32> to vector<8x512xf32>
    %93 = arith.mulf %91, %92 : vector<8x512xf32>
    %94 = math.tanh %93 : vector<8x512xf32>
    %95 = vector.extract_strided_slice %94 {offsets = [0, 0], sizes = [8, 128], strides = [1, 1]} : vector<8x512xf32> to vector<8x128xf32>
    %96 = vector.extract_strided_slice %94 {offsets = [0, 128], sizes = [8, 128], strides = [1, 1]} : vector<8x512xf32> to vector<8x128xf32>
    %97 = vector.extract_strided_slice %94 {offsets = [0, 256], sizes = [8, 128], strides = [1, 1]} : vector<8x512xf32> to vector<8x128xf32>
    %98 = vector.extract_strided_slice %94 {offsets = [0, 384], sizes = [8, 128], strides = [1, 1]} : vector<8x512xf32> to vector<8x128xf32>
    %cst_33 = arith.constant 1.000000e+00 : f32
    %99 = vector.broadcast %cst_33 : f32 to vector<8x128xf32>
    %100 = arith.addf %95, %99 : vector<8x128xf32>
    %cst_34 = arith.constant 5.000000e-01 : f32
    %101 = vector.broadcast %cst_34 : f32 to vector<8x128xf32>
    %102 = arith.mulf %101, %100 : vector<8x128xf32>
    %103 = arith.mulf %102, %97 : vector<8x128xf32>
    %cst_35 = arith.constant 1.000000e+00 : f32
    %104 = vector.broadcast %cst_35 : f32 to vector<8x128xf32>
    %105 = arith.addf %96, %104 : vector<8x128xf32>
    %cst_36 = arith.constant 5.000000e-01 : f32
    %106 = vector.broadcast %cst_36 : f32 to vector<8x128xf32>
    %107 = arith.mulf %106, %105 : vector<8x128xf32>
    %108 = arith.mulf %107, %74 : vector<8x128xf32>
    %109 = arith.addf %103, %108 : vector<8x128xf32>
    %cst_37 = arith.constant 1.000000e+00 : f32
    %110 = vector.broadcast %cst_37 : f32 to vector<8x128xf32>
    %111 = arith.addf %98, %110 : vector<8x128xf32>
    %cst_38 = arith.constant 5.000000e-01 : f32
    %112 = vector.broadcast %cst_38 : f32 to vector<8x128xf32>
    %113 = arith.mulf %112, %111 : vector<8x128xf32>
    %114 = math.tanh %109 : vector<8x128xf32>
    %115 = arith.mulf %113, %114 : vector<8x128xf32>
    %116 = arith.index_cast %c2_i32 : i32 to index
    %c0_39 = arith.constant 0 : index
    %c0_40 = arith.constant 0 : index
    %117 = vector.load %arg4[%116, %c0_39, %c0_40] : memref<8x8x128xf32, #tpu.memory_space<vmem>>, vector<1x8x128xf32>
    %118 = vector.shape_cast %117 : vector<1x8x128xf32> to vector<8x128xf32>
    %119 = vector.shape_cast %115 : vector<8x128xf32> to vector<1x8x128xf32>
    tpu.vector_store %arg4[%116, %c0_39, %c0_40], %119 {strides = array<i32>} : memref<8x8x128xf32, #tpu.memory_space<vmem>>, vector<1x8x128xf32>,
    %c3_i32 = arith.constant 3 : i32
    %120 = arith.index_cast %c3_i32 : i32 to index
    %c0_41 = arith.constant 0 : index
    %c0_42 = arith.constant 0 : index
    %121 = vector.load %arg2[%120, %c0_41, %c0_42] : memref<8x8x512xbf16, #tpu.memory_space<vmem>>, vector<1x8x512xbf16>
    %122 = vector.shape_cast %121 : vector<1x8x512xbf16> to vector<8x512xbf16>
    %123 = arith.extf %122 : vector<8x512xbf16> to vector<8x512xf32>
    %124 = arith.truncf %115 : vector<8x128xf32> to vector<8x128xbf16>
    %cst_43 = arith.constant dense<0.000000e+00> : vector<8x512xf32>
    %125 = tpu.matmul %124, %3, %cst_43 {dimension_numbers = #tpu.dot_dimension_numbers<[1], [0], [0], [1], [0, 0, 1, 1], [], []>} : vector<8x128xbf16>, vector<128x512xbf16>, vector<8x512xf32> -> vector<8x512xf32>
    %126 = arith.addf %123, %125 : vector<8x512xf32>
    %127 = vector.broadcast %12 : vector<1x512xf32> to vector<8x512xf32>
    %128 = arith.mulf %126, %127 : vector<8x512xf32>
    %129 = math.tanh %128 : vector<8x512xf32>
    %130 = vector.extract_strided_slice %129 {offsets = [0, 0], sizes = [8, 128], strides = [1, 1]} : vector<8x512xf32> to vector<8x128xf32>
    %131 = vector.extract_strided_slice %129 {offsets = [0, 128], sizes = [8, 128], strides = [1, 1]} : vector<8x512xf32> to vector<8x128xf32>
    %132 = vector.extract_strided_slice %129 {offsets = [0, 256], sizes = [8, 128], strides = [1, 1]} : vector<8x512xf32> to vector<8x128xf32>
    %133 = vector.extract_strided_slice %129 {offsets = [0, 384], sizes = [8, 128], strides = [1, 1]} : vector<8x512xf32> to vector<8x128xf32>
    %cst_44 = arith.constant 1.000000e+00 : f32
    %134 = vector.broadcast %cst_44 : f32 to vector<8x128xf32>
    %135 = arith.addf %130, %134 : vector<8x128xf32>
    %cst_45 = arith.constant 5.000000e-01 : f32
    %136 = vector.broadcast %cst_45 : f32 to vector<8x128xf32>
    %137 = arith.mulf %136, %135 : vector<8x128xf32>
    %138 = arith.mulf %137, %132 : vector<8x128xf32>
    %cst_46 = arith.constant 1.000000e+00 : f32
    %139 = vector.broadcast %cst_46 : f32 to vector<8x128xf32>
    %140 = arith.addf %131, %139 : vector<8x128xf32>
    %cst_47 = arith.constant 5.000000e-01 : f32
    %141 = vector.broadcast %cst_47 : f32 to vector<8x128xf32>
    %142 = arith.mulf %141, %140 : vector<8x128xf32>
    %143 = arith.mulf %142, %109 : vector<8x128xf32>
    %144 = arith.addf %138, %143 : vector<8x128xf32>
    %cst_48 = arith.constant 1.000000e+00 : f32
    %145 = vector.broadcast %cst_48 : f32 to vector<8x128xf32>
    %146 = arith.addf %133, %145 : vector<8x128xf32>
    %cst_49 = arith.constant 5.000000e-01 : f32
    %147 = vector.broadcast %cst_49 : f32 to vector<8x128xf32>
    %148 = arith.mulf %147, %146 : vector<8x128xf32>
    %149 = math.tanh %144 : vector<8x128xf32>
    %150 = arith.mulf %148, %149 : vector<8x128xf32>
    %151 = arith.index_cast %c3_i32 : i32 to index
    %c0_50 = arith.constant 0 : index
    %c0_51 = arith.constant 0 : index
    %152 = vector.load %arg4[%151, %c0_50, %c0_51] : memref<8x8x128xf32, #tpu.memory_space<vmem>>, vector<1x8x128xf32>
    %153 = vector.shape_cast %152 : vector<1x8x128xf32> to vector<8x128xf32>
    %154 = vector.shape_cast %150 : vector<8x128xf32> to vector<1x8x128xf32>
    tpu.vector_store %arg4[%151, %c0_50, %c0_51], %154 {strides = array<i32>} : memref<8x8x128xf32, #tpu.memory_space<vmem>>, vector<1x8x128xf32>,
    %c4_i32 = arith.constant 4 : i32
    %155 = arith.index_cast %c4_i32 : i32 to index
    %c0_52 = arith.constant 0 : index
    %c0_53 = arith.constant 0 : index
    %156 = vector.load %arg2[%155, %c0_52, %c0_53] : memref<8x8x512xbf16, #tpu.memory_space<vmem>>, vector<1x8x512xbf16>
    %157 = vector.shape_cast %156 : vector<1x8x512xbf16> to vector<8x512xbf16>
    %158 = arith.extf %157 : vector<8x512xbf16> to vector<8x512xf32>
    %159 = arith.truncf %150 : vector<8x128xf32> to vector<8x128xbf16>
    %cst_54 = arith.constant dense<0.000000e+00> : vector<8x512xf32>
    %160 = tpu.matmul %159, %3, %cst_54 {dimension_numbers = #tpu.dot_dimension_numbers<[1], [0], [0], [1], [0, 0, 1, 1], [], []>} : vector<8x128xbf16>, vector<128x512xbf16>, vector<8x512xf32> -> vector<8x512xf32>
    %161 = arith.addf %158, %160 : vector<8x512xf32>
    %162 = vector.broadcast %12 : vector<1x512xf32> to vector<8x512xf32>
    %163 = arith.mulf %161, %162 : vector<8x512xf32>
    %164 = math.tanh %163 : vector<8x512xf32>
    %165 = vector.extract_strided_slice %164 {offsets = [0, 0], sizes = [8, 128], strides = [1, 1]} : vector<8x512xf32> to vector<8x128xf32>
    %166 = vector.extract_strided_slice %164 {offsets = [0, 128], sizes = [8, 128], strides = [1, 1]} : vector<8x512xf32> to vector<8x128xf32>
    %167 = vector.extract_strided_slice %164 {offsets = [0, 256], sizes = [8, 128], strides = [1, 1]} : vector<8x512xf32> to vector<8x128xf32>
    %168 = vector.extract_strided_slice %164 {offsets = [0, 384], sizes = [8, 128], strides = [1, 1]} : vector<8x512xf32> to vector<8x128xf32>
    %cst_55 = arith.constant 1.000000e+00 : f32
    %169 = vector.broadcast %cst_55 : f32 to vector<8x128xf32>
    %170 = arith.addf %165, %169 : vector<8x128xf32>
    %cst_56 = arith.constant 5.000000e-01 : f32
    %171 = vector.broadcast %cst_56 : f32 to vector<8x128xf32>
    %172 = arith.mulf %171, %170 : vector<8x128xf32>
    %173 = arith.mulf %172, %167 : vector<8x128xf32>
    %cst_57 = arith.constant 1.000000e+00 : f32
    %174 = vector.broadcast %cst_57 : f32 to vector<8x128xf32>
    %175 = arith.addf %166, %174 : vector<8x128xf32>
    %cst_58 = arith.constant 5.000000e-01 : f32
    %176 = vector.broadcast %cst_58 : f32 to vector<8x128xf32>
    %177 = arith.mulf %176, %175 : vector<8x128xf32>
    %178 = arith.mulf %177, %144 : vector<8x128xf32>
    %179 = arith.addf %173, %178 : vector<8x128xf32>
    %cst_59 = arith.constant 1.000000e+00 : f32
    %180 = vector.broadcast %cst_59 : f32 to vector<8x128xf32>
    %181 = arith.addf %168, %180 : vector<8x128xf32>
    %cst_60 = arith.constant 5.000000e-01 : f32
    %182 = vector.broadcast %cst_60 : f32 to vector<8x128xf32>
    %183 = arith.mulf %182, %181 : vector<8x128xf32>
    %184 = math.tanh %179 : vector<8x128xf32>
    %185 = arith.mulf %183, %184 : vector<8x128xf32>
    %186 = arith.index_cast %c4_i32 : i32 to index
    %c0_61 = arith.constant 0 : index
    %c0_62 = arith.constant 0 : index
    %187 = vector.load %arg4[%186, %c0_61, %c0_62] : memref<8x8x128xf32, #tpu.memory_space<vmem>>, vector<1x8x128xf32>
    %188 = vector.shape_cast %187 : vector<1x8x128xf32> to vector<8x128xf32>
    %189 = vector.shape_cast %185 : vector<8x128xf32> to vector<1x8x128xf32>
    tpu.vector_store %arg4[%186, %c0_61, %c0_62], %189 {strides = array<i32>} : memref<8x8x128xf32, #tpu.memory_space<vmem>>, vector<1x8x128xf32>,
    %c5_i32 = arith.constant 5 : i32
    %190 = arith.index_cast %c5_i32 : i32 to index
    %c0_63 = arith.constant 0 : index
    %c0_64 = arith.constant 0 : index
    %191 = vector.load %arg2[%190, %c0_63, %c0_64] : memref<8x8x512xbf16, #tpu.memory_space<vmem>>, vector<1x8x512xbf16>
    %192 = vector.shape_cast %191 : vector<1x8x512xbf16> to vector<8x512xbf16>
    %193 = arith.extf %192 : vector<8x512xbf16> to vector<8x512xf32>
    %194 = arith.truncf %185 : vector<8x128xf32> to vector<8x128xbf16>
    %cst_65 = arith.constant dense<0.000000e+00> : vector<8x512xf32>
    %195 = tpu.matmul %194, %3, %cst_65 {dimension_numbers = #tpu.dot_dimension_numbers<[1], [0], [0], [1], [0, 0, 1, 1], [], []>} : vector<8x128xbf16>, vector<128x512xbf16>, vector<8x512xf32> -> vector<8x512xf32>
    %196 = arith.addf %193, %195 : vector<8x512xf32>
    %197 = vector.broadcast %12 : vector<1x512xf32> to vector<8x512xf32>
    %198 = arith.mulf %196, %197 : vector<8x512xf32>
    %199 = math.tanh %198 : vector<8x512xf32>
    %200 = vector.extract_strided_slice %199 {offsets = [0, 0], sizes = [8, 128], strides = [1, 1]} : vector<8x512xf32> to vector<8x128xf32>
    %201 = vector.extract_strided_slice %199 {offsets = [0, 128], sizes = [8, 128], strides = [1, 1]} : vector<8x512xf32> to vector<8x128xf32>
    %202 = vector.extract_strided_slice %199 {offsets = [0, 256], sizes = [8, 128], strides = [1, 1]} : vector<8x512xf32> to vector<8x128xf32>
    %203 = vector.extract_strided_slice %199 {offsets = [0, 384], sizes = [8, 128], strides = [1, 1]} : vector<8x512xf32> to vector<8x128xf32>
    %cst_66 = arith.constant 1.000000e+00 : f32
    %204 = vector.broadcast %cst_66 : f32 to vector<8x128xf32>
    %205 = arith.addf %200, %204 : vector<8x128xf32>
    %cst_67 = arith.constant 5.000000e-01 : f32
    %206 = vector.broadcast %cst_67 : f32 to vector<8x128xf32>
    %207 = arith.mulf %206, %205 : vector<8x128xf32>
    %208 = arith.mulf %207, %202 : vector<8x128xf32>
    %cst_68 = arith.constant 1.000000e+00 : f32
    %209 = vector.broadcast %cst_68 : f32 to vector<8x128xf32>
    %210 = arith.addf %201, %209 : vector<8x128xf32>
    %cst_69 = arith.constant 5.000000e-01 : f32
    %211 = vector.broadcast %cst_69 : f32 to vector<8x128xf32>
    %212 = arith.mulf %211, %210 : vector<8x128xf32>
    %213 = arith.mulf %212, %179 : vector<8x128xf32>
    %214 = arith.addf %208, %213 : vector<8x128xf32>
    %cst_70 = arith.constant 1.000000e+00 : f32
    %215 = vector.broadcast %cst_70 : f32 to vector<8x128xf32>
    %216 = arith.addf %203, %215 : vector<8x128xf32>
    %cst_71 = arith.constant 5.000000e-01 : f32
    %217 = vector.broadcast %cst_71 : f32 to vector<8x128xf32>
    %218 = arith.mulf %217, %216 : vector<8x128xf32>
    %219 = math.tanh %214 : vector<8x128xf32>
    %220 = arith.mulf %218, %219 : vector<8x128xf32>
    %221 = arith.index_cast %c5_i32 : i32 to index
    %c0_72 = arith.constant 0 : index
    %c0_73 = arith.constant 0 : index
    %222 = vector.load %arg4[%221, %c0_72, %c0_73] : memref<8x8x128xf32, #tpu.memory_space<vmem>>, vector<1x8x128xf32>
    %223 = vector.shape_cast %222 : vector<1x8x128xf32> to vector<8x128xf32>
    %224 = vector.shape_cast %220 : vector<8x128xf32> to vector<1x8x128xf32>
    tpu.vector_store %arg4[%221, %c0_72, %c0_73], %224 {strides = array<i32>} : memref<8x8x128xf32, #tpu.memory_space<vmem>>, vector<1x8x128xf32>,
    %c6_i32 = arith.constant 6 : i32
    %225 = arith.index_cast %c6_i32 : i32 to index
    %c0_74 = arith.constant 0 : index
    %c0_75 = arith.constant 0 : index
    %226 = vector.load %arg2[%225, %c0_74, %c0_75] : memref<8x8x512xbf16, #tpu.memory_space<vmem>>, vector<1x8x512xbf16>
    %227 = vector.shape_cast %226 : vector<1x8x512xbf16> to vector<8x512xbf16>
    %228 = arith.extf %227 : vector<8x512xbf16> to vector<8x512xf32>
    %229 = arith.truncf %220 : vector<8x128xf32> to vector<8x128xbf16>
    %cst_76 = arith.constant dense<0.000000e+00> : vector<8x512xf32>
    %230 = tpu.matmul %229, %3, %cst_76 {dimension_numbers = #tpu.dot_dimension_numbers<[1], [0], [0], [1], [0, 0, 1, 1], [], []>} : vector<8x128xbf16>, vector<128x512xbf16>, vector<8x512xf32> -> vector<8x512xf32>
    %231 = arith.addf %228, %230 : vector<8x512xf32>
    %232 = vector.broadcast %12 : vector<1x512xf32> to vector<8x512xf32>
    %233 = arith.mulf %231, %232 : vector<8x512xf32>
    %234 = math.tanh %233 : vector<8x512xf32>
    %235 = vector.extract_strided_slice %234 {offsets = [0, 0], sizes = [8, 128], strides = [1, 1]} : vector<8x512xf32> to vector<8x128xf32>
    %236 = vector.extract_strided_slice %234 {offsets = [0, 128], sizes = [8, 128], strides = [1, 1]} : vector<8x512xf32> to vector<8x128xf32>
    %237 = vector.extract_strided_slice %234 {offsets = [0, 256], sizes = [8, 128], strides = [1, 1]} : vector<8x512xf32> to vector<8x128xf32>
    %238 = vector.extract_strided_slice %234 {offsets = [0, 384], sizes = [8, 128], strides = [1, 1]} : vector<8x512xf32> to vector<8x128xf32>
    %cst_77 = arith.constant 1.000000e+00 : f32
    %239 = vector.broadcast %cst_77 : f32 to vector<8x128xf32>
    %240 = arith.addf %235, %239 : vector<8x128xf32>
    %cst_78 = arith.constant 5.000000e-01 : f32
    %241 = vector.broadcast %cst_78 : f32 to vector<8x128xf32>
    %242 = arith.mulf %241, %240 : vector<8x128xf32>
    %243 = arith.mulf %242, %237 : vector<8x128xf32>
    %cst_79 = arith.constant 1.000000e+00 : f32
    %244 = vector.broadcast %cst_79 : f32 to vector<8x128xf32>
    %245 = arith.addf %236, %244 : vector<8x128xf32>
    %cst_80 = arith.constant 5.000000e-01 : f32
    %246 = vector.broadcast %cst_80 : f32 to vector<8x128xf32>
    %247 = arith.mulf %246, %245 : vector<8x128xf32>
    %248 = arith.mulf %247, %214 : vector<8x128xf32>
    %249 = arith.addf %243, %248 : vector<8x128xf32>
    %cst_81 = arith.constant 1.000000e+00 : f32
    %250 = vector.broadcast %cst_81 : f32 to vector<8x128xf32>
    %251 = arith.addf %238, %250 : vector<8x128xf32>
    %cst_82 = arith.constant 5.000000e-01 : f32
    %252 = vector.broadcast %cst_82 : f32 to vector<8x128xf32>
    %253 = arith.mulf %252, %251 : vector<8x128xf32>
    %254 = math.tanh %249 : vector<8x128xf32>
    %255 = arith.mulf %253, %254 : vector<8x128xf32>
    %256 = arith.index_cast %c6_i32 : i32 to index
    %c0_83 = arith.constant 0 : index
    %c0_84 = arith.constant 0 : index
    %257 = vector.load %arg4[%256, %c0_83, %c0_84] : memref<8x8x128xf32, #tpu.memory_space<vmem>>, vector<1x8x128xf32>
    %258 = vector.shape_cast %257 : vector<1x8x128xf32> to vector<8x128xf32>
    %259 = vector.shape_cast %255 : vector<8x128xf32> to vector<1x8x128xf32>
    tpu.vector_store %arg4[%256, %c0_83, %c0_84], %259 {strides = array<i32>} : memref<8x8x128xf32, #tpu.memory_space<vmem>>, vector<1x8x128xf32>,
    %c7_i32 = arith.constant 7 : i32
    %260 = arith.index_cast %c7_i32 : i32 to index
    %c0_85 = arith.constant 0 : index
    %c0_86 = arith.constant 0 : index
    %261 = vector.load %arg2[%260, %c0_85, %c0_86] : memref<8x8x512xbf16, #tpu.memory_space<vmem>>, vector<1x8x512xbf16>
    %262 = vector.shape_cast %261 : vector<1x8x512xbf16> to vector<8x512xbf16>
    %263 = arith.extf %262 : vector<8x512xbf16> to vector<8x512xf32>
    %264 = arith.truncf %255 : vector<8x128xf32> to vector<8x128xbf16>
    %cst_87 = arith.constant dense<0.000000e+00> : vector<8x512xf32>
    %265 = tpu.matmul %264, %3, %cst_87 {dimension_numbers = #tpu.dot_dimension_numbers<[1], [0], [0], [1], [0, 0, 1, 1], [], []>} : vector<8x128xbf16>, vector<128x512xbf16>, vector<8x512xf32> -> vector<8x512xf32>
    %266 = arith.addf %263, %265 : vector<8x512xf32>
    %267 = vector.broadcast %12 : vector<1x512xf32> to vector<8x512xf32>
    %268 = arith.mulf %266, %267 : vector<8x512xf32>
    %269 = math.tanh %268 : vector<8x512xf32>
    %270 = vector.extract_strided_slice %269 {offsets = [0, 0], sizes = [8, 128], strides = [1, 1]} : vector<8x512xf32> to vector<8x128xf32>
    %271 = vector.extract_strided_slice %269 {offsets = [0, 128], sizes = [8, 128], strides = [1, 1]} : vector<8x512xf32> to vector<8x128xf32>
    %272 = vector.extract_strided_slice %269 {offsets = [0, 256], sizes = [8, 128], strides = [1, 1]} : vector<8x512xf32> to vector<8x128xf32>
    %273 = vector.extract_strided_slice %269 {offsets = [0, 384], sizes = [8, 128], strides = [1, 1]} : vector<8x512xf32> to vector<8x128xf32>
    %cst_88 = arith.constant 1.000000e+00 : f32
    %274 = vector.broadcast %cst_88 : f32 to vector<8x128xf32>
    %275 = arith.addf %270, %274 : vector<8x128xf32>
    %cst_89 = arith.constant 5.000000e-01 : f32
    %276 = vector.broadcast %cst_89 : f32 to vector<8x128xf32>
    %277 = arith.mulf %276, %275 : vector<8x128xf32>
    %278 = arith.mulf %277, %272 : vector<8x128xf32>
    %cst_90 = arith.constant 1.000000e+00 : f32
    %279 = vector.broadcast %cst_90 : f32 to vector<8x128xf32>
    %280 = arith.addf %271, %279 : vector<8x128xf32>
    %cst_91 = arith.constant 5.000000e-01 : f32
    %281 = vector.broadcast %cst_91 : f32 to vector<8x128xf32>
    %282 = arith.mulf %281, %280 : vector<8x128xf32>
    %283 = arith.mulf %282, %249 : vector<8x128xf32>
    %284 = arith.addf %278, %283 : vector<8x128xf32>
    %cst_92 = arith.constant 1.000000e+00 : f32
    %285 = vector.broadcast %cst_92 : f32 to vector<8x128xf32>
    %286 = arith.addf %273, %285 : vector<8x128xf32>
    %cst_93 = arith.constant 5.000000e-01 : f32
    %287 = vector.broadcast %cst_93 : f32 to vector<8x128xf32>
    %288 = arith.mulf %287, %286 : vector<8x128xf32>
    %289 = math.tanh %284 : vector<8x128xf32>
    %290 = arith.mulf %288, %289 : vector<8x128xf32>
    %291 = arith.index_cast %c7_i32 : i32 to index
    %c0_94 = arith.constant 0 : index
    %c0_95 = arith.constant 0 : index
    %292 = vector.load %arg4[%291, %c0_94, %c0_95] : memref<8x8x128xf32, #tpu.memory_space<vmem>>, vector<1x8x128xf32>
    %293 = vector.shape_cast %292 : vector<1x8x128xf32> to vector<8x128xf32>
    %294 = vector.shape_cast %290 : vector<8x128xf32> to vector<1x8x128xf32>
    tpu.vector_store %arg4[%291, %c0_94, %c0_95], %294 {strides = array<i32>} : memref<8x8x128xf32, #tpu.memory_space<vmem>>, vector<1x8x128xf32>,
    %c8_i32 = arith.constant 8 : i32
    %c0_96 = arith.constant 0 : index
    %c0_97 = arith.constant 0 : index
    %295 = vector.load %arg6[%c0_96, %c0_97] : memref<8x128xf32, #tpu.memory_space<vmem>>, vector<8x128xf32>
    tpu.vector_store %arg6[%c0_96, %c0_97], %290 {strides = array<i32>} : memref<8x128xf32, #tpu.memory_space<vmem>>, vector<8x128xf32>,
    %c0_98 = arith.constant 0 : index
    %c0_99 = arith.constant 0 : index
    %296 = vector.load %arg7[%c0_98, %c0_99] : memref<8x128xf32, #tpu.memory_space<vmem>>, vector<8x128xf32>
    tpu.vector_store %arg7[%c0_98, %c0_99], %284 {strides = array<i32>} : memref<8x128xf32, #tpu.memory_space<vmem>>, vector<8x128xf32>,
    %c0_i32_100 = arith.constant 0 : i32
    %297 = arith.cmpi eq, %arg1, %c0_i32_100 : i32
    %298 = arith.extui %297 : i1 to i32
    %c0_i32_101 = arith.constant 0 : i32
    %299 = arith.cmpi ne, %298, %c0_i32_101 : i32
    scf.if %299 {
      %c0_102 = arith.constant 0 : index
      %c0_103 = arith.constant 0 : index
      %300 = vector.load %arg5[%c0_102, %c0_103] : memref<8x128xf32, #tpu.memory_space<vmem>>, vector<8x128xf32>
      tpu.vector_store %arg5[%c0_102, %c0_103], %284 {strides = array<i32>} : memref<8x128xf32, #tpu.memory_space<vmem>>, vector<8x128xf32>,
    } else {
    }
    return
  }
  func.func @transform_0(%arg0: i32, %arg1: i32) -> (i32, i32, i32) {
    %c0_i32 = arith.constant 0 : i32
    %c0_i32_0 = arith.constant 0 : i32
    return %arg1, %arg0, %c0_i32 : i32, i32, i32
  }
  func.func @transform_1(%arg0: i32, %arg1: i32) -> (i32, i32) {
    %c0_i32 = arith.constant 0 : i32
    %c0_i32_0 = arith.constant 0 : i32
    %c0_i32_1 = arith.constant 0 : i32
    return %c0_i32, %c0_i32_0 : i32, i32
  }
  func.func @transform_2(%arg0: i32, %arg1: i32) -> (i32, i32, i32) {
    %c0_i32 = arith.constant 0 : i32
    %c0_i32_0 = arith.constant 0 : i32
    return %arg1, %arg0, %c0_i32 : i32, i32, i32
  }
  func.func @transform_3(%arg0: i32, %arg1: i32) -> (i32, i32) {
    %c0_i32 = arith.constant 0 : i32
    %c0_i32_0 = arith.constant 0 : i32
    return %arg0, %c0_i32 : i32, i32
  }
}

</mosaic_0001>

<bundles_post_ra>
// kernel: squeeze.8
= control target key start
LH: loop header
LB: loop body
LE: loop exit
PB: predicated region body
PF: predicated region fallthrough
CT: control target
= control target key end

     0   :  { %s40_s8 = smov 32   ;;  %vm8_vm0 = vcmask 261120   ;;  %s41_s9 = smov 64   ;;  %s58_s0 = inlined_call_operand.vmem [shape: f32[128], index: 0, kind: input, shape index: {}]   ;;  %s59_s1 = inlined_call_operand.vmem [shape: f32[4,32], index: 1, kind: output, shape index: {}]  }
   0x1   :  { %v5_v0 = vld [vmem:[%s58_s0] sm:$0x1]  ;;  %s39_s0 = smov 96  }
   0x2   :  { %6 = vst [vmem:[#allocation1] sm:$0x1] %v5_v0 }
   0x9   :  { %v10_v1 = vld [vmem:[#allocation1] sm:$0x1]  }
   0xa   :  { %v22_v2 = vld [vmem:[#allocation1] sm:$0x1]   ;;  %11 = vrot.lane.b32.xlu0 %v10_v1, %s39_s0 }
   0xb   :  { %23 = vrot.lane.b32.xlu1 %v22_v2, %s40_s8  ;;  %v7_v3 = vld [vmem:[#allocation1] sm:$0x1]  }
   0xc   :  { %v16_v4 = vld [vmem:[#allocation1] sm:$0x1]   ;;  %9 = vst.msk [vmem:[#allocation0] sm:$0x1] %vm8_vm0, %v7_v3  }
   0xe   :  { %17 = vrot.lane.b32.xlu0 %v16_v4, %s41_s9 }
  0x7c   :  { %v12_v5 = vpop.permute.xlu0 %11  }
  0x7d   :  { %v24_v6 = vpop.permute.xlu1 %23   ;;  %15 = vst.msk [vmem:[#allocation0 + $0x1] sm:$0x1] %vm8_vm0, %v12_v5  }
  0x7e   :  { %27 = vst.msk [vmem:[#allocation0 + $0x3] sm:$0x1] %vm8_vm0, %v24_v6  }
  0x80   :  { %v18_v7 = vpop.permute.xlu0 %17  }
  0x81   :  { %21 = vst.msk [vmem:[#allocation0 + $0x2] sm:$0x1] %vm8_vm0, %v18_v7  }
  0x88   :  { %v32_v8 = vld [vmem:[#allocation0] sm:$0xf] }
  0x89   :  { %35 = vst [vmem:[%s59_s1] sm:$0xf] %v32_v8 }

// kernel: lstm_forward.2
= control target key start
LH: loop header
LB: loop body
LE: loop exit
PB: predicated region body
PF: predicated region fallthrough
CT: control target
= control target key end

     0   :  { %v1383_v1 = vmov 0   ;;  %v1384_v33 = vmov 0.0|0.0   ;;  %s2000_s1 = inlined_call_operand.vmem [shape: bf16[128,512], index: 1, kind: input, shape index: {}]   ;;  %s2001_s0 = inlined_call_operand.vmem [shape: bf16[8,8,512], index: 0, kind: input, shape index: {}]   ;;  %s2002_s2 = inlined_call_operand.vmem [shape: bf16[8,8,128], index: 2, kind: output, shape index: {0}]   ;;  %s2003_s3 = inlined_call_operand.vmem [shape: f32[8,128], index: 3, kind: output, shape index: {1}]  }
   0x1   :  { %v1408_v0 = vld [vmem:[%s2000_s1 + $0xe4] ss:$16 sps:$4 sm:$0xff]   ;;  %274 = vmatprep.mubr.bf16.mxu0 %v1383_v1  ;;  %315 = vmatprep.mubr.bf16.mxu1 %v1383_v1  ;;  %v1415_v2 = vld [vmem:[%s2000_s1 + $0xe0] ss:$16 sps:$4 sm:$0xff]   ;;  %v1421_v3 = vld [vmem:[%s2000_s1 + $0xec] ss:$16 sps:$4 sm:$0xff]  }
   0x2   :  { %242 = vmatprep.subr.bf16.mxu0 %v1408_v0  ;;  %v1426_v4 = vld [vmem:[%s2000_s1 + $0xe8] ss:$16 sps:$4 sm:$0xff]   ;;  %v1432_v5 = vld [vmem:[%s2000_s1 + $0xc4] ss:$16 sps:$4 sm:$0xff]   ;;  %v1437_v6 = vld [vmem:[%s2000_s1 + $0xc0] ss:$16 sps:$4 sm:$0xff]   ;;  %283 = vmatprep.subr.bf16.mxu1 %v1421_v3 }
   0x3   :  { %243 = vmatpush1.bf16.msra.mxu0 %v1415_v2  ;;  %v1443_v7 = vld [vmem:[%s2000_s1 + $0xcc] ss:$16 sps:$4 sm:$0xff]   ;;  %284 = vmatpush1.bf16.msra.mxu1 %v1426_v4  ;;  %v1450_v8 = vld [vmem:[%s2000_s1 + $0xc8] ss:$16 sps:$4 sm:$0xff]   ;;  %v1456_v9 = vld [vmem:[%s2000_s1 + $0xa4] ss:$16 sps:$4 sm:$0xff]  }
   0x4   :  { %244 = vmatprep.subr.bf16.mxu0 %v1432_v5  ;;  %285 = vmatprep.subr.bf16.mxu1 %v1443_v7  ;;  %v1462_v10 = vld [vmem:[%s2000_s1 + $0xa0] ss:$16 sps:$4 sm:$0xff]   ;;  %v1467_v11 = vld [vmem:[%s2000_s1 + $0xac] ss:$16 sps:$4 sm:$0xff]   ;;  %v1473_v12 = vld [vmem:[%s2000_s1 + $0x84] ss:$16 sps:$4 sm:$0xff]  }
   0x5   :  { %v1479_v13 = vld [vmem:[%s2000_s1 + $0xa8] ss:$16 sps:$4 sm:$0xff]   ;;  %v1485_v14 = vld [vmem:[%s2000_s1 + $0x8c] ss:$16 sps:$4 sm:$0xff]   ;;  %v1491_v15 = vld [vmem:[%s2000_s1 + $0x80] ss:$16 sps:$4 sm:$0xff]  }
   0x6   :  { %v1497_v16 = vld [vmem:[%s2000_s1 + $0x64] ss:$16 sps:$4 sm:$0xff]   ;;  %v1503_v17 = vld [vmem:[%s2000_s1 + $0x88] ss:$16 sps:$4 sm:$0xff]   ;;  %v1509_v18 = vld [vmem:[%s2000_s1 + $0x6c] ss:$16 sps:$4 sm:$0xff]  }
   0x7   :  { %245 = vmatpush1.bf16.msra.mxu0 %v1437_v6  ;;  %286 = vmatpush1.bf16.msra.mxu1 %v1450_v8  ;;  %v1515_v19 = vld [vmem:[%s2000_s1 + $0x60] ss:$16 sps:$4 sm:$0xff]   ;;  %v1521_v20 = vld [vmem:[%s2000_s1 + $0x44] ss:$16 sps:$4 sm:$0xff]   ;;  %v1527_v21 = vld [vmem:[%s2000_s1 + $0x68] ss:$16 sps:$4 sm:$0xff]  }
   0x8   :  { %246 = vmatprep.subr.bf16.mxu0 %v1456_v9  ;;  %287 = vmatprep.subr.bf16.mxu1 %v1467_v11  ;;  %v1533_v22 = vld [vmem:[%s2000_s1 + $0x4c] ss:$16 sps:$4 sm:$0xff]   ;;  %v1539_v23 = vld [vmem:[%s2000_s1 + $0x40] ss:$16 sps:$4 sm:$0xff]   ;;  %v1545_v24 = vld [vmem:[%s2000_s1 + $0x24] ss:$16 sps:$4 sm:$0xff]  }
   0x9   :  { %v1551_v25 = vld [vmem:[%s2000_s1 + $0x48] ss:$16 sps:$4 sm:$0xff]   ;;  %v1557_v26 = vld [vmem:[%s2000_s1 + $0x2c] ss:$16 sps:$4 sm:$0xff]   ;;  %v1563_v27 = vld [vmem:[%s2000_s1 + $0x20] ss:$16 sps:$4 sm:$0xff]  }
   0xa   :  { %v1569_v28 = vld [vmem:[%s2000_s1 + $0x4] ss:$16 sps:$4 sm:$0xff]   ;;  %v1575_v29 = vld [vmem:[%s2000_s1 + $0x28] ss:$16 sps:$4 sm:$0xff]   ;;  %v1581_v30 = vld [vmem:[%s2000_s1 + $0xc] ss:$16 sps:$4 sm:$0xff]  }
   0xb   :  { %247 = vmatpush1.bf16.msra.mxu0 %v1462_v10  ;;  %288 = vmatpush1.bf16.msra.mxu1 %v1479_v13  ;;  %v1587_v31 = vld [vmem:[%s2000_s1] ss:$16 sps:$4 sm:$0xff]   ;;  %v1594_v32 = vld [vmem:[%s2000_s1 + $0x8] ss:$16 sps:$4 sm:$0xff]  }
   0xc   :  { %248 = vmatprep.subr.bf16.mxu0 %v1473_v12  ;;  %289 = vmatprep.subr.bf16.mxu1 %v1485_v14  ;;  %v75_v34 = vld [vmem:[%s2001_s0] sm:$0xff]  ;;  %v76_v36 = vld [vmem:[%s2001_s0 + $0x8] sm:$0xff] }
   0xd   :  { %v77_v35 = vunpack.c.l.bf16 %v75_v34  ;;  %v78_v37 = vunpack.c.h.bf16 %v75_v34  ;;  %v79_v40 = vunpack.c.l.bf16 %v76_v36  ;;  %v80_v52 = vunpack.c.h.bf16 %v76_v36 }
   0xf   :  { %249 = vmatpush1.bf16.msra.mxu0 %v1491_v15  ;;  %290 = vmatpush1.bf16.msra.mxu1 %v1503_v17 }
  0x10   :  { %250 = vmatprep.subr.bf16.mxu0 %v1497_v16  ;;  %291 = vmatprep.subr.bf16.mxu1 %v1509_v18 }
  0x13   :  { %251 = vmatpush1.bf16.msra.mxu0 %v1515_v19  ;;  %292 = vmatpush1.bf16.msra.mxu1 %v1527_v21 }
  0x14   :  { %252 = vmatprep.subr.bf16.mxu0 %v1521_v20  ;;  %293 = vmatprep.subr.bf16.mxu1 %v1533_v22 }
  0x17   :  { %253 = vmatpush1.bf16.msra.mxu0 %v1539_v23  ;;  %294 = vmatpush1.bf16.msra.mxu1 %v1551_v25 }
  0x18   :  { %254 = vmatprep.subr.bf16.mxu0 %v1545_v24  ;;  %295 = vmatprep.subr.bf16.mxu1 %v1557_v26 }
  0x1b   :  { %255 = vmatpush1.bf16.msra.mxu0 %v1563_v27  ;;  %296 = vmatpush1.bf16.msra.mxu1 %v1575_v29 }
  0x1c   :  { %256 = vmatprep.subr.bf16.mxu0 %v1569_v28  ;;  %297 = vmatprep.subr.bf16.mxu1 %v1581_v30 }
  0x1f   :  { %257 = vmatpush1.bf16.msra.mxu0 %v1587_v31  ;;  %298 = vmatpush1.bf16.msra.mxu1 %v1594_v32 }
  0x20   :  { %356 = vmatprep.subr.bf16.mxu0 %v1408_v0  ;;  %397 = vmatprep.subr.bf16.mxu1 %v1421_v3 }
  0x22   :  { %275 = vmatmul.mubr.bf16.vlgmr.msra.gmra.mxu0 %v1384_v33  ;;  %316 = vmatmul.mubr.bf16.vlgmr.msra.gmra.mxu1 %v1384_v33 }
  0x23   :  { %357 = vmatpush1.bf16.msra.mxu0 %v1415_v2  ;;  %388 = vmatprep.mubr.bf16.mxu0 %v1383_v1 }
  0x24   :  { %358 = vmatprep.subr.bf16.mxu0 %v1432_v5  ;;  %398 = vmatpush1.bf16.msra.mxu1 %v1426_v4 }
  0x25   :  { %429 = vmatprep.mubr.bf16.mxu1 %v1383_v1  ;;  %399 = vmatprep.subr.bf16.mxu1 %v1443_v7 }
  0x27   :  { %359 = vmatpush1.bf16.msra.mxu0 %v1437_v6 }
  0x28   :  { %360 = vmatprep.subr.bf16.mxu0 %v1456_v9  ;;  %400 = vmatpush1.bf16.msra.mxu1 %v1450_v8 }
  0x29   :  { %401 = vmatprep.subr.bf16.mxu1 %v1467_v11 }
  0x2b   :  { %361 = vmatpush1.bf16.msra.mxu0 %v1462_v10 }
  0x2c   :  { %362 = vmatprep.subr.bf16.mxu0 %v1473_v12  ;;  %402 = vmatpush1.bf16.msra.mxu1 %v1479_v13 }
  0x2d   :  { %403 = vmatprep.subr.bf16.mxu1 %v1485_v14 }
  0x2f   :  { %363 = vmatpush1.bf16.msra.mxu0 %v1491_v15 }
  0x30   :  { %364 = vmatprep.subr.bf16.mxu0 %v1497_v16  ;;  %404 = vmatpush1.bf16.msra.mxu1 %v1503_v17 }
  0x31   :  { %405 = vmatprep.subr.bf16.mxu1 %v1509_v18 }
  0x33   :  { %365 = vmatpush1.bf16.msra.mxu0 %v1515_v19 }
  0x34   :  { %366 = vmatprep.subr.bf16.mxu0 %v1521_v20  ;;  %406 = vmatpush1.bf16.msra.mxu1 %v1527_v21 }
  0x35   :  { %407 = vmatprep.subr.bf16.mxu1 %v1533_v22 }
  0x37   :  { %367 = vmatpush1.bf16.msra.mxu0 %v1539_v23 }
  0x38   :  { %368 = vmatprep.subr.bf16.mxu0 %v1545_v24  ;;  %408 = vmatpush1.bf16.msra.mxu1 %v1551_v25 }
  0x39   :  { %409 = vmatprep.subr.bf16.mxu1 %v1557_v26 }
  0x3b   :  { %369 = vmatpush1.bf16.msra.mxu0 %v1563_v27 }
  0x3c   :  { %370 = vmatprep.subr.bf16.mxu0 %v1569_v28  ;;  %410 = vmatpush1.bf16.msra.mxu1 %v1575_v29 }
  0x3d   :  { %411 = vmatprep.subr.bf16.mxu1 %v1581_v30 }
  0x3f   :  { %371 = vmatpush1.bf16.msra.mxu0 %v1587_v31 }
  0x40   :  { %471 = vmatprep.subr.bf16.mxu0 %v1408_v0  ;;  %412 = vmatpush1.bf16.msra.mxu1 %v1594_v32 }
  0x41   :  { %512 = vmatprep.subr.bf16.mxu1 %v1421_v3 }
  0xe2   :  { %v276_v38 = vpop.f32.mrf.mxu0  ;;  %v317_v42 = vpop.f32.mrf.mxu1 }
  0xe3   :  { %v324_v39 = vadd.f32 %v276_v38, %v77_v35  ;;  %v326_v48 = vadd.f32 %v317_v42, %v79_v40  ;;  %v1200_v40 = vld [vmem:[%s2001_s0 + $0x10] sm:$0xff] }
  0xe4   :  { %v278_v41 = vpop.f32.mrf.mxu0  ;;  %v319_v46 = vpop.f32.mrf.mxu1  ;;  %v353_v42 = vunpack.c.h.bf16 %v1200_v40 }
  0xe5   :  { %v328_v43 = vmul.f32 0.5, %v324_v39  ;;  %v325_v44 = vadd.f32 %v278_v41, %v78_v37  ;;  %v327_v53 = vadd.f32 %v319_v46, %v80_v52  ;;  %v352_v41 = vunpack.c.l.bf16 %v1200_v40 }
  0xe6   :  { %v280_v45 = vpop.f32.mrf.mxu0  ;;  %v321_v50 = vpop.f32.mrf.mxu1 }
  0xe7   :  { %1271 = vtanh.f32 %v328_v43  ;;  %v329_v47 = vmul.f32 0.5, %v325_v44  ;;  %v331_v54 = vmul.f32 0.5, %v327_v53  ;;  %v1201_v44 = vld [vmem:[%s2001_s0 + $0x18] sm:$0xff] }
  0xe8   :  { %v281_v49 = vpop.f32.mrf.mxu0  ;;  %v322_v51 = vpop.f32.mrf.mxu1  ;;  %v354_v50 = vunpack.c.l.bf16 %v1201_v44 }
  0xe9   :  { %1273 = vtanh.f32 %v329_v47 }
  0xea   :  { %1275 = vtanh.f32 %v326_v48 }
  0xeb   :  { %1277 = vtanh.f32 %v331_v54 }
  0xf4   :  { %v1272_v55 = vpop.eup %1271 }
  0xf5   :  { %v336_v56 = vadd.f32 1.0, %v1272_v55 }
  0xf6   :  { %v1274_v57 = vpop.eup %1273 }
  0xf7   :  { %v337_v58 = vmul.f32 0.5, %v336_v56  ;;  %v339_v59 = vadd.f32 1.0, %v1274_v57  ;;  %v1276_v60 = vpop.eup %1275 }
  0xf8   :  { %v1278_v34 = vpop.eup %1277 }
  0xf9   :  { %v340_v61 = vmul.f32 0.5, %v339_v59  ;;  %v338_v63 = vmul.f32 %v1276_v60, %v337_v58  ;;  %v343_v35 = vadd.f32 1.0, %v1278_v34  ;;  %v355_v58 = vunpack.c.h.bf16 %v1201_v44 }
  0xfb   :  { %v341_v62 = vmul.f32 0.0, %v340_v61  ;;  %v344_v37 = vmul.f32 0.5, %v343_v35 }
  0xfd   :  { %v1641_v33 = vadd.f32 %v341_v62, %v338_v63 }
  0xff   :  { %1279 = vtanh.f32 %v1641_v33 }
 0x10c   :  { %v1280_v36 = vpop.eup %1279 }
 0x10d   :  { %v346_v38 = vmul.f32 %v1280_v36, %v344_v37 }
 0x10f   :  { %v347_v39 = vpack.c.bf16 %v346_v38, %v346_v38 }
 0x111   :  { %348 = vst [vmem:[%s2002_s2] sm:$0xf] %v347_v39  ;;  %389 = vmatmul.mubr.bf16.vlgmr.msra.gmra.mxu0 %v347_v39  ;;  %430 = vmatmul.mubr.bf16.vlgmr.msra.gmra.mxu1 %v347_v39 }
 0x112   :  { %472 = vmatpush1.bf16.msra.mxu0 %v1415_v2  ;;  %513 = vmatpush1.bf16.msra.mxu1 %v1426_v4 }
 0x113   :  { %473 = vmatprep.subr.bf16.mxu0 %v1432_v5  ;;  %514 = vmatprep.subr.bf16.mxu1 %v1443_v7 }
 0x114   :  { %503 = vmatprep.mubr.bf16.mxu0 %v1383_v1  ;;  %544 = vmatprep.mubr.bf16.mxu1 %v1383_v1 }
 0x116   :  { %474 = vmatpush1.bf16.msra.mxu0 %v1437_v6  ;;  %515 = vmatpush1.bf16.msra.mxu1 %v1450_v8 }
 0x117   :  { %475 = vmatprep.subr.bf16.mxu0 %v1456_v9  ;;  %516 = vmatprep.subr.bf16.mxu1 %v1467_v11 }
 0x11a   :  { %476 = vmatpush1.bf16.msra.mxu0 %v1462_v10  ;;  %517 = vmatpush1.bf16.msra.mxu1 %v1479_v13 }
 0x11b   :  { %477 = vmatprep.subr.bf16.mxu0 %v1473_v12  ;;  %518 = vmatprep.subr.bf16.mxu1 %v1485_v14 }
 0x11e   :  { %478 = vmatpush1.bf16.msra.mxu0 %v1491_v15  ;;  %519 = vmatpush1.bf16.msra.mxu1 %v1503_v17 }
 0x11f   :  { %479 = vmatprep.subr.bf16.mxu0 %v1497_v16  ;;  %520 = vmatprep.subr.bf16.mxu1 %v1509_v18 }
 0x122   :  { %480 = vmatpush1.bf16.msra.mxu0 %v1515_v19  ;;  %521 = vmatpush1.bf16.msra.mxu1 %v1527_v21 }
 0x123   :  { %481 = vmatprep.subr.bf16.mxu0 %v1521_v20  ;;  %522 = vmatprep.subr.bf16.mxu1 %v1533_v22 }
 0x126   :  { %482 = vmatpush1.bf16.msra.mxu0 %v1539_v23  ;;  %523 = vmatpush1.bf16.msra.mxu1 %v1551_v25 }
 0x127   :  { %483 = vmatprep.subr.bf16.mxu0 %v1545_v24  ;;  %524 = vmatprep.subr.bf16.mxu1 %v1557_v26 }
 0x12a   :  { %484 = vmatpush1.bf16.msra.mxu0 %v1563_v27  ;;  %525 = vmatpush1.bf16.msra.mxu1 %v1575_v29 }
 0x12b   :  { %485 = vmatprep.subr.bf16.mxu0 %v1569_v28  ;;  %526 = vmatprep.subr.bf16.mxu1 %v1581_v30 }
 0x12e   :  { %486 = vmatpush1.bf16.msra.mxu0 %v1587_v31  ;;  %527 = vmatpush1.bf16.msra.mxu1 %v1594_v32 }
 0x12f   :  { %586 = vmatprep.subr.bf16.mxu0 %v1408_v0  ;;  %627 = vmatprep.subr.bf16.mxu1 %v1421_v3 }
 0x1d1   :  { %v390_v43 = vpop.f32.mrf.mxu0  ;;  %v431_v45 = vpop.f32.mrf.mxu1 }
 0x1d2   :  { %v438_v46 = vadd.f32 %v390_v43, %v352_v41  ;;  %v440_v57 = vadd.f32 %v431_v45, %v354_v50  ;;  %v1204_v50 = vld [vmem:[%s2001_s0 + $0x28] sm:$0xff] }
 0x1d3   :  { %v392_v47 = vpop.f32.mrf.mxu0  ;;  %v433_v48 = vpop.f32.mrf.mxu1 }
 0x1d4   :  { %v442_v49 = vmul.f32 0.5, %v438_v46  ;;  %v439_v51 = vadd.f32 %v392_v47, %v353_v42  ;;  %v441_v59 = vadd.f32 %v433_v48, %v355_v58 }
 0x1d5   :  { %v394_v52 = vpop.f32.mrf.mxu0  ;;  %v435_v53 = vpop.f32.mrf.mxu1 }
 0x1d6   :  { %1281 = vtanh.f32 %v442_v49  ;;  %v443_v54 = vmul.f32 0.5, %v439_v51  ;;  %v445_v60 = vmul.f32 0.5, %v441_v59 }
 0x1d7   :  { %v395_v55 = vpop.f32.mrf.mxu0  ;;  %v436_v56 = vpop.f32.mrf.mxu1 }
 0x1d8   :  { %1283 = vtanh.f32 %v443_v54  ;;  %v469_v56 = vunpack.c.l.bf16 %v1204_v50 }
 0x1d9   :  { %1285 = vtanh.f32 %v440_v57 }
 0x1da   :  { %1287 = vtanh.f32 %v445_v60 }
 0x1e3   :  { %v1282_v61 = vpop.eup %1281 }
 0x1e4   :  { %v450_v62 = vadd.f32 1.0, %v1282_v61 }
 0x1e5   :  { %v1284_v63 = vpop.eup %1283 }
 0x1e6   :  { %v451_v34 = vmul.f32 0.5, %v450_v62  ;;  %v453_v35 = vadd.f32 1.0, %v1284_v63  ;;  %v1286_v36 = vpop.eup %1285 }
 0x1e7   :  { %v1288_v41 = vpop.eup %1287 }
 0x1e8   :  { %v454_v37 = vmul.f32 0.5, %v453_v35  ;;  %v452_v38 = vmul.f32 %v1286_v36, %v451_v34  ;;  %v457_v42 = vadd.f32 1.0, %v1288_v41  ;;  %v470_v34 = vunpack.c.h.bf16 %v1204_v50 }
 0x1ea   :  { %v455_v39 = vmul.f32 %v454_v37, %v1641_v33  ;;  %v458_v43 = vmul.f32 0.5, %v457_v42  ;;  %v1203_v33 = vld [vmem:[%s2001_s0 + $0x20] sm:$0xff] }
 0x1eb   :  { %v467_v47 = vunpack.c.l.bf16 %v1203_v33  ;;  %v468_v48 = vunpack.c.h.bf16 %v1203_v33 }
 0x1ec   :  { %v1688_v40 = vadd.f32 %v455_v39, %v452_v38 }
 0x1ee   :  { %1289 = vtanh.f32 %v1688_v40 }
 0x1fb   :  { %v1290_v44 = vpop.eup %1289 }
 0x1fc   :  { %v460_v45 = vmul.f32 %v1290_v44, %v458_v43 }
 0x1fe   :  { %v461_v46 = vpack.c.bf16 %v460_v45, %v460_v45 }
 0x200   :  { %1202 = vst [vmem:[%s2002_s2 + $0x4] sm:$0xf] %v461_v46  ;;  %504 = vmatmul.mubr.bf16.vlgmr.msra.gmra.mxu0 %v461_v46  ;;  %545 = vmatmul.mubr.bf16.vlgmr.msra.gmra.mxu1 %v461_v46 }
 0x201   :  { %587 = vmatpush1.bf16.msra.mxu0 %v1415_v2  ;;  %628 = vmatpush1.bf16.msra.mxu1 %v1426_v4 }
 0x202   :  { %588 = vmatprep.subr.bf16.mxu0 %v1432_v5  ;;  %629 = vmatprep.subr.bf16.mxu1 %v1443_v7 }
 0x203   :  { %618 = vmatprep.mubr.bf16.mxu0 %v1383_v1  ;;  %659 = vmatprep.mubr.bf16.mxu1 %v1383_v1 }
 0x205   :  { %589 = vmatpush1.bf16.msra.mxu0 %v1437_v6  ;;  %630 = vmatpush1.bf16.msra.mxu1 %v1450_v8 }
 0x206   :  { %590 = vmatprep.subr.bf16.mxu0 %v1456_v9  ;;  %631 = vmatprep.subr.bf16.mxu1 %v1467_v11 }
 0x209   :  { %591 = vmatpush1.bf16.msra.mxu0 %v1462_v10  ;;  %632 = vmatpush1.bf16.msra.mxu1 %v1479_v13 }
 0x20a   :  { %592 = vmatprep.subr.bf16.mxu0 %v1473_v12  ;;  %633 = vmatprep.subr.bf16.mxu1 %v1485_v14 }
 0x20d   :  { %593 = vmatpush1.bf16.msra.mxu0 %v1491_v15  ;;  %634 = vmatpush1.bf16.msra.mxu1 %v1503_v17 }
 0x20e   :  { %594 = vmatprep.subr.bf16.mxu0 %v1497_v16  ;;  %635 = vmatprep.subr.bf16.mxu1 %v1509_v18 }
 0x211   :  { %595 = vmatpush1.bf16.msra.mxu0 %v1515_v19  ;;  %636 = vmatpush1.bf16.msra.mxu1 %v1527_v21 }
 0x212   :  { %596 = vmatprep.subr.bf16.mxu0 %v1521_v20  ;;  %637 = vmatprep.subr.bf16.mxu1 %v1533_v22 }
 0x215   :  { %597 = vmatpush1.bf16.msra.mxu0 %v1539_v23  ;;  %638 = vmatpush1.bf16.msra.mxu1 %v1551_v25 }
 0x216   :  { %598 = vmatprep.subr.bf16.mxu0 %v1545_v24  ;;  %639 = vmatprep.subr.bf16.mxu1 %v1557_v26 }
 0x219   :  { %599 = vmatpush1.bf16.msra.mxu0 %v1563_v27  ;;  %640 = vmatpush1.bf16.msra.mxu1 %v1575_v29 }
 0x21a   :  { %600 = vmatprep.subr.bf16.mxu0 %v1569_v28  ;;  %641 = vmatprep.subr.bf16.mxu1 %v1581_v30 }
 0x21d   :  { %601 = vmatpush1.bf16.msra.mxu0 %v1587_v31  ;;  %642 = vmatpush1.bf16.msra.mxu1 %v1594_v32 }
 0x21e   :  { %701 = vmatprep.subr.bf16.mxu0 %v1408_v0  ;;  %742 = vmatprep.subr.bf16.mxu1 %v1421_v3 }
 0x2c0   :  { %v505_v49 = vpop.f32.mrf.mxu0  ;;  %v546_v51 = vpop.f32.mrf.mxu1 }
 0x2c1   :  { %v553_v52 = vadd.f32 %v505_v49, %v467_v47  ;;  %v555_v63 = vadd.f32 %v546_v51, %v469_v56  ;;  %v1207_v56 = vld [vmem:[%s2001_s0 + $0x38] sm:$0xff] }
 0x2c2   :  { %v507_v53 = vpop.f32.mrf.mxu0  ;;  %v548_v54 = vpop.f32.mrf.mxu1 }
 0x2c3   :  { %v557_v55 = vmul.f32 0.5, %v553_v52  ;;  %v554_v57 = vadd.f32 %v507_v53, %v468_v48  ;;  %v556_v35 = vadd.f32 %v548_v54, %v470_v34 }
 0x2c4   :  { %v509_v58 = vpop.f32.mrf.mxu0  ;;  %v550_v59 = vpop.f32.mrf.mxu1 }
 0x2c5   :  { %1291 = vtanh.f32 %v557_v55  ;;  %v558_v60 = vmul.f32 0.5, %v554_v57  ;;  %v560_v37 = vmul.f32 0.5, %v556_v35 }
 0x2c6   :  { %v510_v61 = vpop.f32.mrf.mxu0  ;;  %v551_v62 = vpop.f32.mrf.mxu1 }
 0x2c7   :  { %1293 = vtanh.f32 %v558_v60  ;;  %v584_v62 = vunpack.c.l.bf16 %v1207_v56 }
 0x2c8   :  { %1295 = vtanh.f32 %v555_v63 }
 0x2c9   :  { %1297 = vtanh.f32 %v560_v37 }
 0x2d2   :  { %v1292_v36 = vpop.eup %1291 }
 0x2d3   :  { %v565_v38 = vadd.f32 1.0, %v1292_v36 }
 0x2d4   :  { %v1294_v39 = vpop.eup %1293 }
 0x2d5   :  { %v566_v41 = vmul.f32 0.5, %v565_v38  ;;  %v568_v42 = vadd.f32 1.0, %v1294_v39  ;;  %v1296_v44 = vpop.eup %1295 }
 0x2d6   :  { %v1298_v47 = vpop.eup %1297 }
 0x2d7   :  { %v569_v43 = vmul.f32 0.5, %v568_v42  ;;  %v567_v45 = vmul.f32 %v1296_v44, %v566_v41  ;;  %v572_v48 = vadd.f32 1.0, %v1298_v47  ;;  %v585_v41 = vunpack.c.h.bf16 %v1207_v56 }
 0x2d9   :  { %v570_v46 = vmul.f32 %v569_v43, %v1688_v40  ;;  %v573_v49 = vmul.f32 0.5, %v572_v48  ;;  %v1206_v40 = vld [vmem:[%s2001_s0 + $0x30] sm:$0xff] }
 0x2da   :  { %v582_v53 = vunpack.c.l.bf16 %v1206_v40  ;;  %v583_v54 = vunpack.c.h.bf16 %v1206_v40 }
 0x2db   :  { %v1735_v33 = vadd.f32 %v570_v46, %v567_v45 }
 0x2dd   :  { %1299 = vtanh.f32 %v1735_v33 }
 0x2ea   :  { %v1300_v50 = vpop.eup %1299 }
 0x2eb   :  { %v575_v51 = vmul.f32 %v1300_v50, %v573_v49 }
 0x2ed   :  { %v576_v52 = vpack.c.bf16 %v575_v51, %v575_v51 }
 0x2ef   :  { %1205 = vst [vmem:[%s2002_s2 + $0x8] sm:$0xf] %v576_v52  ;;  %619 = vmatmul.mubr.bf16.vlgmr.msra.gmra.mxu0 %v576_v52  ;;  %660 = vmatmul.mubr.bf16.vlgmr.msra.gmra.mxu1 %v576_v52 }
 0x2f0   :  { %702 = vmatpush1.bf16.msra.mxu0 %v1415_v2  ;;  %743 = vmatpush1.bf16.msra.mxu1 %v1426_v4 }
 0x2f1   :  { %703 = vmatprep.subr.bf16.mxu0 %v1432_v5  ;;  %744 = vmatprep.subr.bf16.mxu1 %v1443_v7 }
 0x2f2   :  { %733 = vmatprep.mubr.bf16.mxu0 %v1383_v1  ;;  %774 = vmatprep.mubr.bf16.mxu1 %v1383_v1 }
 0x2f4   :  { %704 = vmatpush1.bf16.msra.mxu0 %v1437_v6  ;;  %745 = vmatpush1.bf16.msra.mxu1 %v1450_v8 }
 0x2f5   :  { %705 = vmatprep.subr.bf16.mxu0 %v1456_v9  ;;  %746 = vmatprep.subr.bf16.mxu1 %v1467_v11 }
 0x2f8   :  { %706 = vmatpush1.bf16.msra.mxu0 %v1462_v10  ;;  %747 = vmatpush1.bf16.msra.mxu1 %v1479_v13 }
 0x2f9   :  { %707 = vmatprep.subr.bf16.mxu0 %v1473_v12  ;;  %748 = vmatprep.subr.bf16.mxu1 %v1485_v14 }
 0x2fc   :  { %708 = vmatpush1.bf16.msra.mxu0 %v1491_v15  ;;  %749 = vmatpush1.bf16.msra.mxu1 %v1503_v17 }
 0x2fd   :  { %709 = vmatprep.subr.bf16.mxu0 %v1497_v16  ;;  %750 = vmatprep.subr.bf16.mxu1 %v1509_v18 }
 0x300   :  { %710 = vmatpush1.bf16.msra.mxu0 %v1515_v19  ;;  %751 = vmatpush1.bf16.msra.mxu1 %v1527_v21 }
 0x301   :  { %711 = vmatprep.subr.bf16.mxu0 %v1521_v20  ;;  %752 = vmatprep.subr.bf16.mxu1 %v1533_v22 }
 0x304   :  { %712 = vmatpush1.bf16.msra.mxu0 %v1539_v23  ;;  %753 = vmatpush1.bf16.msra.mxu1 %v1551_v25 }
 0x305   :  { %713 = vmatprep.subr.bf16.mxu0 %v1545_v24  ;;  %754 = vmatprep.subr.bf16.mxu1 %v1557_v26 }
 0x308   :  { %714 = vmatpush1.bf16.msra.mxu0 %v1563_v27  ;;  %755 = vmatpush1.bf16.msra.mxu1 %v1575_v29 }
 0x309   :  { %715 = vmatprep.subr.bf16.mxu0 %v1569_v28  ;;  %756 = vmatprep.subr.bf16.mxu1 %v1581_v30 }
 0x30c   :  { %716 = vmatpush1.bf16.msra.mxu0 %v1587_v31  ;;  %757 = vmatpush1.bf16.msra.mxu1 %v1594_v32 }
 0x30d   :  { %816 = vmatprep.subr.bf16.mxu0 %v1408_v0  ;;  %857 = vmatprep.subr.bf16.mxu1 %v1421_v3 }
 0x3af   :  { %v620_v55 = vpop.f32.mrf.mxu0  ;;  %v661_v57 = vpop.f32.mrf.mxu1 }
 0x3b0   :  { %v668_v58 = vadd.f32 %v620_v55, %v582_v53  ;;  %v670_v39 = vadd.f32 %v661_v57, %v584_v62  ;;  %v1210_v62 = vld [vmem:[%s2001_s0 + $0x48] sm:$0xff] }
 0x3b1   :  { %v622_v59 = vpop.f32.mrf.mxu0  ;;  %v663_v60 = vpop.f32.mrf.mxu1 }
 0x3b2   :  { %v672_v61 = vmul.f32 0.5, %v668_v58  ;;  %v669_v63 = vadd.f32 %v622_v59, %v583_v54  ;;  %v671_v42 = vadd.f32 %v663_v60, %v585_v41 }
 0x3b3   :  { %v624_v34 = vpop.f32.mrf.mxu0  ;;  %v665_v35 = vpop.f32.mrf.mxu1 }
 0x3b4   :  { %1301 = vtanh.f32 %v672_v61  ;;  %v673_v37 = vmul.f32 0.5, %v669_v63  ;;  %v675_v43 = vmul.f32 0.5, %v671_v42 }
 0x3b5   :  { %v625_v36 = vpop.f32.mrf.mxu0  ;;  %v666_v38 = vpop.f32.mrf.mxu1 }
 0x3b6   :  { %1303 = vtanh.f32 %v673_v37  ;;  %v699_v38 = vunpack.c.l.bf16 %v1210_v62 }
 0x3b7   :  { %1305 = vtanh.f32 %v670_v39 }
 0x3b8   :  { %1307 = vtanh.f32 %v675_v43 }
 0x3c1   :  { %v1302_v44 = vpop.eup %1301 }
 0x3c2   :  { %v680_v45 = vadd.f32 1.0, %v1302_v44 }
 0x3c3   :  { %v1304_v46 = vpop.eup %1303 }
 0x3c4   :  { %v681_v47 = vmul.f32 0.5, %v680_v45  ;;  %v683_v48 = vadd.f32 1.0, %v1304_v46  ;;  %v1306_v50 = vpop.eup %1305  ;;  %v700_v45 = vunpack.c.h.bf16 %v1210_v62 }
 0x3c5   :  { %v1308_v53 = vpop.eup %1307 }
 0x3c6   :  { %v684_v49 = vmul.f32 0.5, %v683_v48  ;;  %v682_v51 = vmul.f32 %v1306_v50, %v681_v47  ;;  %v687_v54 = vadd.f32 1.0, %v1308_v53 }
 0x3c8   :  { %v685_v52 = vmul.f32 %v684_v49, %v1735_v33  ;;  %v688_v55 = vmul.f32 0.5, %v687_v54  ;;  %v1209_v33 = vld [vmem:[%s2001_s0 + $0x40] sm:$0xff] }
 0x3c9   :  { %v697_v59 = vunpack.c.l.bf16 %v1209_v33  ;;  %v698_v60 = vunpack.c.h.bf16 %v1209_v33 }
 0x3ca   :  { %v1782_v40 = vadd.f32 %v685_v52, %v682_v51 }
 0x3cc   :  { %1309 = vtanh.f32 %v1782_v40 }
 0x3d9   :  { %v1310_v56 = vpop.eup %1309 }
 0x3da   :  { %v690_v57 = vmul.f32 %v1310_v56, %v688_v55 }
 0x3dc   :  { %v691_v58 = vpack.c.bf16 %v690_v57, %v690_v57 }
 0x3de   :  { %1208 = vst [vmem:[%s2002_s2 + $0xc] sm:$0xf] %v691_v58  ;;  %734 = vmatmul.mubr.bf16.vlgmr.msra.gmra.mxu0 %v691_v58  ;;  %775 = vmatmul.mubr.bf16.vlgmr.msra.gmra.mxu1 %v691_v58 }
 0x3df   :  { %817 = vmatpush1.bf16.msra.mxu0 %v1415_v2  ;;  %858 = vmatpush1.bf16.msra.mxu1 %v1426_v4 }
 0x3e0   :  { %818 = vmatprep.subr.bf16.mxu0 %v1432_v5  ;;  %859 = vmatprep.subr.bf16.mxu1 %v1443_v7 }
 0x3e1   :  { %848 = vmatprep.mubr.bf16.mxu0 %v1383_v1  ;;  %889 = vmatprep.mubr.bf16.mxu1 %v1383_v1 }
 0x3e3   :  { %819 = vmatpush1.bf16.msra.mxu0 %v1437_v6  ;;  %860 = vmatpush1.bf16.msra.mxu1 %v1450_v8 }
 0x3e4   :  { %820 = vmatprep.subr.bf16.mxu0 %v1456_v9  ;;  %861 = vmatprep.subr.bf16.mxu1 %v1467_v11 }
 0x3e7   :  { %821 = vmatpush1.bf16.msra.mxu0 %v1462_v10  ;;  %862 = vmatpush1.bf16.msra.mxu1 %v1479_v13 }
 0x3e8   :  { %822 = vmatprep.subr.bf16.mxu0 %v1473_v12  ;;  %863 = vmatprep.subr.bf16.mxu1 %v1485_v14 }
 0x3eb   :  { %823 = vmatpush1.bf16.msra.mxu0 %v1491_v15  ;;  %864 = vmatpush1.bf16.msra.mxu1 %v1503_v17 }
 0x3ec   :  { %824 = vmatprep.subr.bf16.mxu0 %v1497_v16  ;;  %865 = vmatprep.subr.bf16.mxu1 %v1509_v18 }
 0x3ef   :  { %825 = vmatpush1.bf16.msra.mxu0 %v1515_v19  ;;  %866 = vmatpush1.bf16.msra.mxu1 %v1527_v21 }
 0x3f0   :  { %826 = vmatprep.subr.bf16.mxu0 %v1521_v20  ;;  %867 = vmatprep.subr.bf16.mxu1 %v1533_v22 }
 0x3f3   :  { %827 = vmatpush1.bf16.msra.mxu0 %v1539_v23  ;;  %868 = vmatpush1.bf16.msra.mxu1 %v1551_v25 }
 0x3f4   :  { %828 = vmatprep.subr.bf16.mxu0 %v1545_v24  ;;  %869 = vmatprep.subr.bf16.mxu1 %v1557_v26 }
 0x3f7   :  { %829 = vmatpush1.bf16.msra.mxu0 %v1563_v27  ;;  %870 = vmatpush1.bf16.msra.mxu1 %v1575_v29 }
 0x3f8   :  { %830 = vmatprep.subr.bf16.mxu0 %v1569_v28  ;;  %871 = vmatprep.subr.bf16.mxu1 %v1581_v30 }
 0x3fb   :  { %831 = vmatpush1.bf16.msra.mxu0 %v1587_v31  ;;  %872 = vmatpush1.bf16.msra.mxu1 %v1594_v32 }
 0x3fc   :  { %931 = vmatprep.subr.bf16.mxu0 %v1408_v0  ;;  %972 = vmatprep.subr.bf16.mxu1 %v1421_v3 }
 0x49e   :  { %v735_v61 = vpop.f32.mrf.mxu0  ;;  %v776_v63 = vpop.f32.mrf.mxu1 }
 0x49f   :  { %v783_v34 = vadd.f32 %v735_v61, %v697_v59  ;;  %v785_v44 = vadd.f32 %v776_v63, %v699_v38 }
 0x4a0   :  { %v737_v35 = vpop.f32.mrf.mxu0  ;;  %v778_v37 = vpop.f32.mrf.mxu1 }
 0x4a1   :  { %v787_v36 = vmul.f32 0.5, %v783_v34  ;;  %v784_v0 = vadd.f32 %v737_v35, %v698_v60  ;;  %v786_v46 = vadd.f32 %v778_v37, %v700_v45  ;;  %v1358_v45 = vld [vmem:[%s2000_s1 + $0xc8] ss:$16 sps:$4 sm:$0xff]  }
 0x4a2   :  { %v739_v39 = vpop.f32.mrf.mxu0  ;;  %v780_v3 = vpop.f32.mrf.mxu1 }
 0x4a3   :  { %1311 = vtanh.f32 %v787_v36  ;;  %v788_v41 = vmul.f32 0.5, %v784_v0  ;;  %v790_v47 = vmul.f32 0.5, %v786_v46  ;;  %v1353_v3 = vld [vmem:[%s2000_s1 + $0xe0] ss:$16 sps:$4 sm:$0xff]   ;;  %v1359_v46 = vld [vmem:[%s2000_s1 + $0xa4] ss:$16 sps:$4 sm:$0xff]  }
 0x4a4   :  { %v740_v42 = vpop.f32.mrf.mxu0  ;;  %v781_v43 = vpop.f32.mrf.mxu1 }
 0x4a5   :  { %1313 = vtanh.f32 %v788_v41  ;;  %v1354_v41 = vld [vmem:[%s2000_s1 + $0xe8] ss:$16 sps:$4 sm:$0xff]   ;;  %v1355_v42 = vld [vmem:[%s2000_s1 + $0xc4] ss:$16 sps:$4 sm:$0xff]   ;;  %v1356_v43 = vld [vmem:[%s2000_s1 + $0xcc] ss:$16 sps:$4 sm:$0xff]  }
 0x4a6   :  { %1315 = vtanh.f32 %v785_v44  ;;  %v1357_v44 = vld [vmem:[%s2000_s1 + $0xc0] ss:$16 sps:$4 sm:$0xff]  }
 0x4a7   :  { %1317 = vtanh.f32 %v790_v47  ;;  %v1360_v47 = vld [vmem:[%s2000_s1 + $0xac] ss:$16 sps:$4 sm:$0xff]  }
 0x4b0   :  { %v1312_v48 = vpop.eup %1311 }
 0x4b1   :  { %v795_v49 = vadd.f32 1.0, %v1312_v48  ;;  %v1362_v48 = vld [vmem:[%s2000_s1 + $0xa8] ss:$16 sps:$4 sm:$0xff]  }
 0x4b2   :  { %v1314_v50 = vpop.eup %1313 }
 0x4b3   :  { %v796_v51 = vmul.f32 0.5, %v795_v49  ;;  %v798_v52 = vadd.f32 1.0, %v1314_v50  ;;  %v1316_v54 = vpop.eup %1315  ;;  %v1363_v49 = vld [vmem:[%s2000_s1 + $0x84] ss:$16 sps:$4 sm:$0xff]   ;;  %v1364_v50 = vld [vmem:[%s2000_s1 + $0x8c] ss:$16 sps:$4 sm:$0xff]  }
 0x4b4   :  { %v1318_v58 = vpop.eup %1317 }
 0x4b5   :  { %v799_v53 = vmul.f32 0.5, %v798_v52  ;;  %v797_v55 = vmul.f32 %v1316_v54, %v796_v51  ;;  %v802_v33 = vadd.f32 1.0, %v1318_v58  ;;  %v1365_v51 = vld [vmem:[%s2000_s1 + $0x80] ss:$16 sps:$4 sm:$0xff]   ;;  %v1366_v52 = vld [vmem:[%s2000_s1 + $0x88] ss:$16 sps:$4 sm:$0xff]  }
 0x4b6   :  { %v1368_v54 = vld [vmem:[%s2000_s1 + $0x6c] ss:$16 sps:$4 sm:$0xff]  }
 0x4b7   :  { %v800_v56 = vmul.f32 %v799_v53, %v1782_v40  ;;  %v803_v59 = vmul.f32 0.5, %v802_v33  ;;  %v1367_v53 = vld [vmem:[%s2000_s1 + $0x64] ss:$16 sps:$4 sm:$0xff]   ;;  %v1372_v58 = vld [vmem:[%s2000_s1 + $0x4c] ss:$16 sps:$4 sm:$0xff]  }
 0x4b8   :  { %v1373_v33 = vld [vmem:[%s2000_s1 + $0x40] ss:$16 sps:$4 sm:$0xff]  }
 0x4b9   :  { %v1829_v57 = vadd.f32 %v800_v56, %v797_v55  ;;  %v1369_v55 = vld [vmem:[%s2000_s1 + $0x60] ss:$16 sps:$4 sm:$0xff]   ;;  %v1370_v56 = vld [vmem:[%s2000_s1 + $0x68] ss:$16 sps:$4 sm:$0xff]  }
 0x4bb   :  { %1319 = vtanh.f32 %v1829_v57 }
 0x4c8   :  { %v1320_v60 = vpop.eup %1319 }
 0x4c9   :  { %v805_v61 = vmul.f32 %v1320_v60, %v803_v59  ;;  %v1374_v59 = vld [vmem:[%s2000_s1 + $0x48] ss:$16 sps:$4 sm:$0xff]   ;;  %v1375_v60 = vld [vmem:[%s2000_s1 + $0x24] ss:$16 sps:$4 sm:$0xff]  }
 0x4cb   :  { %v806_v62 = vpack.c.bf16 %v805_v61, %v805_v61  ;;  %v1376_v61 = vld [vmem:[%s2000_s1 + $0x2c] ss:$16 sps:$4 sm:$0xff]  }
 0x4cd   :  { %1211 = vst [vmem:[%s2002_s2 + $0x10] sm:$0xf] %v806_v62  ;;  %849 = vmatmul.mubr.bf16.vlgmr.msra.gmra.mxu0 %v806_v62  ;;  %890 = vmatmul.mubr.bf16.vlgmr.msra.gmra.mxu1 %v806_v62  ;;  %v1377_v62 = vld [vmem:[%s2000_s1 + $0x20] ss:$16 sps:$4 sm:$0xff]  }
 0x4ce   :  { %932 = vmatpush1.bf16.msra.mxu0 %v1415_v2  ;;  %973 = vmatpush1.bf16.msra.mxu1 %v1426_v4  ;;  %v1351_v2 = vld [vmem:[%s2000_s1 + $0xe4] ss:$16 sps:$4 sm:$0xff]   ;;  %v1352_v4 = vld [vmem:[%s2000_s1 + $0xec] ss:$16 sps:$4 sm:$0xff]  }
 0x4cf   :  { %933 = vmatprep.subr.bf16.mxu0 %v1432_v5  ;;  %974 = vmatprep.subr.bf16.mxu1 %v1443_v7  ;;  %v1212_v5 = vld [vmem:[%s2001_s0 + $0x50] sm:$0xff] }
 0x4d0   :  { %963 = vmatprep.mubr.bf16.mxu0 %v1383_v1  ;;  %1004 = vmatprep.mubr.bf16.mxu1 %v1383_v1  ;;  %v813_v7 = vunpack.c.h.bf16 %v1212_v5 }
 0x4d2   :  { %934 = vmatpush1.bf16.msra.mxu0 %v1437_v6  ;;  %975 = vmatpush1.bf16.msra.mxu1 %v1450_v8  ;;  %v812_v6 = vunpack.c.l.bf16 %v1212_v5  ;;  %v1380_v5 = vld [vmem:[%s2000_s1 + $0xc] ss:$16 sps:$4 sm:$0xff]  }
 0x4d3   :  { %935 = vmatprep.subr.bf16.mxu0 %v1456_v9  ;;  %976 = vmatprep.subr.bf16.mxu1 %v1467_v11  ;;  %v1213_v9 = vld [vmem:[%s2001_s0 + $0x58] sm:$0xff] }
 0x4d6   :  { %936 = vmatpush1.bf16.msra.mxu0 %v1462_v10  ;;  %977 = vmatpush1.bf16.msra.mxu1 %v1479_v13 }
 0x4d7   :  { %937 = vmatprep.subr.bf16.mxu0 %v1473_v12  ;;  %978 = vmatprep.subr.bf16.mxu1 %v1485_v14 }
 0x4da   :  { %938 = vmatpush1.bf16.msra.mxu0 %v1491_v15  ;;  %979 = vmatpush1.bf16.msra.mxu1 %v1503_v17  ;;  %v814_v15 = vunpack.c.l.bf16 %v1213_v9 }
 0x4db   :  { %939 = vmatprep.subr.bf16.mxu0 %v1497_v16  ;;  %980 = vmatprep.subr.bf16.mxu1 %v1509_v18 }
 0x4de   :  { %940 = vmatpush1.bf16.msra.mxu0 %v1515_v19  ;;  %981 = vmatpush1.bf16.msra.mxu1 %v1527_v21 }
 0x4df   :  { %941 = vmatprep.subr.bf16.mxu0 %v1521_v20  ;;  %982 = vmatprep.subr.bf16.mxu1 %v1533_v22 }
 0x4e2   :  { %942 = vmatpush1.bf16.msra.mxu0 %v1539_v23  ;;  %983 = vmatpush1.bf16.msra.mxu1 %v1551_v25  ;;  %v815_v23 = vunpack.c.h.bf16 %v1213_v9 }
 0x4e3   :  { %943 = vmatprep.subr.bf16.mxu0 %v1545_v24  ;;  %984 = vmatprep.subr.bf16.mxu1 %v1557_v26 }
 0x4e6   :  { %944 = vmatpush1.bf16.msra.mxu0 %v1563_v27  ;;  %985 = vmatpush1.bf16.msra.mxu1 %v1575_v29 }
 0x4e7   :  { %945 = vmatprep.subr.bf16.mxu0 %v1569_v28  ;;  %986 = vmatprep.subr.bf16.mxu1 %v1581_v30 }
 0x4ea   :  { %946 = vmatpush1.bf16.msra.mxu0 %v1587_v31  ;;  %987 = vmatpush1.bf16.msra.mxu1 %v1594_v32 }
 0x4eb   :  { %1046 = vmatprep.subr.bf16.mxu0 %v1351_v2  ;;  %1087 = vmatprep.subr.bf16.mxu1 %v1352_v4  ;;  %v1378_v2 = vld [vmem:[%s2000_s1 + $0x28] ss:$16 sps:$4 sm:$0xff]   ;;  %v1379_v4 = vld [vmem:[%s2000_s1 + $0x4] ss:$16 sps:$4 sm:$0xff]  }
 0x58d   :  { %v850_v8 = vpop.f32.mrf.mxu0  ;;  %v891_v10 = vpop.f32.mrf.mxu1 }
 0x58e   :  { %v898_v11 = vadd.f32 %v850_v8, %v812_v6  ;;  %v900_v22 = vadd.f32 %v891_v10, %v814_v15  ;;  %v1381_v6 = vld [vmem:[%s2000_s1] ss:$16 sps:$4 sm:$0xff]  }
 0x58f   :  { %v852_v12 = vpop.f32.mrf.mxu0  ;;  %v893_v13 = vpop.f32.mrf.mxu1  ;;  %v1215_v8 = vld [vmem:[%s2001_s0 + $0x60] sm:$0xff] }
 0x590   :  { %v902_v14 = vmul.f32 0.5, %v898_v11  ;;  %v899_v16 = vadd.f32 %v852_v12, %v813_v7  ;;  %v901_v24 = vadd.f32 %v893_v13, %v815_v23  ;;  %v1382_v7 = vld [vmem:[%s2000_s1 + $0x8] ss:$16 sps:$4 sm:$0xff]   ;;  %v927_v9 = vunpack.c.l.bf16 %v1215_v8 }
 0x591   :  { %v854_v17 = vpop.f32.mrf.mxu0  ;;  %v895_v18 = vpop.f32.mrf.mxu1  ;;  %v928_v10 = vunpack.c.h.bf16 %v1215_v8  ;;  %v1216_v12 = vld [vmem:[%s2001_s0 + $0x68] sm:$0xff] }
 0x592   :  { %1321 = vtanh.f32 %v902_v14  ;;  %v903_v19 = vmul.f32 0.5, %v899_v16  ;;  %v905_v25 = vmul.f32 0.5, %v901_v24  ;;  %v929_v18 = vunpack.c.l.bf16 %v1216_v12 }
 0x593   :  { %v855_v20 = vpop.f32.mrf.mxu0  ;;  %v896_v21 = vpop.f32.mrf.mxu1 }
 0x594   :  { %1323 = vtanh.f32 %v903_v19 }
 0x595   :  { %1325 = vtanh.f32 %v900_v22 }
 0x596   :  { %1327 = vtanh.f32 %v905_v25 }
 0x59f   :  { %v1322_v26 = vpop.eup %1321 }
 0x5a0   :  { %v910_v27 = vadd.f32 1.0, %v1322_v26  ;;  %v930_v26 = vunpack.c.h.bf16 %v1216_v12 }
 0x5a1   :  { %v1324_v28 = vpop.eup %1323 }
 0x5a2   :  { %v911_v29 = vmul.f32 0.5, %v910_v27  ;;  %v913_v30 = vadd.f32 1.0, %v1324_v28  ;;  %v1326_v32 = vpop.eup %1325 }
 0x5a3   :  { %v1328_v35 = vpop.eup %1327 }
 0x5a4   :  { %v914_v31 = vmul.f32 0.5, %v913_v30  ;;  %v912_v40 = vmul.f32 %v1326_v32, %v911_v29  ;;  %v917_v37 = vadd.f32 1.0, %v1328_v35 }
 0x5a6   :  { %v915_v63 = vmul.f32 %v914_v31, %v1829_v57  ;;  %v918_v36 = vmul.f32 0.5, %v917_v37  ;;  %v1371_v57 = vld [vmem:[%s2000_s1 + $0x44] ss:$16 sps:$4 sm:$0xff]  }
 0x5a8   :  { %v1880_v34 = vadd.f32 %v915_v63, %v912_v40 }
 0x5aa   :  { %1329 = vtanh.f32 %v1880_v34 }
 0x5b7   :  { %v1330_v38 = vpop.eup %1329 }
 0x5b8   :  { %v920_v0 = vmul.f32 %v1330_v38, %v918_v36 }
 0x5ba   :  { %v921_v39 = vpack.c.bf16 %v920_v0, %v920_v0 }
 0x5bc   :  { %1214 = vst [vmem:[%s2002_s2 + $0x14] sm:$0xf] %v921_v39  ;;  %964 = vmatmul.mubr.bf16.vlgmr.msra.gmra.mxu0 %v921_v39  ;;  %1005 = vmatmul.mubr.bf16.vlgmr.msra.gmra.mxu1 %v921_v39 }
 0x5bd   :  { %1047 = vmatpush1.bf16.msra.mxu0 %v1353_v3  ;;  %1088 = vmatpush1.bf16.msra.mxu1 %v1354_v41 }
 0x5be   :  { %1048 = vmatprep.subr.bf16.mxu0 %v1355_v42  ;;  %1089 = vmatprep.subr.bf16.mxu1 %v1356_v43 }
 0x5bf   :  { %1078 = vmatprep.mubr.bf16.mxu0 %v1383_v1  ;;  %1119 = vmatprep.mubr.bf16.mxu1 %v1383_v1  ;;  %v1361_v1 = vld [vmem:[%s2000_s1 + $0xa0] ss:$16 sps:$4 sm:$0xff]  }
 0x5c1   :  { %1049 = vmatpush1.bf16.msra.mxu0 %v1357_v44  ;;  %1090 = vmatpush1.bf16.msra.mxu1 %v1358_v45  ;;  %v1218_v44 = vld [vmem:[%s2001_s0 + $0x70] sm:$0xff] }
 0x5c2   :  { %1050 = vmatprep.subr.bf16.mxu0 %v1359_v46  ;;  %1091 = vmatprep.subr.bf16.mxu1 %v1360_v47  ;;  %v1042_v45 = vunpack.c.l.bf16 %v1218_v44  ;;  %v1219_v47 = vld [vmem:[%s2001_s0 + $0x78] sm:$0xff] }
 0x5c5   :  { %1051 = vmatpush1.bf16.msra.mxu0 %v1361_v1  ;;  %1092 = vmatpush1.bf16.msra.mxu1 %v1362_v48 }
 0x5c6   :  { %1052 = vmatprep.subr.bf16.mxu0 %v1363_v49  ;;  %1093 = vmatprep.subr.bf16.mxu1 %v1364_v50 }
 0x5c9   :  { %1053 = vmatpush1.bf16.msra.mxu0 %v1365_v51  ;;  %1094 = vmatpush1.bf16.msra.mxu1 %v1366_v52  ;;  %v1044_v52 = vunpack.c.l.bf16 %v1219_v47 }
 0x5ca   :  { %1054 = vmatprep.subr.bf16.mxu0 %v1367_v53  ;;  %1095 = vmatprep.subr.bf16.mxu1 %v1368_v54 }
 0x5cd   :  { %1055 = vmatpush1.bf16.msra.mxu0 %v1369_v55  ;;  %1096 = vmatpush1.bf16.msra.mxu1 %v1370_v56 }
 0x5ce   :  { %1056 = vmatprep.subr.bf16.mxu0 %v1371_v57  ;;  %1097 = vmatprep.subr.bf16.mxu1 %v1372_v58 }
 0x5d1   :  { %1057 = vmatpush1.bf16.msra.mxu0 %v1373_v33  ;;  %1098 = vmatpush1.bf16.msra.mxu1 %v1374_v59  ;;  %v1045_v59 = vunpack.c.h.bf16 %v1219_v47 }
 0x5d2   :  { %1058 = vmatprep.subr.bf16.mxu0 %v1375_v60  ;;  %1099 = vmatprep.subr.bf16.mxu1 %v1376_v61 }
 0x5d5   :  { %1059 = vmatpush1.bf16.msra.mxu0 %v1377_v62  ;;  %1100 = vmatpush1.bf16.msra.mxu1 %v1378_v2 }
 0x5d6   :  { %1060 = vmatprep.subr.bf16.mxu0 %v1379_v4  ;;  %1101 = vmatprep.subr.bf16.mxu1 %v1380_v5 }
 0x5d9   :  { %1061 = vmatpush1.bf16.msra.mxu0 %v1381_v6  ;;  %1102 = vmatpush1.bf16.msra.mxu1 %v1382_v7 }
 0x67c   :  { %v965_v11 = vpop.f32.mrf.mxu0  ;;  %v1006_v13 = vpop.f32.mrf.mxu1 }
 0x67d   :  { %v1013_v14 = vadd.f32 %v965_v11, %v927_v9  ;;  %v1015_v25 = vadd.f32 %v1006_v13, %v929_v18 }
 0x67e   :  { %v967_v15 = vpop.f32.mrf.mxu0  ;;  %v1008_v16 = vpop.f32.mrf.mxu1 }
 0x67f   :  { %v1017_v17 = vmul.f32 0.5, %v1013_v14  ;;  %v1014_v19 = vadd.f32 %v967_v15, %v928_v10  ;;  %v1016_v27 = vadd.f32 %v1008_v16, %v930_v26 }
 0x680   :  { %v969_v20 = vpop.f32.mrf.mxu0  ;;  %v1010_v21 = vpop.f32.mrf.mxu1 }
 0x681   :  { %1331 = vtanh.f32 %v1017_v17  ;;  %v1018_v22 = vmul.f32 0.5, %v1014_v19  ;;  %v1020_v28 = vmul.f32 0.5, %v1016_v27 }
 0x682   :  { %v970_v23 = vpop.f32.mrf.mxu0  ;;  %v1011_v24 = vpop.f32.mrf.mxu1 }
 0x683   :  { %1333 = vtanh.f32 %v1018_v22 }
 0x684   :  { %1335 = vtanh.f32 %v1015_v25 }
 0x685   :  { %1337 = vtanh.f32 %v1020_v28 }
 0x68e   :  { %v1332_v29 = vpop.eup %1331 }
 0x68f   :  { %v1025_v30 = vadd.f32 1.0, %v1332_v29 }
 0x690   :  { %v1334_v31 = vpop.eup %1333 }
 0x691   :  { %v1026_v32 = vmul.f32 0.5, %v1025_v30  ;;  %v1028_v40 = vadd.f32 1.0, %v1334_v31  ;;  %v1336_v35 = vpop.eup %1335 }
 0x692   :  { %v1338_v0 = vpop.eup %1337 }
 0x693   :  { %v1029_v63 = vmul.f32 0.5, %v1028_v40  ;;  %v1027_v37 = vmul.f32 %v1336_v35, %v1026_v32  ;;  %v1032_v39 = vadd.f32 1.0, %v1338_v0 }
 0x695   :  { %v1030_v36 = vmul.f32 %v1029_v63, %v1880_v34  ;;  %v1033_v3 = vmul.f32 0.5, %v1032_v39  ;;  %v1043_v34 = vunpack.c.h.bf16 %v1218_v44 }
 0x697   :  { %v1031_v38 = vadd.f32 %v1030_v36, %v1027_v37 }
 0x699   :  { %1339 = vtanh.f32 %v1031_v38 }
 0x6a6   :  { %v1340_v41 = vpop.eup %1339 }
 0x6a7   :  { %v1035_v42 = vmul.f32 %v1340_v41, %v1033_v3 }
 0x6a9   :  { %v1036_v43 = vpack.c.bf16 %v1035_v42, %v1035_v42 }
 0x6ab   :  { %1217 = vst [vmem:[%s2002_s2 + $0x18] sm:$0xf] %v1036_v43  ;;  %1079 = vmatmul.mubr.bf16.vlgmr.msra.gmra.mxu0 %v1036_v43  ;;  %1120 = vmatmul.mubr.bf16.vlgmr.msra.gmra.mxu1 %v1036_v43 }
 0x76b   :  { %v1080_v46 = vpop.f32.mrf.mxu0  ;;  %v1121_v1 = vpop.f32.mrf.mxu1 }
 0x76c   :  { %v1128_v48 = vadd.f32 %v1080_v46, %v1042_v45  ;;  %v1130_v33 = vadd.f32 %v1121_v1, %v1044_v52 }
 0x76d   :  { %v1082_v49 = vpop.f32.mrf.mxu0  ;;  %v1123_v50 = vpop.f32.mrf.mxu1 }
 0x76e   :  { %v1132_v51 = vmul.f32 0.5, %v1128_v48  ;;  %v1129_v53 = vadd.f32 %v1082_v49, %v1043_v34  ;;  %v1131_v60 = vadd.f32 %v1123_v50, %v1045_v59 }
 0x76f   :  { %v1084_v54 = vpop.f32.mrf.mxu0  ;;  %v1125_v55 = vpop.f32.mrf.mxu1 }
 0x770   :  { %1341 = vtanh.f32 %v1132_v51  ;;  %v1133_v56 = vmul.f32 0.5, %v1129_v53  ;;  %v1135_v61 = vmul.f32 0.5, %v1131_v60 }
 0x771   :  { %v1085_v57 = vpop.f32.mrf.mxu0  ;;  %v1126_v58 = vpop.f32.mrf.mxu1 }
 0x772   :  { %1343 = vtanh.f32 %v1133_v56 }
 0x773   :  { %1345 = vtanh.f32 %v1130_v33 }
 0x774   :  { %1347 = vtanh.f32 %v1135_v61 }
 0x77d   :  { %v1342_v62 = vpop.eup %1341 }
 0x77e   :  { %v1140_v2 = vadd.f32 1.0, %v1342_v62 }
 0x77f   :  { %v1344_v4 = vpop.eup %1343 }
 0x780   :  { %v1141_v5 = vmul.f32 0.5, %v1140_v2  ;;  %v1143_v6 = vadd.f32 1.0, %v1344_v4  ;;  %v1346_v8 = vpop.eup %1345 }
 0x781   :  { %v1348_v12 = vpop.eup %1347 }
 0x782   :  { %v1144_v7 = vmul.f32 0.5, %v1143_v6  ;;  %v1142_v9 = vmul.f32 %v1346_v8, %v1141_v5  ;;  %v1147_v13 = vadd.f32 1.0, %v1348_v12 }
 0x784   :  { %v1145_v10 = vmul.f32 %v1144_v7, %v1031_v38  ;;  %v1148_v14 = vmul.f32 0.5, %v1147_v13 }
 0x786   :  { %v1146_v11 = vadd.f32 %v1145_v10, %v1142_v9 }
 0x788   :  { %1349 = vtanh.f32 %v1146_v11  ;;  %1159 = vst [vmem:[%s2003_s3] sm:$0xff] %v1146_v11 }
 0x795   :  { %v1350_v15 = vpop.eup %1349 }
 0x796   :  { %v1150_v16 = vmul.f32 %v1350_v15, %v1148_v14 }
 0x798   :  { %v1151_v17 = vpack.c.bf16 %v1150_v16, %v1150_v16 }
 0x79a   :  { %1220 = vst [vmem:[%s2002_s2 + $0x1c] sm:$0xf] %v1151_v17 }

// kernel: lstm_forward.3
= control target key start
LH: loop header
LB: loop body
LE: loop exit
PB: predicated region body
PF: predicated region fallthrough
CT: control target
= control target key end

     0   :  { %v1382_v1 = vmov 0   ;;  %v1383_v33 = vmov 0.0|0.0   ;;  %s1999_s1 = inlined_call_operand.vmem [shape: bf16[128,512], index: 1, kind: input, shape index: {}]   ;;  %s2000_s0 = inlined_call_operand.vmem [shape: bf16[8,8,512], index: 0, kind: input, shape index: {}]   ;;  %s2001_s2 = inlined_call_operand.vmem [shape: f32[8,8,128], index: 2, kind: output, shape index: {0}]   ;;  %s2002_s3 = inlined_call_operand.vmem [shape: f32[8,128], index: 3, kind: output, shape index: {1}]  }
   0x1   :  { %v1407_v0 = vld [vmem:[%s1999_s1 + $0xe4] ss:$16 sps:$4 sm:$0xff]   ;;  %274 = vmatprep.mubr.bf16.mxu0 %v1382_v1  ;;  %315 = vmatprep.mubr.bf16.mxu1 %v1382_v1  ;;  %v1414_v2 = vld [vmem:[%s1999_s1 + $0xe0] ss:$16 sps:$4 sm:$0xff]   ;;  %v1420_v3 = vld [vmem:[%s1999_s1 + $0xec] ss:$16 sps:$4 sm:$0xff]  }
   0x2   :  { %242 = vmatprep.subr.bf16.mxu0 %v1407_v0  ;;  %v1425_v4 = vld [vmem:[%s1999_s1 + $0xe8] ss:$16 sps:$4 sm:$0xff]   ;;  %v1431_v5 = vld [vmem:[%s1999_s1 + $0xc4] ss:$16 sps:$4 sm:$0xff]   ;;  %v1436_v6 = vld [vmem:[%s1999_s1 + $0xc0] ss:$16 sps:$4 sm:$0xff]   ;;  %283 = vmatprep.subr.bf16.mxu1 %v1420_v3 }
   0x3   :  { %243 = vmatpush1.bf16.msra.mxu0 %v1414_v2  ;;  %v1442_v7 = vld [vmem:[%s1999_s1 + $0xcc] ss:$16 sps:$4 sm:$0xff]   ;;  %284 = vmatpush1.bf16.msra.mxu1 %v1425_v4  ;;  %v1449_v8 = vld [vmem:[%s1999_s1 + $0xc8] ss:$16 sps:$4 sm:$0xff]   ;;  %v1455_v9 = vld [vmem:[%s1999_s1 + $0xa4] ss:$16 sps:$4 sm:$0xff]  }
   0x4   :  { %244 = vmatprep.subr.bf16.mxu0 %v1431_v5  ;;  %285 = vmatprep.subr.bf16.mxu1 %v1442_v7  ;;  %v1461_v10 = vld [vmem:[%s1999_s1 + $0xa0] ss:$16 sps:$4 sm:$0xff]   ;;  %v1466_v11 = vld [vmem:[%s1999_s1 + $0xac] ss:$16 sps:$4 sm:$0xff]   ;;  %v1472_v12 = vld [vmem:[%s1999_s1 + $0x84] ss:$16 sps:$4 sm:$0xff]  }
   0x5   :  { %v1478_v13 = vld [vmem:[%s1999_s1 + $0xa8] ss:$16 sps:$4 sm:$0xff]   ;;  %v1484_v14 = vld [vmem:[%s1999_s1 + $0x8c] ss:$16 sps:$4 sm:$0xff]   ;;  %v1490_v15 = vld [vmem:[%s1999_s1 + $0x80] ss:$16 sps:$4 sm:$0xff]  }
   0x6   :  { %v1496_v16 = vld [vmem:[%s1999_s1 + $0x64] ss:$16 sps:$4 sm:$0xff]   ;;  %v1502_v17 = vld [vmem:[%s1999_s1 + $0x88] ss:$16 sps:$4 sm:$0xff]   ;;  %v1508_v18 = vld [vmem:[%s1999_s1 + $0x6c] ss:$16 sps:$4 sm:$0xff]  }
   0x7   :  { %245 = vmatpush1.bf16.msra.mxu0 %v1436_v6  ;;  %286 = vmatpush1.bf16.msra.mxu1 %v1449_v8  ;;  %v1514_v19 = vld [vmem:[%s1999_s1 + $0x60] ss:$16 sps:$4 sm:$0xff]   ;;  %v1520_v20 = vld [vmem:[%s1999_s1 + $0x44] ss:$16 sps:$4 sm:$0xff]   ;;  %v1526_v21 = vld [vmem:[%s1999_s1 + $0x68] ss:$16 sps:$4 sm:$0xff]  }
   0x8   :  { %246 = vmatprep.subr.bf16.mxu0 %v1455_v9  ;;  %287 = vmatprep.subr.bf16.mxu1 %v1466_v11  ;;  %v1532_v22 = vld [vmem:[%s1999_s1 + $0x4c] ss:$16 sps:$4 sm:$0xff]   ;;  %v1538_v23 = vld [vmem:[%s1999_s1 + $0x40] ss:$16 sps:$4 sm:$0xff]   ;;  %v1544_v24 = vld [vmem:[%s1999_s1 + $0x24] ss:$16 sps:$4 sm:$0xff]  }
   0x9   :  { %v1550_v25 = vld [vmem:[%s1999_s1 + $0x48] ss:$16 sps:$4 sm:$0xff]   ;;  %v1556_v26 = vld [vmem:[%s1999_s1 + $0x2c] ss:$16 sps:$4 sm:$0xff]   ;;  %v1562_v27 = vld [vmem:[%s1999_s1 + $0x20] ss:$16 sps:$4 sm:$0xff]  }
   0xa   :  { %v1568_v28 = vld [vmem:[%s1999_s1 + $0x4] ss:$16 sps:$4 sm:$0xff]   ;;  %v1574_v29 = vld [vmem:[%s1999_s1 + $0x28] ss:$16 sps:$4 sm:$0xff]   ;;  %v1580_v30 = vld [vmem:[%s1999_s1 + $0xc] ss:$16 sps:$4 sm:$0xff]  }
   0xb   :  { %247 = vmatpush1.bf16.msra.mxu0 %v1461_v10  ;;  %288 = vmatpush1.bf16.msra.mxu1 %v1478_v13  ;;  %v1586_v31 = vld [vmem:[%s1999_s1] ss:$16 sps:$4 sm:$0xff]   ;;  %v1593_v32 = vld [vmem:[%s1999_s1 + $0x8] ss:$16 sps:$4 sm:$0xff]  }
   0xc   :  { %248 = vmatprep.subr.bf16.mxu0 %v1472_v12  ;;  %289 = vmatprep.subr.bf16.mxu1 %v1484_v14  ;;  %v75_v34 = vld [vmem:[%s2000_s0] sm:$0xff]  ;;  %v76_v36 = vld [vmem:[%s2000_s0 + $0x8] sm:$0xff] }
   0xd   :  { %v77_v35 = vunpack.c.l.bf16 %v75_v34  ;;  %v78_v37 = vunpack.c.h.bf16 %v75_v34  ;;  %v79_v40 = vunpack.c.l.bf16 %v76_v36  ;;  %v80_v52 = vunpack.c.h.bf16 %v76_v36 }
   0xf   :  { %249 = vmatpush1.bf16.msra.mxu0 %v1490_v15  ;;  %290 = vmatpush1.bf16.msra.mxu1 %v1502_v17 }
  0x10   :  { %250 = vmatprep.subr.bf16.mxu0 %v1496_v16  ;;  %291 = vmatprep.subr.bf16.mxu1 %v1508_v18 }
  0x13   :  { %251 = vmatpush1.bf16.msra.mxu0 %v1514_v19  ;;  %292 = vmatpush1.bf16.msra.mxu1 %v1526_v21 }
  0x14   :  { %252 = vmatprep.subr.bf16.mxu0 %v1520_v20  ;;  %293 = vmatprep.subr.bf16.mxu1 %v1532_v22 }
  0x17   :  { %253 = vmatpush1.bf16.msra.mxu0 %v1538_v23  ;;  %294 = vmatpush1.bf16.msra.mxu1 %v1550_v25 }
  0x18   :  { %254 = vmatprep.subr.bf16.mxu0 %v1544_v24  ;;  %295 = vmatprep.subr.bf16.mxu1 %v1556_v26 }
  0x1b   :  { %255 = vmatpush1.bf16.msra.mxu0 %v1562_v27  ;;  %296 = vmatpush1.bf16.msra.mxu1 %v1574_v29 }
  0x1c   :  { %256 = vmatprep.subr.bf16.mxu0 %v1568_v28  ;;  %297 = vmatprep.subr.bf16.mxu1 %v1580_v30 }
  0x1f   :  { %257 = vmatpush1.bf16.msra.mxu0 %v1586_v31  ;;  %298 = vmatpush1.bf16.msra.mxu1 %v1593_v32 }
  0x20   :  { %356 = vmatprep.subr.bf16.mxu0 %v1407_v0  ;;  %397 = vmatprep.subr.bf16.mxu1 %v1420_v3 }
  0x22   :  { %275 = vmatmul.mubr.bf16.vlgmr.msra.gmra.mxu0 %v1383_v33  ;;  %316 = vmatmul.mubr.bf16.vlgmr.msra.gmra.mxu1 %v1383_v33 }
  0x23   :  { %357 = vmatpush1.bf16.msra.mxu0 %v1414_v2  ;;  %388 = vmatprep.mubr.bf16.mxu0 %v1382_v1 }
  0x24   :  { %358 = vmatprep.subr.bf16.mxu0 %v1431_v5  ;;  %398 = vmatpush1.bf16.msra.mxu1 %v1425_v4 }
  0x25   :  { %429 = vmatprep.mubr.bf16.mxu1 %v1382_v1  ;;  %399 = vmatprep.subr.bf16.mxu1 %v1442_v7 }
  0x27   :  { %359 = vmatpush1.bf16.msra.mxu0 %v1436_v6 }
  0x28   :  { %360 = vmatprep.subr.bf16.mxu0 %v1455_v9  ;;  %400 = vmatpush1.bf16.msra.mxu1 %v1449_v8 }
  0x29   :  { %401 = vmatprep.subr.bf16.mxu1 %v1466_v11 }
  0x2b   :  { %361 = vmatpush1.bf16.msra.mxu0 %v1461_v10 }
  0x2c   :  { %362 = vmatprep.subr.bf16.mxu0 %v1472_v12  ;;  %402 = vmatpush1.bf16.msra.mxu1 %v1478_v13 }
  0x2d   :  { %403 = vmatprep.subr.bf16.mxu1 %v1484_v14 }
  0x2f   :  { %363 = vmatpush1.bf16.msra.mxu0 %v1490_v15 }
  0x30   :  { %364 = vmatprep.subr.bf16.mxu0 %v1496_v16  ;;  %404 = vmatpush1.bf16.msra.mxu1 %v1502_v17 }
  0x31   :  { %405 = vmatprep.subr.bf16.mxu1 %v1508_v18 }
  0x33   :  { %365 = vmatpush1.bf16.msra.mxu0 %v1514_v19 }
  0x34   :  { %366 = vmatprep.subr.bf16.mxu0 %v1520_v20  ;;  %406 = vmatpush1.bf16.msra.mxu1 %v1526_v21 }
  0x35   :  { %407 = vmatprep.subr.bf16.mxu1 %v1532_v22 }
  0x37   :  { %367 = vmatpush1.bf16.msra.mxu0 %v1538_v23 }
  0x38   :  { %368 = vmatprep.subr.bf16.mxu0 %v1544_v24  ;;  %408 = vmatpush1.bf16.msra.mxu1 %v1550_v25 }
  0x39   :  { %409 = vmatprep.subr.bf16.mxu1 %v1556_v26 }
  0x3b   :  { %369 = vmatpush1.bf16.msra.mxu0 %v1562_v27 }
  0x3c   :  { %370 = vmatprep.subr.bf16.mxu0 %v1568_v28  ;;  %410 = vmatpush1.bf16.msra.mxu1 %v1574_v29 }
  0x3d   :  { %411 = vmatprep.subr.bf16.mxu1 %v1580_v30 }
  0x3f   :  { %371 = vmatpush1.bf16.msra.mxu0 %v1586_v31 }
  0x40   :  { %471 = vmatprep.subr.bf16.mxu0 %v1407_v0  ;;  %412 = vmatpush1.bf16.msra.mxu1 %v1593_v32 }
  0x41   :  { %512 = vmatprep.subr.bf16.mxu1 %v1420_v3 }
  0xe2   :  { %v276_v38 = vpop.f32.mrf.mxu0  ;;  %v317_v42 = vpop.f32.mrf.mxu1 }
  0xe3   :  { %v324_v39 = vadd.f32 %v276_v38, %v77_v35  ;;  %v326_v48 = vadd.f32 %v317_v42, %v79_v40  ;;  %v1199_v40 = vld [vmem:[%s2000_s0 + $0x10] sm:$0xff] }
  0xe4   :  { %v278_v41 = vpop.f32.mrf.mxu0  ;;  %v319_v46 = vpop.f32.mrf.mxu1  ;;  %v352_v42 = vunpack.c.h.bf16 %v1199_v40 }
  0xe5   :  { %v328_v43 = vmul.f32 0.5, %v324_v39  ;;  %v325_v44 = vadd.f32 %v278_v41, %v78_v37  ;;  %v327_v53 = vadd.f32 %v319_v46, %v80_v52  ;;  %v351_v41 = vunpack.c.l.bf16 %v1199_v40 }
  0xe6   :  { %v280_v45 = vpop.f32.mrf.mxu0  ;;  %v321_v50 = vpop.f32.mrf.mxu1 }
  0xe7   :  { %1270 = vtanh.f32 %v328_v43  ;;  %v329_v47 = vmul.f32 0.5, %v325_v44  ;;  %v331_v54 = vmul.f32 0.5, %v327_v53  ;;  %v1200_v44 = vld [vmem:[%s2000_s0 + $0x18] sm:$0xff] }
  0xe8   :  { %v281_v49 = vpop.f32.mrf.mxu0  ;;  %v322_v51 = vpop.f32.mrf.mxu1  ;;  %v353_v50 = vunpack.c.l.bf16 %v1200_v44 }
  0xe9   :  { %1272 = vtanh.f32 %v329_v47 }
  0xea   :  { %1274 = vtanh.f32 %v326_v48 }
  0xeb   :  { %1276 = vtanh.f32 %v331_v54 }
  0xf4   :  { %v1271_v55 = vpop.eup %1270 }
  0xf5   :  { %v336_v56 = vadd.f32 1.0, %v1271_v55 }
  0xf6   :  { %v1273_v57 = vpop.eup %1272 }
  0xf7   :  { %v337_v58 = vmul.f32 0.5, %v336_v56  ;;  %v339_v59 = vadd.f32 1.0, %v1273_v57  ;;  %v1275_v60 = vpop.eup %1274 }
  0xf8   :  { %v1277_v34 = vpop.eup %1276 }
  0xf9   :  { %v340_v61 = vmul.f32 0.5, %v339_v59  ;;  %v338_v63 = vmul.f32 %v1275_v60, %v337_v58  ;;  %v343_v35 = vadd.f32 1.0, %v1277_v34  ;;  %v354_v58 = vunpack.c.h.bf16 %v1200_v44 }
  0xfb   :  { %v341_v62 = vmul.f32 0.0, %v340_v61  ;;  %v344_v37 = vmul.f32 0.5, %v343_v35 }
  0xfd   :  { %v1640_v33 = vadd.f32 %v341_v62, %v338_v63 }
  0xff   :  { %1278 = vtanh.f32 %v1640_v33 }
 0x10c   :  { %v1279_v36 = vpop.eup %1278 }
 0x10d   :  { %v346_v38 = vmul.f32 %v1279_v36, %v344_v37 }
 0x10f   :  { %347 = vst [vmem:[%s2001_s2] sm:$0xff] %v346_v38  ;;  %v355_v39 = vpack.c.bf16 %v346_v38, %v346_v38 }
 0x111   :  { %389 = vmatmul.mubr.bf16.vlgmr.msra.gmra.mxu0 %v355_v39  ;;  %430 = vmatmul.mubr.bf16.vlgmr.msra.gmra.mxu1 %v355_v39 }
 0x112   :  { %472 = vmatpush1.bf16.msra.mxu0 %v1414_v2  ;;  %513 = vmatpush1.bf16.msra.mxu1 %v1425_v4 }
 0x113   :  { %473 = vmatprep.subr.bf16.mxu0 %v1431_v5  ;;  %514 = vmatprep.subr.bf16.mxu1 %v1442_v7 }
 0x114   :  { %503 = vmatprep.mubr.bf16.mxu0 %v1382_v1  ;;  %544 = vmatprep.mubr.bf16.mxu1 %v1382_v1 }
 0x116   :  { %474 = vmatpush1.bf16.msra.mxu0 %v1436_v6  ;;  %515 = vmatpush1.bf16.msra.mxu1 %v1449_v8 }
 0x117   :  { %475 = vmatprep.subr.bf16.mxu0 %v1455_v9  ;;  %516 = vmatprep.subr.bf16.mxu1 %v1466_v11 }
 0x11a   :  { %476 = vmatpush1.bf16.msra.mxu0 %v1461_v10  ;;  %517 = vmatpush1.bf16.msra.mxu1 %v1478_v13 }
 0x11b   :  { %477 = vmatprep.subr.bf16.mxu0 %v1472_v12  ;;  %518 = vmatprep.subr.bf16.mxu1 %v1484_v14 }
 0x11e   :  { %478 = vmatpush1.bf16.msra.mxu0 %v1490_v15  ;;  %519 = vmatpush1.bf16.msra.mxu1 %v1502_v17 }
 0x11f   :  { %479 = vmatprep.subr.bf16.mxu0 %v1496_v16  ;;  %520 = vmatprep.subr.bf16.mxu1 %v1508_v18 }
 0x122   :  { %480 = vmatpush1.bf16.msra.mxu0 %v1514_v19  ;;  %521 = vmatpush1.bf16.msra.mxu1 %v1526_v21 }
 0x123   :  { %481 = vmatprep.subr.bf16.mxu0 %v1520_v20  ;;  %522 = vmatprep.subr.bf16.mxu1 %v1532_v22 }
 0x126   :  { %482 = vmatpush1.bf16.msra.mxu0 %v1538_v23  ;;  %523 = vmatpush1.bf16.msra.mxu1 %v1550_v25 }
 0x127   :  { %483 = vmatprep.subr.bf16.mxu0 %v1544_v24  ;;  %524 = vmatprep.subr.bf16.mxu1 %v1556_v26 }
 0x12a   :  { %484 = vmatpush1.bf16.msra.mxu0 %v1562_v27  ;;  %525 = vmatpush1.bf16.msra.mxu1 %v1574_v29 }
 0x12b   :  { %485 = vmatprep.subr.bf16.mxu0 %v1568_v28  ;;  %526 = vmatprep.subr.bf16.mxu1 %v1580_v30 }
 0x12e   :  { %486 = vmatpush1.bf16.msra.mxu0 %v1586_v31  ;;  %527 = vmatpush1.bf16.msra.mxu1 %v1593_v32 }
 0x12f   :  { %586 = vmatprep.subr.bf16.mxu0 %v1407_v0  ;;  %627 = vmatprep.subr.bf16.mxu1 %v1420_v3 }
 0x1d1   :  { %v390_v43 = vpop.f32.mrf.mxu0  ;;  %v431_v45 = vpop.f32.mrf.mxu1 }
 0x1d2   :  { %v438_v46 = vadd.f32 %v390_v43, %v351_v41  ;;  %v440_v57 = vadd.f32 %v431_v45, %v353_v50  ;;  %v1203_v50 = vld [vmem:[%s2000_s0 + $0x28] sm:$0xff] }
 0x1d3   :  { %v392_v47 = vpop.f32.mrf.mxu0  ;;  %v433_v48 = vpop.f32.mrf.mxu1 }
 0x1d4   :  { %v442_v49 = vmul.f32 0.5, %v438_v46  ;;  %v439_v51 = vadd.f32 %v392_v47, %v352_v42  ;;  %v441_v59 = vadd.f32 %v433_v48, %v354_v58 }
 0x1d5   :  { %v394_v52 = vpop.f32.mrf.mxu0  ;;  %v435_v53 = vpop.f32.mrf.mxu1 }
 0x1d6   :  { %1280 = vtanh.f32 %v442_v49  ;;  %v443_v54 = vmul.f32 0.5, %v439_v51  ;;  %v445_v60 = vmul.f32 0.5, %v441_v59 }
 0x1d7   :  { %v395_v55 = vpop.f32.mrf.mxu0  ;;  %v436_v56 = vpop.f32.mrf.mxu1 }
 0x1d8   :  { %1282 = vtanh.f32 %v443_v54  ;;  %v468_v56 = vunpack.c.l.bf16 %v1203_v50 }
 0x1d9   :  { %1284 = vtanh.f32 %v440_v57 }
 0x1da   :  { %1286 = vtanh.f32 %v445_v60 }
 0x1e3   :  { %v1281_v61 = vpop.eup %1280 }
 0x1e4   :  { %v450_v62 = vadd.f32 1.0, %v1281_v61 }
 0x1e5   :  { %v1283_v63 = vpop.eup %1282 }
 0x1e6   :  { %v451_v34 = vmul.f32 0.5, %v450_v62  ;;  %v453_v35 = vadd.f32 1.0, %v1283_v63  ;;  %v1285_v36 = vpop.eup %1284 }
 0x1e7   :  { %v1287_v41 = vpop.eup %1286 }
 0x1e8   :  { %v454_v37 = vmul.f32 0.5, %v453_v35  ;;  %v452_v38 = vmul.f32 %v1285_v36, %v451_v34  ;;  %v457_v42 = vadd.f32 1.0, %v1287_v41  ;;  %v469_v34 = vunpack.c.h.bf16 %v1203_v50 }
 0x1ea   :  { %v455_v39 = vmul.f32 %v454_v37, %v1640_v33  ;;  %v458_v43 = vmul.f32 0.5, %v457_v42  ;;  %v1202_v33 = vld [vmem:[%s2000_s0 + $0x20] sm:$0xff] }
 0x1eb   :  { %v466_v47 = vunpack.c.l.bf16 %v1202_v33  ;;  %v467_v48 = vunpack.c.h.bf16 %v1202_v33 }
 0x1ec   :  { %v1687_v40 = vadd.f32 %v455_v39, %v452_v38 }
 0x1ee   :  { %1288 = vtanh.f32 %v1687_v40 }
 0x1fb   :  { %v1289_v44 = vpop.eup %1288 }
 0x1fc   :  { %v460_v45 = vmul.f32 %v1289_v44, %v458_v43 }
 0x1fe   :  { %1201 = vst [vmem:[%s2001_s2 + $0x8] sm:$0xff] %v460_v45  ;;  %v470_v46 = vpack.c.bf16 %v460_v45, %v460_v45 }
 0x200   :  { %504 = vmatmul.mubr.bf16.vlgmr.msra.gmra.mxu0 %v470_v46  ;;  %545 = vmatmul.mubr.bf16.vlgmr.msra.gmra.mxu1 %v470_v46 }
 0x201   :  { %587 = vmatpush1.bf16.msra.mxu0 %v1414_v2  ;;  %628 = vmatpush1.bf16.msra.mxu1 %v1425_v4 }
 0x202   :  { %588 = vmatprep.subr.bf16.mxu0 %v1431_v5  ;;  %629 = vmatprep.subr.bf16.mxu1 %v1442_v7 }
 0x203   :  { %618 = vmatprep.mubr.bf16.mxu0 %v1382_v1  ;;  %659 = vmatprep.mubr.bf16.mxu1 %v1382_v1 }
 0x205   :  { %589 = vmatpush1.bf16.msra.mxu0 %v1436_v6  ;;  %630 = vmatpush1.bf16.msra.mxu1 %v1449_v8 }
 0x206   :  { %590 = vmatprep.subr.bf16.mxu0 %v1455_v9  ;;  %631 = vmatprep.subr.bf16.mxu1 %v1466_v11 }
 0x209   :  { %591 = vmatpush1.bf16.msra.mxu0 %v1461_v10  ;;  %632 = vmatpush1.bf16.msra.mxu1 %v1478_v13 }
 0x20a   :  { %592 = vmatprep.subr.bf16.mxu0 %v1472_v12  ;;  %633 = vmatprep.subr.bf16.mxu1 %v1484_v14 }
 0x20d   :  { %593 = vmatpush1.bf16.msra.mxu0 %v1490_v15  ;;  %634 = vmatpush1.bf16.msra.mxu1 %v1502_v17 }
 0x20e   :  { %594 = vmatprep.subr.bf16.mxu0 %v1496_v16  ;;  %635 = vmatprep.subr.bf16.mxu1 %v1508_v18 }
 0x211   :  { %595 = vmatpush1.bf16.msra.mxu0 %v1514_v19  ;;  %636 = vmatpush1.bf16.msra.mxu1 %v1526_v21 }
 0x212   :  { %596 = vmatprep.subr.bf16.mxu0 %v1520_v20  ;;  %637 = vmatprep.subr.bf16.mxu1 %v1532_v22 }
 0x215   :  { %597 = vmatpush1.bf16.msra.mxu0 %v1538_v23  ;;  %638 = vmatpush1.bf16.msra.mxu1 %v1550_v25 }
 0x216   :  { %598 = vmatprep.subr.bf16.mxu0 %v1544_v24  ;;  %639 = vmatprep.subr.bf16.mxu1 %v1556_v26 }
 0x219   :  { %599 = vmatpush1.bf16.msra.mxu0 %v1562_v27  ;;  %640 = vmatpush1.bf16.msra.mxu1 %v1574_v29 }
 0x21a   :  { %600 = vmatprep.subr.bf16.mxu0 %v1568_v28  ;;  %641 = vmatprep.subr.bf16.mxu1 %v1580_v30 }
 0x21d   :  { %601 = vmatpush1.bf16.msra.mxu0 %v1586_v31  ;;  %642 = vmatpush1.bf16.msra.mxu1 %v1593_v32 }
 0x21e   :  { %701 = vmatprep.subr.bf16.mxu0 %v1407_v0  ;;  %742 = vmatprep.subr.bf16.mxu1 %v1420_v3 }
 0x2c0   :  { %v505_v49 = vpop.f32.mrf.mxu0  ;;  %v546_v51 = vpop.f32.mrf.mxu1 }
 0x2c1   :  { %v553_v52 = vadd.f32 %v505_v49, %v466_v47  ;;  %v555_v63 = vadd.f32 %v546_v51, %v468_v56  ;;  %v1206_v56 = vld [vmem:[%s2000_s0 + $0x38] sm:$0xff] }
 0x2c2   :  { %v507_v53 = vpop.f32.mrf.mxu0  ;;  %v548_v54 = vpop.f32.mrf.mxu1 }
 0x2c3   :  { %v557_v55 = vmul.f32 0.5, %v553_v52  ;;  %v554_v57 = vadd.f32 %v507_v53, %v467_v48  ;;  %v556_v35 = vadd.f32 %v548_v54, %v469_v34 }
 0x2c4   :  { %v509_v58 = vpop.f32.mrf.mxu0  ;;  %v550_v59 = vpop.f32.mrf.mxu1 }
 0x2c5   :  { %1290 = vtanh.f32 %v557_v55  ;;  %v558_v60 = vmul.f32 0.5, %v554_v57  ;;  %v560_v37 = vmul.f32 0.5, %v556_v35 }
 0x2c6   :  { %v510_v61 = vpop.f32.mrf.mxu0  ;;  %v551_v62 = vpop.f32.mrf.mxu1 }
 0x2c7   :  { %1292 = vtanh.f32 %v558_v60  ;;  %v583_v62 = vunpack.c.l.bf16 %v1206_v56 }
 0x2c8   :  { %1294 = vtanh.f32 %v555_v63 }
 0x2c9   :  { %1296 = vtanh.f32 %v560_v37 }
 0x2d2   :  { %v1291_v36 = vpop.eup %1290 }
 0x2d3   :  { %v565_v38 = vadd.f32 1.0, %v1291_v36 }
 0x2d4   :  { %v1293_v39 = vpop.eup %1292 }
 0x2d5   :  { %v566_v41 = vmul.f32 0.5, %v565_v38  ;;  %v568_v42 = vadd.f32 1.0, %v1293_v39  ;;  %v1295_v44 = vpop.eup %1294 }
 0x2d6   :  { %v1297_v47 = vpop.eup %1296 }
 0x2d7   :  { %v569_v43 = vmul.f32 0.5, %v568_v42  ;;  %v567_v45 = vmul.f32 %v1295_v44, %v566_v41  ;;  %v572_v48 = vadd.f32 1.0, %v1297_v47  ;;  %v584_v41 = vunpack.c.h.bf16 %v1206_v56 }
 0x2d9   :  { %v570_v46 = vmul.f32 %v569_v43, %v1687_v40  ;;  %v573_v49 = vmul.f32 0.5, %v572_v48  ;;  %v1205_v40 = vld [vmem:[%s2000_s0 + $0x30] sm:$0xff] }
 0x2da   :  { %v581_v53 = vunpack.c.l.bf16 %v1205_v40  ;;  %v582_v54 = vunpack.c.h.bf16 %v1205_v40 }
 0x2db   :  { %v1734_v33 = vadd.f32 %v570_v46, %v567_v45 }
 0x2dd   :  { %1298 = vtanh.f32 %v1734_v33 }
 0x2ea   :  { %v1299_v50 = vpop.eup %1298 }
 0x2eb   :  { %v575_v51 = vmul.f32 %v1299_v50, %v573_v49 }
 0x2ed   :  { %1204 = vst [vmem:[%s2001_s2 + $0x10] sm:$0xff] %v575_v51  ;;  %v585_v52 = vpack.c.bf16 %v575_v51, %v575_v51 }
 0x2ef   :  { %619 = vmatmul.mubr.bf16.vlgmr.msra.gmra.mxu0 %v585_v52  ;;  %660 = vmatmul.mubr.bf16.vlgmr.msra.gmra.mxu1 %v585_v52 }
 0x2f0   :  { %702 = vmatpush1.bf16.msra.mxu0 %v1414_v2  ;;  %743 = vmatpush1.bf16.msra.mxu1 %v1425_v4 }
 0x2f1   :  { %703 = vmatprep.subr.bf16.mxu0 %v1431_v5  ;;  %744 = vmatprep.subr.bf16.mxu1 %v1442_v7 }
 0x2f2   :  { %733 = vmatprep.mubr.bf16.mxu0 %v1382_v1  ;;  %774 = vmatprep.mubr.bf16.mxu1 %v1382_v1 }
 0x2f4   :  { %704 = vmatpush1.bf16.msra.mxu0 %v1436_v6  ;;  %745 = vmatpush1.bf16.msra.mxu1 %v1449_v8 }
 0x2f5   :  { %705 = vmatprep.subr.bf16.mxu0 %v1455_v9  ;;  %746 = vmatprep.subr.bf16.mxu1 %v1466_v11 }
 0x2f8   :  { %706 = vmatpush1.bf16.msra.mxu0 %v1461_v10  ;;  %747 = vmatpush1.bf16.msra.mxu1 %v1478_v13 }
 0x2f9   :  { %707 = vmatprep.subr.bf16.mxu0 %v1472_v12  ;;  %748 = vmatprep.subr.bf16.mxu1 %v1484_v14 }
 0x2fc   :  { %708 = vmatpush1.bf16.msra.mxu0 %v1490_v15  ;;  %749 = vmatpush1.bf16.msra.mxu1 %v1502_v17 }
 0x2fd   :  { %709 = vmatprep.subr.bf16.mxu0 %v1496_v16  ;;  %750 = vmatprep.subr.bf16.mxu1 %v1508_v18 }
 0x300   :  { %710 = vmatpush1.bf16.msra.mxu0 %v1514_v19  ;;  %751 = vmatpush1.bf16.msra.mxu1 %v1526_v21 }
 0x301   :  { %711 = vmatprep.subr.bf16.mxu0 %v1520_v20  ;;  %752 = vmatprep.subr.bf16.mxu1 %v1532_v22 }
 0x304   :  { %712 = vmatpush1.bf16.msra.mxu0 %v1538_v23  ;;  %753 = vmatpush1.bf16.msra.mxu1 %v1550_v25 }
 0x305   :  { %713 = vmatprep.subr.bf16.mxu0 %v1544_v24  ;;  %754 = vmatprep.subr.bf16.mxu1 %v1556_v26 }
 0x308   :  { %714 = vmatpush1.bf16.msra.mxu0 %v1562_v27  ;;  %755 = vmatpush1.bf16.msra.mxu1 %v1574_v29 }
 0x309   :  { %715 = vmatprep.subr.bf16.mxu0 %v1568_v28  ;;  %756 = vmatprep.subr.bf16.mxu1 %v1580_v30 }
 0x30c   :  { %716 = vmatpush1.bf16.msra.mxu0 %v1586_v31  ;;  %757 = vmatpush1.bf16.msra.mxu1 %v1593_v32 }
 0x30d   :  { %816 = vmatprep.subr.bf16.mxu0 %v1407_v0  ;;  %857 = vmatprep.subr.bf16.mxu1 %v1420_v3 }
 0x3af   :  { %v620_v55 = vpop.f32.mrf.mxu0  ;;  %v661_v57 = vpop.f32.mrf.mxu1 }
 0x3b0   :  { %v668_v58 = vadd.f32 %v620_v55, %v581_v53  ;;  %v670_v39 = vadd.f32 %v661_v57, %v583_v62  ;;  %v1209_v62 = vld [vmem:[%s2000_s0 + $0x48] sm:$0xff] }
 0x3b1   :  { %v622_v59 = vpop.f32.mrf.mxu0  ;;  %v663_v60 = vpop.f32.mrf.mxu1 }
 0x3b2   :  { %v672_v61 = vmul.f32 0.5, %v668_v58  ;;  %v669_v63 = vadd.f32 %v622_v59, %v582_v54  ;;  %v671_v42 = vadd.f32 %v663_v60, %v584_v41 }
 0x3b3   :  { %v624_v34 = vpop.f32.mrf.mxu0  ;;  %v665_v35 = vpop.f32.mrf.mxu1 }
 0x3b4   :  { %1300 = vtanh.f32 %v672_v61  ;;  %v673_v37 = vmul.f32 0.5, %v669_v63  ;;  %v675_v43 = vmul.f32 0.5, %v671_v42 }
 0x3b5   :  { %v625_v36 = vpop.f32.mrf.mxu0  ;;  %v666_v38 = vpop.f32.mrf.mxu1 }
 0x3b6   :  { %1302 = vtanh.f32 %v673_v37  ;;  %v698_v38 = vunpack.c.l.bf16 %v1209_v62 }
 0x3b7   :  { %1304 = vtanh.f32 %v670_v39 }
 0x3b8   :  { %1306 = vtanh.f32 %v675_v43 }
 0x3c1   :  { %v1301_v44 = vpop.eup %1300 }
 0x3c2   :  { %v680_v45 = vadd.f32 1.0, %v1301_v44 }
 0x3c3   :  { %v1303_v46 = vpop.eup %1302 }
 0x3c4   :  { %v681_v47 = vmul.f32 0.5, %v680_v45  ;;  %v683_v48 = vadd.f32 1.0, %v1303_v46  ;;  %v1305_v50 = vpop.eup %1304  ;;  %v699_v45 = vunpack.c.h.bf16 %v1209_v62 }
 0x3c5   :  { %v1307_v53 = vpop.eup %1306 }
 0x3c6   :  { %v684_v49 = vmul.f32 0.5, %v683_v48  ;;  %v682_v51 = vmul.f32 %v1305_v50, %v681_v47  ;;  %v687_v54 = vadd.f32 1.0, %v1307_v53 }
 0x3c8   :  { %v685_v52 = vmul.f32 %v684_v49, %v1734_v33  ;;  %v688_v55 = vmul.f32 0.5, %v687_v54  ;;  %v1208_v33 = vld [vmem:[%s2000_s0 + $0x40] sm:$0xff] }
 0x3c9   :  { %v696_v59 = vunpack.c.l.bf16 %v1208_v33  ;;  %v697_v60 = vunpack.c.h.bf16 %v1208_v33 }
 0x3ca   :  { %v1781_v40 = vadd.f32 %v685_v52, %v682_v51 }
 0x3cc   :  { %1308 = vtanh.f32 %v1781_v40 }
 0x3d9   :  { %v1309_v56 = vpop.eup %1308 }
 0x3da   :  { %v690_v57 = vmul.f32 %v1309_v56, %v688_v55 }
 0x3dc   :  { %1207 = vst [vmem:[%s2001_s2 + $0x18] sm:$0xff] %v690_v57  ;;  %v700_v58 = vpack.c.bf16 %v690_v57, %v690_v57 }
 0x3de   :  { %734 = vmatmul.mubr.bf16.vlgmr.msra.gmra.mxu0 %v700_v58  ;;  %775 = vmatmul.mubr.bf16.vlgmr.msra.gmra.mxu1 %v700_v58 }
 0x3df   :  { %817 = vmatpush1.bf16.msra.mxu0 %v1414_v2  ;;  %858 = vmatpush1.bf16.msra.mxu1 %v1425_v4 }
 0x3e0   :  { %818 = vmatprep.subr.bf16.mxu0 %v1431_v5  ;;  %859 = vmatprep.subr.bf16.mxu1 %v1442_v7 }
 0x3e1   :  { %848 = vmatprep.mubr.bf16.mxu0 %v1382_v1  ;;  %889 = vmatprep.mubr.bf16.mxu1 %v1382_v1 }
 0x3e3   :  { %819 = vmatpush1.bf16.msra.mxu0 %v1436_v6  ;;  %860 = vmatpush1.bf16.msra.mxu1 %v1449_v8 }
 0x3e4   :  { %820 = vmatprep.subr.bf16.mxu0 %v1455_v9  ;;  %861 = vmatprep.subr.bf16.mxu1 %v1466_v11 }
 0x3e7   :  { %821 = vmatpush1.bf16.msra.mxu0 %v1461_v10  ;;  %862 = vmatpush1.bf16.msra.mxu1 %v1478_v13 }
 0x3e8   :  { %822 = vmatprep.subr.bf16.mxu0 %v1472_v12  ;;  %863 = vmatprep.subr.bf16.mxu1 %v1484_v14 }
 0x3eb   :  { %823 = vmatpush1.bf16.msra.mxu0 %v1490_v15  ;;  %864 = vmatpush1.bf16.msra.mxu1 %v1502_v17 }
 0x3ec   :  { %824 = vmatprep.subr.bf16.mxu0 %v1496_v16  ;;  %865 = vmatprep.subr.bf16.mxu1 %v1508_v18 }
 0x3ef   :  { %825 = vmatpush1.bf16.msra.mxu0 %v1514_v19  ;;  %866 = vmatpush1.bf16.msra.mxu1 %v1526_v21 }
 0x3f0   :  { %826 = vmatprep.subr.bf16.mxu0 %v1520_v20  ;;  %867 = vmatprep.subr.bf16.mxu1 %v1532_v22 }
 0x3f3   :  { %827 = vmatpush1.bf16.msra.mxu0 %v1538_v23  ;;  %868 = vmatpush1.bf16.msra.mxu1 %v1550_v25 }
 0x3f4   :  { %828 = vmatprep.subr.bf16.mxu0 %v1544_v24  ;;  %869 = vmatprep.subr.bf16.mxu1 %v1556_v26 }
 0x3f7   :  { %829 = vmatpush1.bf16.msra.mxu0 %v1562_v27  ;;  %870 = vmatpush1.bf16.msra.mxu1 %v1574_v29 }
 0x3f8   :  { %830 = vmatprep.subr.bf16.mxu0 %v1568_v28  ;;  %871 = vmatprep.subr.bf16.mxu1 %v1580_v30 }
 0x3fb   :  { %831 = vmatpush1.bf16.msra.mxu0 %v1586_v31  ;;  %872 = vmatpush1.bf16.msra.mxu1 %v1593_v32 }
 0x3fc   :  { %931 = vmatprep.subr.bf16.mxu0 %v1407_v0  ;;  %972 = vmatprep.subr.bf16.mxu1 %v1420_v3 }
 0x49e   :  { %v735_v61 = vpop.f32.mrf.mxu0  ;;  %v776_v63 = vpop.f32.mrf.mxu1 }
 0x49f   :  { %v783_v34 = vadd.f32 %v735_v61, %v696_v59  ;;  %v785_v44 = vadd.f32 %v776_v63, %v698_v38 }
 0x4a0   :  { %v737_v35 = vpop.f32.mrf.mxu0  ;;  %v778_v37 = vpop.f32.mrf.mxu1 }
 0x4a1   :  { %v787_v36 = vmul.f32 0.5, %v783_v34  ;;  %v784_v0 = vadd.f32 %v737_v35, %v697_v60  ;;  %v786_v46 = vadd.f32 %v778_v37, %v699_v45  ;;  %v1357_v45 = vld [vmem:[%s1999_s1 + $0xc8] ss:$16 sps:$4 sm:$0xff]  }
 0x4a2   :  { %v739_v39 = vpop.f32.mrf.mxu0  ;;  %v780_v3 = vpop.f32.mrf.mxu1 }
 0x4a3   :  { %1310 = vtanh.f32 %v787_v36  ;;  %v788_v41 = vmul.f32 0.5, %v784_v0  ;;  %v790_v47 = vmul.f32 0.5, %v786_v46  ;;  %v1352_v3 = vld [vmem:[%s1999_s1 + $0xe0] ss:$16 sps:$4 sm:$0xff]   ;;  %v1358_v46 = vld [vmem:[%s1999_s1 + $0xa4] ss:$16 sps:$4 sm:$0xff]  }
 0x4a4   :  { %v740_v42 = vpop.f32.mrf.mxu0  ;;  %v781_v43 = vpop.f32.mrf.mxu1 }
 0x4a5   :  { %1312 = vtanh.f32 %v788_v41  ;;  %v1353_v41 = vld [vmem:[%s1999_s1 + $0xe8] ss:$16 sps:$4 sm:$0xff]   ;;  %v1354_v42 = vld [vmem:[%s1999_s1 + $0xc4] ss:$16 sps:$4 sm:$0xff]   ;;  %v1355_v43 = vld [vmem:[%s1999_s1 + $0xcc] ss:$16 sps:$4 sm:$0xff]  }
 0x4a6   :  { %1314 = vtanh.f32 %v785_v44  ;;  %v1356_v44 = vld [vmem:[%s1999_s1 + $0xc0] ss:$16 sps:$4 sm:$0xff]  }
 0x4a7   :  { %1316 = vtanh.f32 %v790_v47  ;;  %v1359_v47 = vld [vmem:[%s1999_s1 + $0xac] ss:$16 sps:$4 sm:$0xff]  }
 0x4b0   :  { %v1311_v48 = vpop.eup %1310 }
 0x4b1   :  { %v795_v49 = vadd.f32 1.0, %v1311_v48  ;;  %v1361_v48 = vld [vmem:[%s1999_s1 + $0xa8] ss:$16 sps:$4 sm:$0xff]  }
 0x4b2   :  { %v1313_v50 = vpop.eup %1312 }
 0x4b3   :  { %v796_v51 = vmul.f32 0.5, %v795_v49  ;;  %v798_v52 = vadd.f32 1.0, %v1313_v50  ;;  %v1315_v54 = vpop.eup %1314  ;;  %v1362_v49 = vld [vmem:[%s1999_s1 + $0x84] ss:$16 sps:$4 sm:$0xff]   ;;  %v1363_v50 = vld [vmem:[%s1999_s1 + $0x8c] ss:$16 sps:$4 sm:$0xff]  }
 0x4b4   :  { %v1317_v58 = vpop.eup %1316 }
 0x4b5   :  { %v799_v53 = vmul.f32 0.5, %v798_v52  ;;  %v797_v55 = vmul.f32 %v1315_v54, %v796_v51  ;;  %v802_v33 = vadd.f32 1.0, %v1317_v58  ;;  %v1364_v51 = vld [vmem:[%s1999_s1 + $0x80] ss:$16 sps:$4 sm:$0xff]   ;;  %v1365_v52 = vld [vmem:[%s1999_s1 + $0x88] ss:$16 sps:$4 sm:$0xff]  }
 0x4b6   :  { %v1367_v54 = vld [vmem:[%s1999_s1 + $0x6c] ss:$16 sps:$4 sm:$0xff]  }
 0x4b7   :  { %v800_v56 = vmul.f32 %v799_v53, %v1781_v40  ;;  %v803_v59 = vmul.f32 0.5, %v802_v33  ;;  %v1366_v53 = vld [vmem:[%s1999_s1 + $0x64] ss:$16 sps:$4 sm:$0xff]   ;;  %v1371_v58 = vld [vmem:[%s1999_s1 + $0x4c] ss:$16 sps:$4 sm:$0xff]  }
 0x4b8   :  { %v1372_v33 = vld [vmem:[%s1999_s1 + $0x40] ss:$16 sps:$4 sm:$0xff]  }
 0x4b9   :  { %v1828_v57 = vadd.f32 %v800_v56, %v797_v55  ;;  %v1368_v55 = vld [vmem:[%s1999_s1 + $0x60] ss:$16 sps:$4 sm:$0xff]   ;;  %v1369_v56 = vld [vmem:[%s1999_s1 + $0x68] ss:$16 sps:$4 sm:$0xff]  }
 0x4bb   :  { %1318 = vtanh.f32 %v1828_v57 }
 0x4c8   :  { %v1319_v60 = vpop.eup %1318 }
 0x4c9   :  { %v805_v61 = vmul.f32 %v1319_v60, %v803_v59  ;;  %v1373_v59 = vld [vmem:[%s1999_s1 + $0x48] ss:$16 sps:$4 sm:$0xff]   ;;  %v1374_v60 = vld [vmem:[%s1999_s1 + $0x24] ss:$16 sps:$4 sm:$0xff]  }
 0x4cb   :  { %1210 = vst [vmem:[%s2001_s2 + $0x20] sm:$0xff] %v805_v61  ;;  %v815_v62 = vpack.c.bf16 %v805_v61, %v805_v61  ;;  %v1375_v61 = vld [vmem:[%s1999_s1 + $0x2c] ss:$16 sps:$4 sm:$0xff]  }
 0x4cd   :  { %849 = vmatmul.mubr.bf16.vlgmr.msra.gmra.mxu0 %v815_v62  ;;  %890 = vmatmul.mubr.bf16.vlgmr.msra.gmra.mxu1 %v815_v62  ;;  %v1376_v62 = vld [vmem:[%s1999_s1 + $0x20] ss:$16 sps:$4 sm:$0xff]  }
 0x4ce   :  { %932 = vmatpush1.bf16.msra.mxu0 %v1414_v2  ;;  %973 = vmatpush1.bf16.msra.mxu1 %v1425_v4  ;;  %v1350_v2 = vld [vmem:[%s1999_s1 + $0xe4] ss:$16 sps:$4 sm:$0xff]   ;;  %v1351_v4 = vld [vmem:[%s1999_s1 + $0xec] ss:$16 sps:$4 sm:$0xff]  }
 0x4cf   :  { %933 = vmatprep.subr.bf16.mxu0 %v1431_v5  ;;  %974 = vmatprep.subr.bf16.mxu1 %v1442_v7  ;;  %v1211_v5 = vld [vmem:[%s2000_s0 + $0x50] sm:$0xff] }
 0x4d0   :  { %963 = vmatprep.mubr.bf16.mxu0 %v1382_v1  ;;  %1004 = vmatprep.mubr.bf16.mxu1 %v1382_v1  ;;  %v812_v7 = vunpack.c.h.bf16 %v1211_v5 }
 0x4d2   :  { %934 = vmatpush1.bf16.msra.mxu0 %v1436_v6  ;;  %975 = vmatpush1.bf16.msra.mxu1 %v1449_v8  ;;  %v811_v6 = vunpack.c.l.bf16 %v1211_v5  ;;  %v1379_v5 = vld [vmem:[%s1999_s1 + $0xc] ss:$16 sps:$4 sm:$0xff]  }
 0x4d3   :  { %935 = vmatprep.subr.bf16.mxu0 %v1455_v9  ;;  %976 = vmatprep.subr.bf16.mxu1 %v1466_v11  ;;  %v1212_v9 = vld [vmem:[%s2000_s0 + $0x58] sm:$0xff] }
 0x4d6   :  { %936 = vmatpush1.bf16.msra.mxu0 %v1461_v10  ;;  %977 = vmatpush1.bf16.msra.mxu1 %v1478_v13 }
 0x4d7   :  { %937 = vmatprep.subr.bf16.mxu0 %v1472_v12  ;;  %978 = vmatprep.subr.bf16.mxu1 %v1484_v14 }
 0x4da   :  { %938 = vmatpush1.bf16.msra.mxu0 %v1490_v15  ;;  %979 = vmatpush1.bf16.msra.mxu1 %v1502_v17  ;;  %v813_v15 = vunpack.c.l.bf16 %v1212_v9 }
 0x4db   :  { %939 = vmatprep.subr.bf16.mxu0 %v1496_v16  ;;  %980 = vmatprep.subr.bf16.mxu1 %v1508_v18 }
 0x4de   :  { %940 = vmatpush1.bf16.msra.mxu0 %v1514_v19  ;;  %981 = vmatpush1.bf16.msra.mxu1 %v1526_v21 }
 0x4df   :  { %941 = vmatprep.subr.bf16.mxu0 %v1520_v20  ;;  %982 = vmatprep.subr.bf16.mxu1 %v1532_v22 }
 0x4e2   :  { %942 = vmatpush1.bf16.msra.mxu0 %v1538_v23  ;;  %983 = vmatpush1.bf16.msra.mxu1 %v1550_v25  ;;  %v814_v23 = vunpack.c.h.bf16 %v1212_v9 }
 0x4e3   :  { %943 = vmatprep.subr.bf16.mxu0 %v1544_v24  ;;  %984 = vmatprep.subr.bf16.mxu1 %v1556_v26 }
 0x4e6   :  { %944 = vmatpush1.bf16.msra.mxu0 %v1562_v27  ;;  %985 = vmatpush1.bf16.msra.mxu1 %v1574_v29 }
 0x4e7   :  { %945 = vmatprep.subr.bf16.mxu0 %v1568_v28  ;;  %986 = vmatprep.subr.bf16.mxu1 %v1580_v30 }
 0x4ea   :  { %946 = vmatpush1.bf16.msra.mxu0 %v1586_v31  ;;  %987 = vmatpush1.bf16.msra.mxu1 %v1593_v32 }
 0x4eb   :  { %1046 = vmatprep.subr.bf16.mxu0 %v1350_v2  ;;  %1087 = vmatprep.subr.bf16.mxu1 %v1351_v4  ;;  %v1377_v2 = vld [vmem:[%s1999_s1 + $0x28] ss:$16 sps:$4 sm:$0xff]   ;;  %v1378_v4 = vld [vmem:[%s1999_s1 + $0x4] ss:$16 sps:$4 sm:$0xff]  }
 0x58d   :  { %v850_v8 = vpop.f32.mrf.mxu0  ;;  %v891_v10 = vpop.f32.mrf.mxu1 }
 0x58e   :  { %v898_v11 = vadd.f32 %v850_v8, %v811_v6  ;;  %v900_v22 = vadd.f32 %v891_v10, %v813_v15  ;;  %v1380_v6 = vld [vmem:[%s1999_s1] ss:$16 sps:$4 sm:$0xff]  }
 0x58f   :  { %v852_v12 = vpop.f32.mrf.mxu0  ;;  %v893_v13 = vpop.f32.mrf.mxu1  ;;  %v1214_v8 = vld [vmem:[%s2000_s0 + $0x60] sm:$0xff] }
 0x590   :  { %v902_v14 = vmul.f32 0.5, %v898_v11  ;;  %v899_v16 = vadd.f32 %v852_v12, %v812_v7  ;;  %v901_v24 = vadd.f32 %v893_v13, %v814_v23  ;;  %v1381_v7 = vld [vmem:[%s1999_s1 + $0x8] ss:$16 sps:$4 sm:$0xff]   ;;  %v926_v9 = vunpack.c.l.bf16 %v1214_v8 }
 0x591   :  { %v854_v17 = vpop.f32.mrf.mxu0  ;;  %v895_v18 = vpop.f32.mrf.mxu1  ;;  %v927_v10 = vunpack.c.h.bf16 %v1214_v8  ;;  %v1215_v12 = vld [vmem:[%s2000_s0 + $0x68] sm:$0xff] }
 0x592   :  { %1320 = vtanh.f32 %v902_v14  ;;  %v903_v19 = vmul.f32 0.5, %v899_v16  ;;  %v905_v25 = vmul.f32 0.5, %v901_v24  ;;  %v928_v18 = vunpack.c.l.bf16 %v1215_v12 }
 0x593   :  { %v855_v20 = vpop.f32.mrf.mxu0  ;;  %v896_v21 = vpop.f32.mrf.mxu1 }
 0x594   :  { %1322 = vtanh.f32 %v903_v19 }
 0x595   :  { %1324 = vtanh.f32 %v900_v22 }
 0x596   :  { %1326 = vtanh.f32 %v905_v25 }
 0x59f   :  { %v1321_v26 = vpop.eup %1320 }
 0x5a0   :  { %v910_v27 = vadd.f32 1.0, %v1321_v26  ;;  %v929_v26 = vunpack.c.h.bf16 %v1215_v12 }
 0x5a1   :  { %v1323_v28 = vpop.eup %1322 }
 0x5a2   :  { %v911_v29 = vmul.f32 0.5, %v910_v27  ;;  %v913_v30 = vadd.f32 1.0, %v1323_v28  ;;  %v1325_v32 = vpop.eup %1324 }
 0x5a3   :  { %v1327_v35 = vpop.eup %1326 }
 0x5a4   :  { %v914_v31 = vmul.f32 0.5, %v913_v30  ;;  %v912_v40 = vmul.f32 %v1325_v32, %v911_v29  ;;  %v917_v37 = vadd.f32 1.0, %v1327_v35 }
 0x5a6   :  { %v915_v63 = vmul.f32 %v914_v31, %v1828_v57  ;;  %v918_v36 = vmul.f32 0.5, %v917_v37  ;;  %v1370_v57 = vld [vmem:[%s1999_s1 + $0x44] ss:$16 sps:$4 sm:$0xff]  }
 0x5a8   :  { %v1879_v34 = vadd.f32 %v915_v63, %v912_v40 }
 0x5aa   :  { %1328 = vtanh.f32 %v1879_v34 }
 0x5b7   :  { %v1329_v38 = vpop.eup %1328 }
 0x5b8   :  { %v920_v0 = vmul.f32 %v1329_v38, %v918_v36 }
 0x5ba   :  { %1213 = vst [vmem:[%s2001_s2 + $0x28] sm:$0xff] %v920_v0  ;;  %v930_v39 = vpack.c.bf16 %v920_v0, %v920_v0 }
 0x5bc   :  { %964 = vmatmul.mubr.bf16.vlgmr.msra.gmra.mxu0 %v930_v39  ;;  %1005 = vmatmul.mubr.bf16.vlgmr.msra.gmra.mxu1 %v930_v39 }
 0x5bd   :  { %1047 = vmatpush1.bf16.msra.mxu0 %v1352_v3  ;;  %1088 = vmatpush1.bf16.msra.mxu1 %v1353_v41 }
 0x5be   :  { %1048 = vmatprep.subr.bf16.mxu0 %v1354_v42  ;;  %1089 = vmatprep.subr.bf16.mxu1 %v1355_v43 }
 0x5bf   :  { %1078 = vmatprep.mubr.bf16.mxu0 %v1382_v1  ;;  %1119 = vmatprep.mubr.bf16.mxu1 %v1382_v1  ;;  %v1360_v1 = vld [vmem:[%s1999_s1 + $0xa0] ss:$16 sps:$4 sm:$0xff]  }
 0x5c1   :  { %1049 = vmatpush1.bf16.msra.mxu0 %v1356_v44  ;;  %1090 = vmatpush1.bf16.msra.mxu1 %v1357_v45  ;;  %v1217_v44 = vld [vmem:[%s2000_s0 + $0x70] sm:$0xff] }
 0x5c2   :  { %1050 = vmatprep.subr.bf16.mxu0 %v1358_v46  ;;  %1091 = vmatprep.subr.bf16.mxu1 %v1359_v47  ;;  %v1041_v45 = vunpack.c.l.bf16 %v1217_v44  ;;  %v1218_v47 = vld [vmem:[%s2000_s0 + $0x78] sm:$0xff] }
 0x5c5   :  { %1051 = vmatpush1.bf16.msra.mxu0 %v1360_v1  ;;  %1092 = vmatpush1.bf16.msra.mxu1 %v1361_v48 }
 0x5c6   :  { %1052 = vmatprep.subr.bf16.mxu0 %v1362_v49  ;;  %1093 = vmatprep.subr.bf16.mxu1 %v1363_v50 }
 0x5c9   :  { %1053 = vmatpush1.bf16.msra.mxu0 %v1364_v51  ;;  %1094 = vmatpush1.bf16.msra.mxu1 %v1365_v52  ;;  %v1043_v52 = vunpack.c.l.bf16 %v1218_v47 }
 0x5ca   :  { %1054 = vmatprep.subr.bf16.mxu0 %v1366_v53  ;;  %1095 = vmatprep.subr.bf16.mxu1 %v1367_v54 }
 0x5cd   :  { %1055 = vmatpush1.bf16.msra.mxu0 %v1368_v55  ;;  %1096 = vmatpush1.bf16.msra.mxu1 %v1369_v56 }
 0x5ce   :  { %1056 = vmatprep.subr.bf16.mxu0 %v1370_v57  ;;  %1097 = vmatprep.subr.bf16.mxu1 %v1371_v58 }
 0x5d1   :  { %1057 = vmatpush1.bf16.msra.mxu0 %v1372_v33  ;;  %1098 = vmatpush1.bf16.msra.mxu1 %v1373_v59  ;;  %v1044_v59 = vunpack.c.h.bf16 %v1218_v47 }
 0x5d2   :  { %1058 = vmatprep.subr.bf16.mxu0 %v1374_v60  ;;  %1099 = vmatprep.subr.bf16.mxu1 %v1375_v61 }
 0x5d5   :  { %1059 = vmatpush1.bf16.msra.mxu0 %v1376_v62  ;;  %1100 = vmatpush1.bf16.msra.mxu1 %v1377_v2 }
 0x5d6   :  { %1060 = vmatprep.subr.bf16.mxu0 %v1378_v4  ;;  %1101 = vmatprep.subr.bf16.mxu1 %v1379_v5 }
 0x5d9   :  { %1061 = vmatpush1.bf16.msra.mxu0 %v1380_v6  ;;  %1102 = vmatpush1.bf16.msra.mxu1 %v1381_v7 }
 0x67c   :  { %v965_v11 = vpop.f32.mrf.mxu0  ;;  %v1006_v13 = vpop.f32.mrf.mxu1 }
 0x67d   :  { %v1013_v14 = vadd.f32 %v965_v11, %v926_v9  ;;  %v1015_v25 = vadd.f32 %v1006_v13, %v928_v18 }
 0x67e   :  { %v967_v15 = vpop.f32.mrf.mxu0  ;;  %v1008_v16 = vpop.f32.mrf.mxu1 }
 0x67f   :  { %v1017_v17 = vmul.f32 0.5, %v1013_v14  ;;  %v1014_v19 = vadd.f32 %v967_v15, %v927_v10  ;;  %v1016_v27 = vadd.f32 %v1008_v16, %v929_v26 }
 0x680   :  { %v969_v20 = vpop.f32.mrf.mxu0  ;;  %v1010_v21 = vpop.f32.mrf.mxu1 }
 0x681   :  { %1330 = vtanh.f32 %v1017_v17  ;;  %v1018_v22 = vmul.f32 0.5, %v1014_v19  ;;  %v1020_v28 = vmul.f32 0.5, %v1016_v27 }
 0x682   :  { %v970_v23 = vpop.f32.mrf.mxu0  ;;  %v1011_v24 = vpop.f32.mrf.mxu1 }
 0x683   :  { %1332 = vtanh.f32 %v1018_v22 }
 0x684   :  { %1334 = vtanh.f32 %v1015_v25 }
 0x685   :  { %1336 = vtanh.f32 %v1020_v28 }
 0x68e   :  { %v1331_v29 = vpop.eup %1330 }
 0x68f   :  { %v1025_v30 = vadd.f32 1.0, %v1331_v29 }
 0x690   :  { %v1333_v31 = vpop.eup %1332 }
 0x691   :  { %v1026_v32 = vmul.f32 0.5, %v1025_v30  ;;  %v1028_v40 = vadd.f32 1.0, %v1333_v31  ;;  %v1335_v35 = vpop.eup %1334 }
 0x692   :  { %v1337_v0 = vpop.eup %1336 }
 0x693   :  { %v1029_v63 = vmul.f32 0.5, %v1028_v40  ;;  %v1027_v37 = vmul.f32 %v1335_v35, %v1026_v32  ;;  %v1032_v39 = vadd.f32 1.0, %v1337_v0 }
 0x695   :  { %v1030_v36 = vmul.f32 %v1029_v63, %v1879_v34  ;;  %v1033_v3 = vmul.f32 0.5, %v1032_v39  ;;  %v1042_v34 = vunpack.c.h.bf16 %v1217_v44 }
 0x697   :  { %v1031_v38 = vadd.f32 %v1030_v36, %v1027_v37 }
 0x699   :  { %1338 = vtanh.f32 %v1031_v38 }
 0x6a6   :  { %v1339_v41 = vpop.eup %1338 }
 0x6a7   :  { %v1035_v42 = vmul.f32 %v1339_v41, %v1033_v3 }
 0x6a9   :  { %1216 = vst [vmem:[%s2001_s2 + $0x30] sm:$0xff] %v1035_v42  ;;  %v1045_v43 = vpack.c.bf16 %v1035_v42, %v1035_v42 }
 0x6ab   :  { %1079 = vmatmul.mubr.bf16.vlgmr.msra.gmra.mxu0 %v1045_v43  ;;  %1120 = vmatmul.mubr.bf16.vlgmr.msra.gmra.mxu1 %v1045_v43 }
 0x76b   :  { %v1080_v46 = vpop.f32.mrf.mxu0  ;;  %v1121_v1 = vpop.f32.mrf.mxu1 }
 0x76c   :  { %v1128_v48 = vadd.f32 %v1080_v46, %v1041_v45  ;;  %v1130_v33 = vadd.f32 %v1121_v1, %v1043_v52 }
 0x76d   :  { %v1082_v49 = vpop.f32.mrf.mxu0  ;;  %v1123_v50 = vpop.f32.mrf.mxu1 }
 0x76e   :  { %v1132_v51 = vmul.f32 0.5, %v1128_v48  ;;  %v1129_v53 = vadd.f32 %v1082_v49, %v1042_v34  ;;  %v1131_v60 = vadd.f32 %v1123_v50, %v1044_v59 }
 0x76f   :  { %v1084_v54 = vpop.f32.mrf.mxu0  ;;  %v1125_v55 = vpop.f32.mrf.mxu1 }
 0x770   :  { %1340 = vtanh.f32 %v1132_v51  ;;  %v1133_v56 = vmul.f32 0.5, %v1129_v53  ;;  %v1135_v61 = vmul.f32 0.5, %v1131_v60 }
 0x771   :  { %v1085_v57 = vpop.f32.mrf.mxu0  ;;  %v1126_v58 = vpop.f32.mrf.mxu1 }
 0x772   :  { %1342 = vtanh.f32 %v1133_v56 }
 0x773   :  { %1344 = vtanh.f32 %v1130_v33 }
 0x774   :  { %1346 = vtanh.f32 %v1135_v61 }
 0x77d   :  { %v1341_v62 = vpop.eup %1340 }
 0x77e   :  { %v1140_v2 = vadd.f32 1.0, %v1341_v62 }
 0x77f   :  { %v1343_v4 = vpop.eup %1342 }
 0x780   :  { %v1141_v5 = vmul.f32 0.5, %v1140_v2  ;;  %v1143_v6 = vadd.f32 1.0, %v1343_v4  ;;  %v1345_v8 = vpop.eup %1344 }
 0x781   :  { %v1347_v12 = vpop.eup %1346 }
 0x782   :  { %v1144_v7 = vmul.f32 0.5, %v1143_v6  ;;  %v1142_v9 = vmul.f32 %v1345_v8, %v1141_v5  ;;  %v1147_v13 = vadd.f32 1.0, %v1347_v12 }
 0x784   :  { %v1145_v10 = vmul.f32 %v1144_v7, %v1031_v38  ;;  %v1148_v14 = vmul.f32 0.5, %v1147_v13 }
 0x786   :  { %v1146_v11 = vadd.f32 %v1145_v10, %v1142_v9 }
 0x788   :  { %1348 = vtanh.f32 %v1146_v11  ;;  %1158 = vst [vmem:[%s2002_s3] sm:$0xff] %v1146_v11 }
 0x795   :  { %v1349_v15 = vpop.eup %1348 }
 0x796   :  { %v1150_v16 = vmul.f32 %v1349_v15, %v1148_v14 }
 0x798   :  { %1219 = vst [vmem:[%s2001_s2 + $0x38] sm:$0xff] %v1150_v16 }

</bundles_post_ra>
